<compile_context>
chip_gen: v6e
topology: v6e:2x2x1
jax: 0.10.0
libtpu: 0.0.40
codegen_flags: <defaults>
</compile_context>

<pallas_src>
import functools

import jax
import jax.numpy as jnp
from jax.experimental import pallas as pl
from jax.experimental.pallas import tpu as pltpu

LN_EPS = 1e-12


def _vmem_limit_bytes():
    # ~3/4 of physical VMEM, capped at 96 MiB (v5e/v6e: 128 MiB phys -> 96 MiB,
    # v7x: 64 MiB phys -> 48 MiB).  Fallback is safe on every generation.
    try:
        cap = pltpu.get_tpu_info().vmem_capacity_bytes
        return min(int(cap * 3 // 4), 96 * 1024 * 1024)
    except Exception:
        return 48 * 1024 * 1024


VMEM_LIMIT = _vmem_limit_bytes()


def _ceil_to(x, m):
    return ((x + m - 1) // m) * m


def _pick_tile(dim, target, align):
    """Largest `align`-multiple divisor of `dim` <= target (full dim if small).

    Used only for weight dims (N/K), which are 128-multiples in practice, so
    the divisor search always succeeds; row (M) dims are padded instead."""
    if dim <= target:
        return dim
    t = (target // align) * align
    while t >= align:
        if dim % t == 0:
            return t
        t -= align
    return dim


def _row_tile_and_pad(M, target=512, align=16):
    """Row-tile selection: never fall back to the full dim; pad instead."""
    if M <= target:
        tm = _ceil_to(M, align)
    else:
        tm = target  # keeps >=2 row blocks for dual-TC (v7x) megacore sharding
    return tm, _ceil_to(M, tm)


# ----------------------------- kernels ------------------------------------


def _dense_kernel(x_ref, w_ref, b_ref, o_ref, acc_ref, *, activation):
    k = pl.program_id(2)

    @pl.when(k == 0)
    def _():
        acc_ref[...] = jnp.zeros(acc_ref.shape, acc_ref.dtype)

    # bf16 x bf16 -> f32 on the MXU
    acc_ref[...] += jnp.dot(x_ref[...], w_ref[...],
                            preferred_element_type=jnp.float32)

    @pl.when(k == pl.num_programs(2) - 1)
    def _():
        y = acc_ref[...] + b_ref[...]
        if activation == "gelu":
            # TODO(synk): HF BERT default is exact erf GELU; tanh approximation used.
            c = 0.7978845608028654  # sqrt(2/pi)
            y = 0.5 * y * (1.0 + jnp.tanh(c * (y + 0.044715 * y * y * y)))
        o_ref[...] = y.astype(o_ref.dtype)


def _dense_add_ln_kernel(x_ref, w_ref, b_ref, res_ref, g_ref, bt_ref,
                         o_ref, acc_ref, *, eps):
    k = pl.program_id(1)

    @pl.when(k == 0)
    def _():
        acc_ref[...] = jnp.zeros(acc_ref.shape, acc_ref.dtype)

    acc_ref[...] += jnp.dot(x_ref[...], w_ref[...],
                            preferred_element_type=jnp.float32)

    @pl.when(k == pl.num_programs(1) - 1)
    def _():
        y = acc_ref[...] + b_ref[...] + res_ref[...].astype(jnp.float32)
        mu = jnp.mean(y, axis=-1, keepdims=True)
        var = jnp.mean((y - mu) ** 2, axis=-1, keepdims=True)
        yn = (y - mu) * jax.lax.rsqrt(var + eps)
        o_ref[...] = (yn * g_ref[...] + bt_ref[...]).astype(o_ref.dtype)


def _ln_kernel(x_ref, g_ref, b_ref, o_ref, *, eps):
    x = x_ref[...].astype(jnp.float32)
    mu = jnp.mean(x, axis=-1, keepdims=True)
    var = jnp.mean((x - mu) ** 2, axis=-1, keepdims=True)
    y = (x - mu) * jax.lax.rsqrt(var + eps)
    o_ref[...] = (y * g_ref[...] + b_ref[...]).astype(o_ref.dtype)


def _flash_attn_kernel(q_ref, k_ref, v_ref, m_ref, o_ref, m_sc, l_sc, acc_sc):
    # grid = (B, nh, q_tiles, kv_tiles); q/k/v blocks come straight out of the
    # fused (B*S, 3H) qkv buffer; 1/sqrt(dh) is already folded into Wq.
    ki = pl.program_id(3)

    @pl.when(ki == 0)
    def _():
        m_sc[...] = jnp.full(m_sc.shape, -jnp.inf, m_sc.dtype)
        l_sc[...] = jnp.zeros(l_sc.shape, l_sc.dtype)
        acc_sc[...] = jnp.zeros(acc_sc.shape, acc_sc.dtype)

    q = q_ref[...]                                                  # (tq, dh)
    k = k_ref[...]                                                  # (tkv, dh)
    v = v_ref[...]                                                  # (tkv, dh)

    s = jax.lax.dot_general(q, k, (((1,), (1,)), ((), ())),
                            preferred_element_type=jnp.float32)     # (tq, tkv)
    s = s + m_ref[0]                                                # (1, tkv) additive mask

    m_prev = m_sc[...]
    m_new = jnp.maximum(m_prev, jnp.max(s, axis=-1, keepdims=True))
    alpha = jnp.exp(m_prev - m_new)
    p = jnp.exp(s - m_new)
    l_sc[...] = alpha * l_sc[...] + jnp.sum(p, axis=-1, keepdims=True)
    acc_sc[...] = alpha * acc_sc[...] + jnp.dot(
        p.astype(v.dtype), v, preferred_element_type=jnp.float32)
    m_sc[...] = m_new

    @pl.when(ki == pl.num_programs(3) - 1)
    def _():
        inv = pl.reciprocal(l_sc[...], approx=True)
        o_ref[...] = (acc_sc[...] * inv).astype(o_ref.dtype)


# ----------------------------- wrappers ------------------------------------


def pallas_dense(x, w, b, activation=None, out_dtype=jnp.bfloat16):
    M, K = x.shape
    _, N = w.shape
    tm, Mp = _row_tile_and_pad(M)
    if Mp != M:
        x = jnp.pad(x, ((0, Mp - M), (0, 0)))
    tn = _pick_tile(N, 512, 128)
    tk = K if K <= 1024 else _pick_tile(K, 1024, 128)
    grid = (Mp // tm, N // tn, K // tk)
    out = pl.pallas_call(
        functools.partial(_dense_kernel, activation=activation),
        out_shape=jax.ShapeDtypeStruct((Mp, N), out_dtype),
        grid=grid,
        in_specs=[
            pl.BlockSpec((tm, tk), lambda i, j, k: (i, k)),
            pl.BlockSpec((tk, tn), lambda i, j, k: (k, j)),
            pl.BlockSpec((1, tn), lambda i, j, k: (0, j)),
        ],
        out_specs=pl.BlockSpec((tm, tn), lambda i, j, k: (i, j)),
        scratch_shapes=[pltpu.VMEM((tm, tn), jnp.float32)],
        compiler_params=pltpu.CompilerParams(
            dimension_semantics=("parallel", "parallel", "arbitrary"),
            vmem_limit_bytes=VMEM_LIMIT),
    )(x, w, b.reshape(1, N).astype(jnp.float32))
    return out if Mp == M else out[:M]


def pallas_dense_add_layernorm(x, w, b, res, gamma, beta, out_dtype=jnp.bfloat16):
    M, K = x.shape
    _, H = w.shape
    tm, Mp = _row_tile_and_pad(M)
    if Mp != M:
        x = jnp.pad(x, ((0, Mp - M), (0, 0)))
        res = jnp.pad(res, ((0, Mp - M), (0, 0)))
    tk = K if K <= 1024 else _pick_tile(K, 1024, 128)
    grid = (Mp // tm, K // tk)
    out = pl.pallas_call(
        functools.partial(_dense_add_ln_kernel, eps=LN_EPS),
        out_shape=jax.ShapeDtypeStruct((Mp, H), out_dtype),
        grid=grid,
        in_specs=[
            pl.BlockSpec((tm, tk), lambda i, k: (i, k)),
            pl.BlockSpec((tk, H), lambda i, k: (k, 0)),
            pl.BlockSpec((1, H), lambda i, k: (0, 0)),
            pl.BlockSpec((tm, H), lambda i, k: (i, 0)),
            pl.BlockSpec((1, H), lambda i, k: (0, 0)),
            pl.BlockSpec((1, H), lambda i, k: (0, 0)),
        ],
        out_specs=pl.BlockSpec((tm, H), lambda i, k: (i, 0)),
        scratch_shapes=[pltpu.VMEM((tm, H), jnp.float32)],
        compiler_params=pltpu.CompilerParams(
            dimension_semantics=("parallel", "arbitrary"),
            vmem_limit_bytes=VMEM_LIMIT),
    )(x, w, b.reshape(1, H).astype(jnp.float32), res,
      gamma.reshape(1, H).astype(jnp.float32),
      beta.reshape(1, H).astype(jnp.float32))
    return out if Mp == M else out[:M]


def pallas_layernorm(x, gamma, beta, out_dtype=jnp.bfloat16):
    M, H = x.shape
    tm, Mp = _row_tile_and_pad(M)
    if Mp != M:
        x = jnp.pad(x, ((0, Mp - M), (0, 0)))
    out = pl.pallas_call(
        functools.partial(_ln_kernel, eps=LN_EPS),
        out_shape=jax.ShapeDtypeStruct((Mp, H), out_dtype),
        grid=(Mp // tm,),
        in_specs=[
            pl.BlockSpec((tm, H), lambda i: (i, 0)),
            pl.BlockSpec((1, H), lambda i: (0, 0)),
            pl.BlockSpec((1, H), lambda i: (0, 0)),
        ],
        out_specs=pl.BlockSpec((tm, H), lambda i: (i, 0)),
        compiler_params=pltpu.CompilerParams(
            dimension_semantics=("parallel",),
            vmem_limit_bytes=VMEM_LIMIT),
    )(x, gamma.reshape(1, H).astype(jnp.float32),
      beta.reshape(1, H).astype(jnp.float32))
    return out if Mp == M else out[:M]


def pallas_flash_attention(qkv, add_mask, B, S, nh, dh, out_dtype=jnp.bfloat16):
    """qkv: (B*S, 3*nh*dh) fused projection; add_mask: (B, 1, S) additive f32.

    Reads per-head Q/K/V blocks directly out of the fused qkv buffer and
    writes each head's context into the merged (B*S, nh*dh) output layout,
    so no JAX-side head split/merge transposes are needed."""
    H = nh * dh
    tq = _pick_tile(S, 512, 8)
    tkv = S if S <= 1024 else _pick_tile(S, 512, 128)
    nq = S // tq
    nk = S // tkv
    grid = (B, nh, nq, nk)
    return pl.pallas_call(
        _flash_attn_kernel,
        out_shape=jax.ShapeDtypeStruct((B * S, H), out_dtype),
        grid=grid,
        in_specs=[
            pl.BlockSpec((tq, dh), lambda b, h, qi, ki: (b * nq + qi, h)),
            pl.BlockSpec((tkv, dh), lambda b, h, qi, ki: (b * nk + ki, nh + h)),
            pl.BlockSpec((tkv, dh), lambda b, h, qi, ki: (b * nk + ki, 2 * nh + h)),
            pl.BlockSpec((1, 1, tkv), lambda b, h, qi, ki: (b, 0, ki)),
        ],
        out_specs=pl.BlockSpec((tq, dh), lambda b, h, qi, ki: (b * nq + qi, h)),
        scratch_shapes=[pltpu.VMEM((tq, 1), jnp.float32),
                        pltpu.VMEM((tq, 1), jnp.float32),
                        pltpu.VMEM((tq, dh), jnp.float32)],
        compiler_params=pltpu.CompilerParams(
            dimension_semantics=("parallel", "parallel", "parallel", "arbitrary"),
            vmem_limit_bytes=VMEM_LIMIT),
    )(qkv, qkv, qkv, add_mask)


# ----------------------------- model ---------------------------------------


def init_params(key, cfg):
    H, I, NL = cfg["hidden"], cfg["intermediate"], cfg["labels"]
    nh = cfg["heads"]
    dh = H // nh
    scale = 1.0 / float(dh) ** 0.5
    wdt = jnp.bfloat16

    def nrm_f32(k, shape, s=0.02):
        return s * jax.random.normal(k, shape, dtype=jnp.float32)

    keys = iter(jax.random.split(key, 8 + 4 * cfg["layers"]))
    p = {
        "word_emb": nrm_f32(next(keys), (cfg["vocab"], H)).astype(wdt),
        "pos_emb": nrm_f32(next(keys), (cfg["max_pos"], H)).astype(wdt),
        "type_emb": nrm_f32(next(keys), (cfg["type_vocab"], H)).astype(wdt),
        "emb_ln_g": jnp.ones((H,), jnp.float32),
        "emb_ln_b": jnp.zeros((H,), jnp.float32),
        "layers": [],
    }
    for _ in range(cfg["layers"]):
        wqkv = nrm_f32(next(keys), (H, 3 * H))
        # fold the 1/sqrt(dh) attention scale into the Q projection columns
        wqkv = wqkv.at[:, :H].multiply(scale)
        bqkv = jnp.zeros((3 * H,), jnp.float32)  # Q part of a real bias would be scaled too
        p["layers"].append({
            "wqkv": wqkv.astype(wdt), "bqkv": bqkv,
            "wo": nrm_f32(next(keys), (H, H)).astype(wdt),
            "bo": jnp.zeros((H,), jnp.float32),
            "ln1_g": jnp.ones((H,), jnp.float32), "ln1_b": jnp.zeros((H,), jnp.float32),
            "w1": nrm_f32(next(keys), (H, I)).astype(wdt),
            "b1": jnp.zeros((I,), jnp.float32),
            "w2": nrm_f32(next(keys), (I, H)).astype(wdt),
            "b2": jnp.zeros((H,), jnp.float32),
            "ln2_g": jnp.ones((H,), jnp.float32), "ln2_b": jnp.zeros((H,), jnp.float32),
        })
    # classifier weight padded to a lane-dense (multiple of 128) output width
    NLp = max(128, _ceil_to(NL, 128))
    cls_w = nrm_f32(next(keys), (H, NL))
    p["cls_w_pad"] = jnp.zeros((H, NLp), wdt).at[:, :NL].set(cls_w.astype(wdt))
    p["cls_b_pad"] = jnp.zeros((NLp,), jnp.float32)
    return p


def bert_linear_ner_forward(params, cfg, input_ids, attention_mask,
                            token_type_ids=None, position_ids=None):
    B, S = input_ids.shape
    H = cfg["hidden"]
    nh = cfg["heads"]
    dh = H // nh

    if token_type_ids is None:
        token_type_ids = jnp.zeros_like(input_ids)
    if position_ids is None:
        position_ids = jnp.broadcast_to(
            jnp.arange(S, dtype=jnp.int32)[None, :], (B, S))

    # Embedding gathers are glue (plain JAX), summed in f32 for parity;
    # LayerNorm runs in Pallas.
    emb = (jnp.take(params["word_emb"], input_ids, axis=0).astype(jnp.float32)
           + jnp.take(params["pos_emb"], position_ids, axis=0).astype(jnp.float32)
           + jnp.take(params["type_emb"], token_type_ids, axis=0).astype(jnp.float32))
    x = pallas_layernorm(emb.reshape(B * S, H),
                         params["emb_ln_g"], params["emb_ln_b"])

    # additive mask, kept at (B, 1, S) and indexed per-batch inside the kernel
    add_mask = ((1.0 - attention_mask.astype(jnp.float32)) * -1e9)[:, None, :]

    for L in params["layers"]:
        # fused Q/K/V projection (scale pre-folded into the Q columns)
        qkv = pallas_dense(x, L["wqkv"], L["bqkv"])                   # (B*S, 3H)
        # flash attention straight on the fused buffer; output already merged
        ctx = pallas_flash_attention(qkv, add_mask, B, S, nh, dh)     # (B*S, H)
        # fused: out-proj matmul + bias + residual + LayerNorm
        x = pallas_dense_add_layernorm(ctx, L["wo"], L["bo"], x,
                                       L["ln1_g"], L["ln1_b"])
        # fused: FFN up matmul + bias + GELU
        h = pallas_dense(x, L["w1"], L["b1"], activation="gelu")
        # fused: FFN down matmul + bias + residual + LayerNorm
        x = pallas_dense_add_layernorm(h, L["w2"], L["b2"], x,
                                       L["ln2_g"], L["ln2_b"])

    # classifier4NER: nn.Linear(hidden_size, num_labels) per token (lane-padded)
    logits = pallas_dense(x, params["cls_w_pad"], params["cls_b_pad"],
                          out_dtype=jnp.float32)[:, :cfg["labels"]]
    return logits.reshape(B, S, cfg["labels"])


# ----------------------------- main -----------------------------------------


if __name__ == "__main__":
    # small BERT-like config; dh = hidden/heads = 128 keeps attention blocks
    # lane-dense on the fused qkv buffer
    cfg = dict(vocab=100, hidden=256, heads=2, layers=2, intermediate=512,
               max_pos=16, type_vocab=2, labels=5)
    B, S = 2, 8

    key = jax.random.PRNGKey(0)
    k_param, k_ids = jax.random.split(key)

    # TODO(synk): pretrained BERT weights (AutoModel.from_pretrained) cannot be
    # loaded here; synthetic deterministic weights are used instead.
    params = init_params(k_param, cfg)

    input_ids = jax.random.randint(k_ids, (B, S), 0, cfg["vocab"], dtype=jnp.int32)
    attention_mask = jnp.array(
        [[1, 1, 1, 1, 1, 1, 0, 0],
         [1, 1, 1, 1, 1, 1, 1, 1]], dtype=jnp.int32)

    @jax.jit
    def fwd(p, ids, mask):
        return bert_linear_ner_forward(p, cfg, ids, mask)

    ner_logits = fwd(params, input_ids, attention_mask)
    jax.block_until_ready(ner_logits)
    assert ner_logits.shape == (B, S, cfg["labels"])
    print("KERNEL_OK")
</pallas_src>

<mosaic_0001>
module attributes {stable_mosaic.version = 11 : i64} {
  func.func @_dense_kernel(%arg0: i32, %arg1: i32, %arg2: i32, %arg3: memref<16x256xbf16, #tpu.memory_space<vmem>>, %arg4: memref<256x384xbf16, #tpu.memory_space<vmem>>, %arg5: memref<1x384xf32, #tpu.memory_space<vmem>>, %arg6: memref<16x384xbf16, #tpu.memory_space<vmem>>, %arg7: memref<16x384xf32, #tpu.memory_space<vmem>>) attributes {dimension_semantics = [#tpu.dimension_semantics<parallel>, #tpu.dimension_semantics<parallel>, #tpu.dimension_semantics<arbitrary>], iteration_bounds = array<i64: 1, 2, 1>, scalar_prefetch = 0 : i64, scratch_operands = 1 : i64, tpu.core_type = #tpu.core_type<tc>, window_params = [{transform_indices = @transform_0, window_bounds = array<i64: 16, 256>}, {transform_indices = @transform_1, window_bounds = array<i64: 256, 384>}, {transform_indices = @transform_2, window_bounds = array<i64: 1, 384>}, {transform_indices = @transform_3, window_bounds = array<i64: 16, 384>}]} {
    %c0_i32 = arith.constant 0 : i32
    %0 = arith.cmpi eq, %arg2, %c0_i32 : i32
    %1 = arith.extui %0 : i1 to i32
    %c0_i32_0 = arith.constant 0 : i32
    %2 = arith.cmpi ne, %1, %c0_i32_0 : i32
    scf.if %2 {
      %cst_10 = arith.constant 0.000000e+00 : f32
      %12 = vector.broadcast %cst_10 : f32 to vector<16x384xf32>
      %c0_11 = arith.constant 0 : index
      %c0_12 = arith.constant 0 : index
      %13 = vector.load %arg7[%c0_11, %c0_12] : memref<16x384xf32, #tpu.memory_space<vmem>>, vector<16x384xf32>
      tpu.vector_store %arg7[%c0_11, %c0_12], %12 {strides = array<i32>} : memref<16x384xf32, #tpu.memory_space<vmem>>, vector<16x384xf32>,
    } else {
    }
    %c0 = arith.constant 0 : index
    %c0_1 = arith.constant 0 : index
    %3 = vector.load %arg7[%c0, %c0_1] : memref<16x384xf32, #tpu.memory_space<vmem>>, vector<16x384xf32>
    %c0_2 = arith.constant 0 : index
    %c0_3 = arith.constant 0 : index
    %4 = vector.load %arg3[%c0_2, %c0_3] : memref<16x256xbf16, #tpu.memory_space<vmem>>, vector<16x256xbf16>
    %c0_4 = arith.constant 0 : index
    %c0_5 = arith.constant 0 : index
    %5 = vector.load %arg4[%c0_4, %c0_5] : memref<256x384xbf16, #tpu.memory_space<vmem>>, vector<256x384xbf16>
    %cst = arith.constant dense<0.000000e+00> : vector<16x384xf32>
    %6 = tpu.matmul %4, %5, %cst {dimension_numbers = #tpu.dot_dimension_numbers<[1], [0], [0], [1], [0, 0, 1, 1], [], []>} : vector<16x256xbf16>, vector<256x384xbf16>, vector<16x384xf32> -> vector<16x384xf32>
    %7 = arith.addf %3, %6 : vector<16x384xf32>
    %c0_6 = arith.constant 0 : index
    %c0_7 = arith.constant 0 : index
    %8 = vector.load %arg7[%c0_6, %c0_7] : memref<16x384xf32, #tpu.memory_space<vmem>>, vector<16x384xf32>
    tpu.vector_store %arg7[%c0_6, %c0_7], %7 {strides = array<i32>} : memref<16x384xf32, #tpu.memory_space<vmem>>, vector<16x384xf32>,
    %c0_i32_8 = arith.constant 0 : i32
    %9 = arith.cmpi eq, %arg2, %c0_i32_8 : i32
    %10 = arith.extui %9 : i1 to i32
    %c0_i32_9 = arith.constant 0 : i32
    %11 = arith.cmpi ne, %10, %c0_i32_9 : i32
    scf.if %11 {
      %c0_10 = arith.constant 0 : index
      %c0_11 = arith.constant 0 : index
      %12 = vector.load %arg7[%c0_10, %c0_11] : memref<16x384xf32, #tpu.memory_space<vmem>>, vector<16x384xf32>
      %c0_12 = arith.constant 0 : index
      %c0_13 = arith.constant 0 : index
      %13 = vector.load %arg5[%c0_12, %c0_13] : memref<1x384xf32, #tpu.memory_space<vmem>>, vector<1x384xf32>
      %14 = vector.broadcast %13 : vector<1x384xf32> to vector<16x384xf32>
      %15 = arith.addf %12, %14 : vector<16x384xf32>
      %16 = arith.truncf %15 : vector<16x384xf32> to vector<16x384xbf16>
      %c0_14 = arith.constant 0 : index
      %c0_15 = arith.constant 0 : index
      %17 = vector.load %arg6[%c0_14, %c0_15] : memref<16x384xbf16, #tpu.memory_space<vmem>>, vector<16x384xbf16>
      tpu.vector_store %arg6[%c0_14, %c0_15], %16 {strides = array<i32>} : memref<16x384xbf16, #tpu.memory_space<vmem>>, vector<16x384xbf16>,
    } else {
    }
    return
  }
  func.func @transform_0(%arg0: i32, %arg1: i32, %arg2: i32) -> (i32, i32) {
    %c0_i32 = arith.constant 0 : i32
    return %arg0, %arg2 : i32, i32
  }
  func.func @transform_1(%arg0: i32, %arg1: i32, %arg2: i32) -> (i32, i32) {
    %c0_i32 = arith.constant 0 : i32
    return %arg2, %arg1 : i32, i32
  }
  func.func @transform_2(%arg0: i32, %arg1: i32, %arg2: i32) -> (i32, i32) {
    %c0_i32 = arith.constant 0 : i32
    %c0_i32_0 = arith.constant 0 : i32
    return %c0_i32, %arg1 : i32, i32
  }
  func.func @transform_3(%arg0: i32, %arg1: i32, %arg2: i32) -> (i32, i32) {
    %c0_i32 = arith.constant 0 : i32
    return %arg0, %arg1 : i32, i32
  }
}

module attributes {stable_mosaic.version = 11 : i64} {
  func.func @_dense_add_ln_kernel(%arg0: i32, %arg1: i32, %arg2: memref<16x256xbf16, #tpu.memory_space<vmem>>, %arg3: memref<256x256xbf16, #tpu.memory_space<vmem>>, %arg4: memref<1x256xf32, #tpu.memory_space<vmem>>, %arg5: memref<16x256xbf16, #tpu.memory_space<vmem>>, %arg6: memref<1x256xf32, #tpu.memory_space<vmem>>, %arg7: memref<1x256xf32, #tpu.memory_space<vmem>>, %arg8: memref<16x256xbf16, #tpu.memory_space<vmem>>, %arg9: memref<16x256xf32, #tpu.memory_space<vmem>>) attributes {dimension_semantics = [#tpu.dimension_semantics<parallel>, #tpu.dimension_semantics<arbitrary>], iteration_bounds = array<i64: 1, 1>, scalar_prefetch = 0 : i64, scratch_operands = 1 : i64, tpu.core_type = #tpu.core_type<tc>, window_params = [{transform_indices = @transform_0, window_bounds = array<i64: 16, 256>}, {transform_indices = @transform_1, window_bounds = array<i64: 256, 256>}, {pipeline_mode = #tpu.pipeline_mode<synchronous>, transform_indices = @transform_2, window_bounds = array<i64: 1, 256>}, {transform_indices = @transform_3, window_bounds = array<i64: 16, 256>}, {pipeline_mode = #tpu.pipeline_mode<synchronous>, transform_indices = @transform_4, window_bounds = array<i64: 1, 256>}, {pipeline_mode = #tpu.pipeline_mode<synchronous>, transform_indices = @transform_5, window_bounds = array<i64: 1, 256>}, {transform_indices = @transform_6, window_bounds = array<i64: 16, 256>}]} {
    %c0_i32 = arith.constant 0 : i32
    %0 = arith.cmpi eq, %arg1, %c0_i32 : i32
    %1 = arith.extui %0 : i1 to i32
    %c0_i32_0 = arith.constant 0 : i32
    %2 = arith.cmpi ne, %1, %c0_i32_0 : i32
    scf.if %2 {
      %cst_10 = arith.constant 0.000000e+00 : f32
      %12 = vector.broadcast %cst_10 : f32 to vector<16x256xf32>
      %c0_11 = arith.constant 0 : index
      %c0_12 = arith.constant 0 : index
      %13 = vector.load %arg9[%c0_11, %c0_12] : memref<16x256xf32, #tpu.memory_space<vmem>>, vector<16x256xf32>
      tpu.vector_store %arg9[%c0_11, %c0_12], %12 {strides = array<i32>} : memref<16x256xf32, #tpu.memory_space<vmem>>, vector<16x256xf32>,
    } else {
    }
    %c0 = arith.constant 0 : index
    %c0_1 = arith.constant 0 : index
    %3 = vector.load %arg9[%c0, %c0_1] : memref<16x256xf32, #tpu.memory_space<vmem>>, vector<16x256xf32>
    %c0_2 = arith.constant 0 : index
    %c0_3 = arith.constant 0 : index
    %4 = vector.load %arg2[%c0_2, %c0_3] : memref<16x256xbf16, #tpu.memory_space<vmem>>, vector<16x256xbf16>
    %c0_4 = arith.constant 0 : index
    %c0_5 = arith.constant 0 : index
    %5 = vector.load %arg3[%c0_4, %c0_5] : memref<256x256xbf16, #tpu.memory_space<vmem>>, vector<256x256xbf16>
    %cst = arith.constant dense<0.000000e+00> : vector<16x256xf32>
    %6 = tpu.matmul %4, %5, %cst {dimension_numbers = #tpu.dot_dimension_numbers<[1], [0], [0], [1], [0, 0, 1, 1], [], []>} : vector<16x256xbf16>, vector<256x256xbf16>, vector<16x256xf32> -> vector<16x256xf32>
    %7 = arith.addf %3, %6 : vector<16x256xf32>
    %c0_6 = arith.constant 0 : index
    %c0_7 = arith.constant 0 : index
    %8 = vector.load %arg9[%c0_6, %c0_7] : memref<16x256xf32, #tpu.memory_space<vmem>>, vector<16x256xf32>
    tpu.vector_store %arg9[%c0_6, %c0_7], %7 {strides = array<i32>} : memref<16x256xf32, #tpu.memory_space<vmem>>, vector<16x256xf32>,
    %c0_i32_8 = arith.constant 0 : i32
    %9 = arith.cmpi eq, %arg1, %c0_i32_8 : i32
    %10 = arith.extui %9 : i1 to i32
    %c0_i32_9 = arith.constant 0 : i32
    %11 = arith.cmpi ne, %10, %c0_i32_9 : i32
    scf.if %11 {
      %c0_10 = arith.constant 0 : index
      %c0_11 = arith.constant 0 : index
      %12 = vector.load %arg9[%c0_10, %c0_11] : memref<16x256xf32, #tpu.memory_space<vmem>>, vector<16x256xf32>
      %c0_12 = arith.constant 0 : index
      %c0_13 = arith.constant 0 : index
      %13 = vector.load %arg4[%c0_12, %c0_13] : memref<1x256xf32, #tpu.memory_space<vmem>>, vector<1x256xf32>
      %14 = vector.broadcast %13 : vector<1x256xf32> to vector<16x256xf32>
      %15 = arith.addf %12, %14 : vector<16x256xf32>
      %c0_14 = arith.constant 0 : index
      %c0_15 = arith.constant 0 : index
      %16 = vector.load %arg5[%c0_14, %c0_15] : memref<16x256xbf16, #tpu.memory_space<vmem>>, vector<16x256xbf16>
      %17 = arith.extf %16 : vector<16x256xbf16> to vector<16x256xf32>
      %18 = arith.addf %15, %17 : vector<16x256xf32>
      %cst_16 = arith.constant dense<0.000000e+00> : vector<16xf32>
      %19 = vector.multi_reduction <add>, %18, %cst_16 [1] : vector<16x256xf32> to vector<16xf32>
      %20 = vector.shape_cast %19 : vector<16xf32> to vector<16x1xf32>
      %cst_17 = arith.constant 2.560000e+02 : f32
      %21 = vector.broadcast %cst_17 : f32 to vector<16x1xf32>
      %22 = arith.divf %20, %21 : vector<16x1xf32>
      %23 = vector.broadcast %22 : vector<16x1xf32> to vector<16x256xf32>
      %24 = arith.subf %18, %23 : vector<16x256xf32>
      %25 = arith.mulf %24, %24 : vector<16x256xf32>
      %cst_18 = arith.constant dense<0.000000e+00> : vector<16xf32>
      %26 = vector.multi_reduction <add>, %25, %cst_18 [1] : vector<16x256xf32> to vector<16xf32>
      %27 = vector.shape_cast %26 : vector<16xf32> to vector<16x1xf32>
      %cst_19 = arith.constant 2.560000e+02 : f32
      %28 = vector.broadcast %cst_19 : f32 to vector<16x1xf32>
      %29 = arith.divf %27, %28 : vector<16x1xf32>
      %30 = vector.broadcast %22 : vector<16x1xf32> to vector<16x256xf32>
      %31 = arith.subf %18, %30 : vector<16x256xf32>
      %cst_20 = arith.constant 9.99999996E-13 : f32
      %32 = vector.broadcast %cst_20 : f32 to vector<16x1xf32>
      %33 = arith.addf %29, %32 : vector<16x1xf32>
      %34 = math.rsqrt %33 : vector<16x1xf32>
      %35 = vector.broadcast %34 : vector<16x1xf32> to vector<16x256xf32>
      %36 = arith.mulf %31, %35 : vector<16x256xf32>
      %c0_21 = arith.constant 0 : index
      %c0_22 = arith.constant 0 : index
      %37 = vector.load %arg6[%c0_21, %c0_22] : memref<1x256xf32, #tpu.memory_space<vmem>>, vector<1x256xf32>
      %38 = vector.broadcast %37 : vector<1x256xf32> to vector<16x256xf32>
      %39 = arith.mulf %36, %38 : vector<16x256xf32>
      %c0_23 = arith.constant 0 : index
      %c0_24 = arith.constant 0 : index
      %40 = vector.load %arg7[%c0_23, %c0_24] : memref<1x256xf32, #tpu.memory_space<vmem>>, vector<1x256xf32>
      %41 = vector.broadcast %40 : vector<1x256xf32> to vector<16x256xf32>
      %42 = arith.addf %39, %41 : vector<16x256xf32>
      %43 = arith.truncf %42 : vector<16x256xf32> to vector<16x256xbf16>
      %c0_25 = arith.constant 0 : index
      %c0_26 = arith.constant 0 : index
      %44 = vector.load %arg8[%c0_25, %c0_26] : memref<16x256xbf16, #tpu.memory_space<vmem>>, vector<16x256xbf16>
      tpu.vector_store %arg8[%c0_25, %c0_26], %43 {strides = array<i32>} : memref<16x256xbf16, #tpu.memory_space<vmem>>, vector<16x256xbf16>,
    } else {
    }
    return
  }
  func.func @transform_0(%arg0: i32, %arg1: i32) -> (i32, i32) {
    %c0_i32 = arith.constant 0 : i32
    return %arg0, %arg1 : i32, i32
  }
  func.func @transform_1(%arg0: i32, %arg1: i32) -> (i32, i32) {
    %c0_i32 = arith.constant 0 : i32
    %c0_i32_0 = arith.constant 0 : i32
    return %arg1, %c0_i32 : i32, i32
  }
  func.func @transform_2(%arg0: i32, %arg1: i32) -> (i32, i32) {
    %c0_i32 = arith.constant 0 : i32
    %c0_i32_0 = arith.constant 0 : i32
    %c0_i32_1 = arith.constant 0 : i32
    return %c0_i32, %c0_i32_0 : i32, i32
  }
  func.func @transform_3(%arg0: i32, %arg1: i32) -> (i32, i32) {
    %c0_i32 = arith.constant 0 : i32
    %c0_i32_0 = arith.constant 0 : i32
    return %arg0, %c0_i32 : i32, i32
  }
  func.func @transform_4(%arg0: i32, %arg1: i32) -> (i32, i32) {
    %c0_i32 = arith.constant 0 : i32
    %c0_i32_0 = arith.constant 0 : i32
    %c0_i32_1 = arith.constant 0 : i32
    return %c0_i32, %c0_i32_0 : i32, i32
  }
  func.func @transform_5(%arg0: i32, %arg1: i32) -> (i32, i32) {
    %c0_i32 = arith.constant 0 : i32
    %c0_i32_0 = arith.constant 0 : i32
    %c0_i32_1 = arith.constant 0 : i32
    return %c0_i32, %c0_i32_0 : i32, i32
  }
  func.func @transform_6(%arg0: i32, %arg1: i32) -> (i32, i32) {
    %c0_i32 = arith.constant 0 : i32
    %c0_i32_0 = arith.constant 0 : i32
    return %arg0, %c0_i32 : i32, i32
  }
}

module attributes {stable_mosaic.version = 11 : i64} {
  func.func @_flash_attn_kernel(%arg0: i32, %arg1: i32, %arg2: i32, %arg3: i32, %arg4: memref<8x128xbf16, #tpu.memory_space<vmem>>, %arg5: memref<8x128xbf16, #tpu.memory_space<vmem>>, %arg6: memref<8x128xbf16, #tpu.memory_space<vmem>>, %arg7: memref<1x1x8xf32, #tpu.memory_space<vmem>>, %arg8: memref<8x128xbf16, #tpu.memory_space<vmem>>, %arg9: memref<8x1xf32, #tpu.memory_space<vmem>>, %arg10: memref<8x1xf32, #tpu.memory_space<vmem>>, %arg11: memref<8x128xf32, #tpu.memory_space<vmem>>) attributes {dimension_semantics = [#tpu.dimension_semantics<parallel>, #tpu.dimension_semantics<parallel>, #tpu.dimension_semantics<parallel>, #tpu.dimension_semantics<arbitrary>], iteration_bounds = array<i64: 2, 2, 1, 1>, scalar_prefetch = 0 : i64, scratch_operands = 3 : i64, tpu.core_type = #tpu.core_type<tc>, window_params = [{transform_indices = @transform_0, window_bounds = array<i64: 8, 128>}, {transform_indices = @transform_1, window_bounds = array<i64: 8, 128>}, {transform_indices = @transform_2, window_bounds = array<i64: 8, 128>}, {transform_indices = @transform_3, window_bounds = array<i64: 1, 1, 8>}, {transform_indices = @transform_4, window_bounds = array<i64: 8, 128>}]} {
    %c0_i32 = arith.constant 0 : i32
    %0 = arith.cmpi eq, %arg3, %c0_i32 : i32
    %1 = arith.extui %0 : i1 to i32
    %c0_i32_0 = arith.constant 0 : i32
    %2 = arith.cmpi ne, %1, %c0_i32_0 : i32
    scf.if %2 {
      %cst_26 = arith.constant 0xFF800000 : f32
      %37 = vector.broadcast %cst_26 : f32 to vector<8x1xf32>
      %c0_27 = arith.constant 0 : index
      %c0_28 = arith.constant 0 : index
      %38 = vector.load %arg9[%c0_27, %c0_28] : memref<8x1xf32, #tpu.memory_space<vmem>>, vector<8x1xf32>
      tpu.vector_store %arg9[%c0_27, %c0_28], %37 {strides = array<i32>} : memref<8x1xf32, #tpu.memory_space<vmem>>, vector<8x1xf32>,
      %cst_29 = arith.constant 0.000000e+00 : f32
      %39 = vector.broadcast %cst_29 : f32 to vector<8x1xf32>
      %c0_30 = arith.constant 0 : index
      %c0_31 = arith.constant 0 : index
      %40 = vector.load %arg10[%c0_30, %c0_31] : memref<8x1xf32, #tpu.memory_space<vmem>>, vector<8x1xf32>
      tpu.vector_store %arg10[%c0_30, %c0_31], %39 {strides = array<i32>} : memref<8x1xf32, #tpu.memory_space<vmem>>, vector<8x1xf32>,
      %cst_32 = arith.constant 0.000000e+00 : f32
      %41 = vector.broadcast %cst_32 : f32 to vector<8x128xf32>
      %c0_33 = arith.constant 0 : index
      %c0_34 = arith.constant 0 : index
      %42 = vector.load %arg11[%c0_33, %c0_34] : memref<8x128xf32, #tpu.memory_space<vmem>>, vector<8x128xf32>
      tpu.vector_store %arg11[%c0_33, %c0_34], %41 {strides = array<i32>} : memref<8x128xf32, #tpu.memory_space<vmem>>, vector<8x128xf32>,
    } else {
    }
    %c0 = arith.constant 0 : index
    %c0_1 = arith.constant 0 : index
    %3 = vector.load %arg4[%c0, %c0_1] : memref<8x128xbf16, #tpu.memory_space<vmem>>, vector<8x128xbf16>
    %c0_2 = arith.constant 0 : index
    %c0_3 = arith.constant 0 : index
    %4 = vector.load %arg5[%c0_2, %c0_3] : memref<8x128xbf16, #tpu.memory_space<vmem>>, vector<8x128xbf16>
    %c0_4 = arith.constant 0 : index
    %c0_5 = arith.constant 0 : index
    %5 = vector.load %arg6[%c0_4, %c0_5] : memref<8x128xbf16, #tpu.memory_space<vmem>>, vector<8x128xbf16>
    %cst = arith.constant dense<0.000000e+00> : vector<8x8xf32>
    %6 = tpu.matmul %3, %4, %cst {dimension_numbers = #tpu.dot_dimension_numbers<[1], [1], [0], [0], [0, 0, 1, 0], [], []>} : vector<8x128xbf16>, vector<8x128xbf16>, vector<8x8xf32> -> vector<8x8xf32>
    %c0_6 = arith.constant 0 : index
    %c0_7 = arith.constant 0 : index
    %c0_8 = arith.constant 0 : index
    %7 = vector.load %arg7[%c0_6, %c0_7, %c0_8] : memref<1x1x8xf32, #tpu.memory_space<vmem>>, vector<1x1x8xf32>
    %8 = vector.shape_cast %7 : vector<1x1x8xf32> to vector<1x8xf32>
    %9 = vector.broadcast %8 : vector<1x8xf32> to vector<8x8xf32>
    %10 = arith.addf %6, %9 : vector<8x8xf32>
    %c0_9 = arith.constant 0 : index
    %c0_10 = arith.constant 0 : index
    %11 = vector.load %arg9[%c0_9, %c0_10] : memref<8x1xf32, #tpu.memory_space<vmem>>, vector<8x1xf32>
    %cst_11 = arith.constant dense<0xFF800000> : vector<8xf32>
    %12 = vector.multi_reduction <maximumf>, %10, %cst_11 [1] : vector<8x8xf32> to vector<8xf32>
    %13 = vector.shape_cast %12 : vector<8xf32> to vector<8x1xf32>
    %14 = arith.maximumf %11, %13 : vector<8x1xf32>
    %15 = arith.subf %11, %14 : vector<8x1xf32>
    %16 = math.exp %15 : vector<8x1xf32>
    %17 = vector.broadcast %14 : vector<8x1xf32> to vector<8x8xf32>
    %18 = arith.subf %10, %17 : vector<8x8xf32>
    %19 = math.exp %18 : vector<8x8xf32>
    %c0_12 = arith.constant 0 : index
    %c0_13 = arith.constant 0 : index
    %20 = vector.load %arg10[%c0_12, %c0_13] : memref<8x1xf32, #tpu.memory_space<vmem>>, vector<8x1xf32>
    %21 = arith.mulf %16, %20 : vector<8x1xf32>
    %cst_14 = arith.constant dense<0.000000e+00> : vector<8xf32>
    %22 = vector.multi_reduction <add>, %19, %cst_14 [1] : vector<8x8xf32> to vector<8xf32>
    %23 = vector.shape_cast %22 : vector<8xf32> to vector<8x1xf32>
    %24 = arith.addf %21, %23 : vector<8x1xf32>
    %c0_15 = arith.constant 0 : index
    %c0_16 = arith.constant 0 : index
    %25 = vector.load %arg10[%c0_15, %c0_16] : memref<8x1xf32, #tpu.memory_space<vmem>>, vector<8x1xf32>
    tpu.vector_store %arg10[%c0_15, %c0_16], %24 {strides = array<i32>} : memref<8x1xf32, #tpu.memory_space<vmem>>, vector<8x1xf32>,
    %c0_17 = arith.constant 0 : index
    %c0_18 = arith.constant 0 : index
    %26 = vector.load %arg11[%c0_17, %c0_18] : memref<8x128xf32, #tpu.memory_space<vmem>>, vector<8x128xf32>
    %27 = vector.broadcast %16 : vector<8x1xf32> to vector<8x128xf32>
    %28 = arith.mulf %27, %26 : vector<8x128xf32>
    %29 = arith.truncf %19 : vector<8x8xf32> to vector<8x8xbf16>
    %cst_19 = arith.constant dense<0.000000e+00> : vector<8x128xf32>
    %30 = tpu.matmul %29, %5, %cst_19 {dimension_numbers = #tpu.dot_dimension_numbers<[1], [0], [0], [1], [0, 0, 1, 1], [], []>} : vector<8x8xbf16>, vector<8x128xbf16>, vector<8x128xf32> -> vector<8x128xf32>
    %31 = arith.addf %28, %30 : vector<8x128xf32>
    %c0_20 = arith.constant 0 : index
    %c0_21 = arith.constant 0 : index
    %32 = vector.load %arg11[%c0_20, %c0_21] : memref<8x128xf32, #tpu.memory_space<vmem>>, vector<8x128xf32>
    tpu.vector_store %arg11[%c0_20, %c0_21], %31 {strides = array<i32>} : memref<8x128xf32, #tpu.memory_space<vmem>>, vector<8x128xf32>,
    %c0_22 = arith.constant 0 : index
    %c0_23 = arith.constant 0 : index
    %33 = vector.load %arg9[%c0_22, %c0_23] : memref<8x1xf32, #tpu.memory_space<vmem>>, vector<8x1xf32>
    tpu.vector_store %arg9[%c0_22, %c0_23], %14 {strides = array<i32>} : memref<8x1xf32, #tpu.memory_space<vmem>>, vector<8x1xf32>,
    %c0_i32_24 = arith.constant 0 : i32
    %34 = arith.cmpi eq, %arg3, %c0_i32_24 : i32
    %35 = arith.extui %34 : i1 to i32
    %c0_i32_25 = arith.constant 0 : i32
    %36 = arith.cmpi ne, %35, %c0_i32_25 : i32
    scf.if %36 {
      %c0_26 = arith.constant 0 : index
      %c0_27 = arith.constant 0 : index
      %37 = vector.load %arg10[%c0_26, %c0_27] : memref<8x1xf32, #tpu.memory_space<vmem>>, vector<8x1xf32>
      %38 = tpu.reciprocal %37 {approx = true} : vector<8x1xf32> -> vector<8x1xf32>
      %c0_28 = arith.constant 0 : index
      %c0_29 = arith.constant 0 : index
      %39 = vector.load %arg11[%c0_28, %c0_29] : memref<8x128xf32, #tpu.memory_space<vmem>>, vector<8x128xf32>
      %40 = vector.broadcast %38 : vector<8x1xf32> to vector<8x128xf32>
      %41 = arith.mulf %39, %40 : vector<8x128xf32>
      %42 = arith.truncf %41 : vector<8x128xf32> to vector<8x128xbf16>
      %c0_30 = arith.constant 0 : index
      %c0_31 = arith.constant 0 : index
      %43 = vector.load %arg8[%c0_30, %c0_31] : memref<8x128xbf16, #tpu.memory_space<vmem>>, vector<8x128xbf16>
      tpu.vector_store %arg8[%c0_30, %c0_31], %42 {strides = array<i32>} : memref<8x128xbf16, #tpu.memory_space<vmem>>, vector<8x128xbf16>,
    } else {
    }
    return
  }
  func.func @transform_0(%arg0: i32, %arg1: i32, %arg2: i32, %arg3: i32) -> (i32, i32) {
    %c1_i32 = arith.constant 1 : i32
    %0 = arith.muli %arg0, %c1_i32 : i32
    %1 = arith.addi %0, %arg2 : i32
    %c0_i32 = arith.constant 0 : i32
    return %1, %arg1 : i32, i32
  }
  func.func @transform_1(%arg0: i32, %arg1: i32, %arg2: i32, %arg3: i32) -> (i32, i32) {
    %c1_i32 = arith.constant 1 : i32
    %0 = arith.muli %arg0, %c1_i32 : i32
    %1 = arith.addi %0, %arg3 : i32
    %c2_i32 = arith.constant 2 : i32
    %2 = arith.addi %c2_i32, %arg1 : i32
    %c0_i32 = arith.constant 0 : i32
    return %1, %2 : i32, i32
  }
  func.func @transform_2(%arg0: i32, %arg1: i32, %arg2: i32, %arg3: i32) -> (i32, i32) {
    %c1_i32 = arith.constant 1 : i32
    %0 = arith.muli %arg0, %c1_i32 : i32
    %1 = arith.addi %0, %arg3 : i32
    %c4_i32 = arith.constant 4 : i32
    %2 = arith.addi %c4_i32, %arg1 : i32
    %c0_i32 = arith.constant 0 : i32
    return %1, %2 : i32, i32
  }
  func.func @transform_3(%arg0: i32, %arg1: i32, %arg2: i32, %arg3: i32) -> (i32, i32, i32) {
    %c0_i32 = arith.constant 0 : i32
    %c0_i32_0 = arith.constant 0 : i32
    return %arg0, %c0_i32, %arg3 : i32, i32, i32
  }
  func.func @transform_4(%arg0: i32, %arg1: i32, %arg2: i32, %arg3: i32) -> (i32, i32) {
    %c1_i32 = arith.constant 1 : i32
    %0 = arith.muli %arg0, %c1_i32 : i32
    %1 = arith.addi %0, %arg2 : i32
    %c0_i32 = arith.constant 0 : i32
    return %1, %arg1 : i32, i32
  }
}

module attributes {stable_mosaic.version = 11 : i64} {
  func.func @_ln_kernel(%arg0: i32, %arg1: memref<16x256xf32, #tpu.memory_space<vmem>>, %arg2: memref<1x256xf32, #tpu.memory_space<vmem>>, %arg3: memref<1x256xf32, #tpu.memory_space<vmem>>, %arg4: memref<16x256xbf16, #tpu.memory_space<vmem>>) attributes {dimension_semantics = [#tpu.dimension_semantics<parallel>], iteration_bounds = array<i64: 1>, scalar_prefetch = 0 : i64, scratch_operands = 0 : i64, tpu.core_type = #tpu.core_type<tc>, window_params = [{transform_indices = @transform_0, window_bounds = array<i64: 16, 256>}, {pipeline_mode = #tpu.pipeline_mode<synchronous>, transform_indices = @transform_1, window_bounds = array<i64: 1, 256>}, {pipeline_mode = #tpu.pipeline_mode<synchronous>, transform_indices = @transform_2, window_bounds = array<i64: 1, 256>}, {transform_indices = @transform_3, window_bounds = array<i64: 16, 256>}]} {
    %c0 = arith.constant 0 : index
    %c0_0 = arith.constant 0 : index
    %0 = vector.load %arg1[%c0, %c0_0] : memref<16x256xf32, #tpu.memory_space<vmem>>, vector<16x256xf32>
    %cst = arith.constant dense<0.000000e+00> : vector<16xf32>
    %1 = vector.multi_reduction <add>, %0, %cst [1] : vector<16x256xf32> to vector<16xf32>
    %2 = vector.shape_cast %1 : vector<16xf32> to vector<16x1xf32>
    %cst_1 = arith.constant 2.560000e+02 : f32
    %3 = vector.broadcast %cst_1 : f32 to vector<16x1xf32>
    %4 = arith.divf %2, %3 : vector<16x1xf32>
    %5 = vector.broadcast %4 : vector<16x1xf32> to vector<16x256xf32>
    %6 = arith.subf %0, %5 : vector<16x256xf32>
    %7 = arith.mulf %6, %6 : vector<16x256xf32>
    %cst_2 = arith.constant dense<0.000000e+00> : vector<16xf32>
    %8 = vector.multi_reduction <add>, %7, %cst_2 [1] : vector<16x256xf32> to vector<16xf32>
    %9 = vector.shape_cast %8 : vector<16xf32> to vector<16x1xf32>
    %cst_3 = arith.constant 2.560000e+02 : f32
    %10 = vector.broadcast %cst_3 : f32 to vector<16x1xf32>
    %11 = arith.divf %9, %10 : vector<16x1xf32>
    %12 = vector.broadcast %4 : vector<16x1xf32> to vector<16x256xf32>
    %13 = arith.subf %0, %12 : vector<16x256xf32>
    %cst_4 = arith.constant 9.99999996E-13 : f32
    %14 = vector.broadcast %cst_4 : f32 to vector<16x1xf32>
    %15 = arith.addf %11, %14 : vector<16x1xf32>
    %16 = math.rsqrt %15 : vector<16x1xf32>
    %17 = vector.broadcast %16 : vector<16x1xf32> to vector<16x256xf32>
    %18 = arith.mulf %13, %17 : vector<16x256xf32>
    %c0_5 = arith.constant 0 : index
    %c0_6 = arith.constant 0 : index
    %19 = vector.load %arg2[%c0_5, %c0_6] : memref<1x256xf32, #tpu.memory_space<vmem>>, vector<1x256xf32>
    %20 = vector.broadcast %19 : vector<1x256xf32> to vector<16x256xf32>
    %21 = arith.mulf %18, %20 : vector<16x256xf32>
    %c0_7 = arith.constant 0 : index
    %c0_8 = arith.constant 0 : index
    %22 = vector.load %arg3[%c0_7, %c0_8] : memref<1x256xf32, #tpu.memory_space<vmem>>, vector<1x256xf32>
    %23 = vector.broadcast %22 : vector<1x256xf32> to vector<16x256xf32>
    %24 = arith.addf %21, %23 : vector<16x256xf32>
    %25 = arith.truncf %24 : vector<16x256xf32> to vector<16x256xbf16>
    %c0_9 = arith.constant 0 : index
    %c0_10 = arith.constant 0 : index
    %26 = vector.load %arg4[%c0_9, %c0_10] : memref<16x256xbf16, #tpu.memory_space<vmem>>, vector<16x256xbf16>
    tpu.vector_store %arg4[%c0_9, %c0_10], %25 {strides = array<i32>} : memref<16x256xbf16, #tpu.memory_space<vmem>>, vector<16x256xbf16>,
    return
  }
  func.func @transform_0(%arg0: i32) -> (i32, i32) {
    %c0_i32 = arith.constant 0 : i32
    %c0_i32_0 = arith.constant 0 : i32
    return %arg0, %c0_i32 : i32, i32
  }
  func.func @transform_1(%arg0: i32) -> (i32, i32) {
    %c0_i32 = arith.constant 0 : i32
    %c0_i32_0 = arith.constant 0 : i32
    %c0_i32_1 = arith.constant 0 : i32
    return %c0_i32, %c0_i32_0 : i32, i32
  }
  func.func @transform_2(%arg0: i32) -> (i32, i32) {
    %c0_i32 = arith.constant 0 : i32
    %c0_i32_0 = arith.constant 0 : i32
    %c0_i32_1 = arith.constant 0 : i32
    return %c0_i32, %c0_i32_0 : i32, i32
  }
  func.func @transform_3(%arg0: i32) -> (i32, i32) {
    %c0_i32 = arith.constant 0 : i32
    %c0_i32_0 = arith.constant 0 : i32
    return %arg0, %c0_i32 : i32, i32
  }
}

module attributes {stable_mosaic.version = 11 : i64} {
  func.func @_dense_kernel(%arg0: i32, %arg1: i32, %arg2: i32, %arg3: memref<16x256xbf16, #tpu.memory_space<vmem>>, %arg4: memref<256x512xbf16, #tpu.memory_space<vmem>>, %arg5: memref<1x512xf32, #tpu.memory_space<vmem>>, %arg6: memref<16x512xbf16, #tpu.memory_space<vmem>>, %arg7: memref<16x512xf32, #tpu.memory_space<vmem>>) attributes {dimension_semantics = [#tpu.dimension_semantics<parallel>, #tpu.dimension_semantics<parallel>, #tpu.dimension_semantics<arbitrary>], iteration_bounds = array<i64: 1, 1, 1>, scalar_prefetch = 0 : i64, scratch_operands = 1 : i64, tpu.core_type = #tpu.core_type<tc>, window_params = [{transform_indices = @transform_0, window_bounds = array<i64: 16, 256>}, {transform_indices = @transform_1, window_bounds = array<i64: 256, 512>}, {transform_indices = @transform_2, window_bounds = array<i64: 1, 512>}, {transform_indices = @transform_3, window_bounds = array<i64: 16, 512>}]} {
    %c0_i32 = arith.constant 0 : i32
    %0 = arith.cmpi eq, %arg2, %c0_i32 : i32
    %1 = arith.extui %0 : i1 to i32
    %c0_i32_0 = arith.constant 0 : i32
    %2 = arith.cmpi ne, %1, %c0_i32_0 : i32
    scf.if %2 {
      %cst_10 = arith.constant 0.000000e+00 : f32
      %12 = vector.broadcast %cst_10 : f32 to vector<16x512xf32>
      %c0_11 = arith.constant 0 : index
      %c0_12 = arith.constant 0 : index
      %13 = vector.load %arg7[%c0_11, %c0_12] : memref<16x512xf32, #tpu.memory_space<vmem>>, vector<16x512xf32>
      tpu.vector_store %arg7[%c0_11, %c0_12], %12 {strides = array<i32>} : memref<16x512xf32, #tpu.memory_space<vmem>>, vector<16x512xf32>,
    } else {
    }
    %c0 = arith.constant 0 : index
    %c0_1 = arith.constant 0 : index
    %3 = vector.load %arg7[%c0, %c0_1] : memref<16x512xf32, #tpu.memory_space<vmem>>, vector<16x512xf32>
    %c0_2 = arith.constant 0 : index
    %c0_3 = arith.constant 0 : index
    %4 = vector.load %arg3[%c0_2, %c0_3] : memref<16x256xbf16, #tpu.memory_space<vmem>>, vector<16x256xbf16>
    %c0_4 = arith.constant 0 : index
    %c0_5 = arith.constant 0 : index
    %5 = vector.load %arg4[%c0_4, %c0_5] : memref<256x512xbf16, #tpu.memory_space<vmem>>, vector<256x512xbf16>
    %cst = arith.constant dense<0.000000e+00> : vector<16x512xf32>
    %6 = tpu.matmul %4, %5, %cst {dimension_numbers = #tpu.dot_dimension_numbers<[1], [0], [0], [1], [0, 0, 1, 1], [], []>} : vector<16x256xbf16>, vector<256x512xbf16>, vector<16x512xf32> -> vector<16x512xf32>
    %7 = arith.addf %3, %6 : vector<16x512xf32>
    %c0_6 = arith.constant 0 : index
    %c0_7 = arith.constant 0 : index
    %8 = vector.load %arg7[%c0_6, %c0_7] : memref<16x512xf32, #tpu.memory_space<vmem>>, vector<16x512xf32>
    tpu.vector_store %arg7[%c0_6, %c0_7], %7 {strides = array<i32>} : memref<16x512xf32, #tpu.memory_space<vmem>>, vector<16x512xf32>,
    %c0_i32_8 = arith.constant 0 : i32
    %9 = arith.cmpi eq, %arg2, %c0_i32_8 : i32
    %10 = arith.extui %9 : i1 to i32
    %c0_i32_9 = arith.constant 0 : i32
    %11 = arith.cmpi ne, %10, %c0_i32_9 : i32
    scf.if %11 {
      %c0_10 = arith.constant 0 : index
      %c0_11 = arith.constant 0 : index
      %12 = vector.load %arg7[%c0_10, %c0_11] : memref<16x512xf32, #tpu.memory_space<vmem>>, vector<16x512xf32>
      %c0_12 = arith.constant 0 : index
      %c0_13 = arith.constant 0 : index
      %13 = vector.load %arg5[%c0_12, %c0_13] : memref<1x512xf32, #tpu.memory_space<vmem>>, vector<1x512xf32>
      %14 = vector.broadcast %13 : vector<1x512xf32> to vector<16x512xf32>
      %15 = arith.addf %12, %14 : vector<16x512xf32>
      %cst_14 = arith.constant 5.000000e-01 : f32
      %16 = vector.broadcast %cst_14 : f32 to vector<16x512xf32>
      %17 = arith.mulf %16, %15 : vector<16x512xf32>
      %cst_15 = arith.constant 4.471500e-02 : f32
      %18 = vector.broadcast %cst_15 : f32 to vector<16x512xf32>
      %19 = arith.mulf %18, %15 : vector<16x512xf32>
      %20 = arith.mulf %19, %15 : vector<16x512xf32>
      %21 = arith.mulf %20, %15 : vector<16x512xf32>
      %22 = arith.addf %15, %21 : vector<16x512xf32>
      %cst_16 = arith.constant 0.797884583 : f32
      %23 = vector.broadcast %cst_16 : f32 to vector<16x512xf32>
      %24 = arith.mulf %23, %22 : vector<16x512xf32>
      %25 = math.tanh %24 : vector<16x512xf32>
      %cst_17 = arith.constant 1.000000e+00 : f32
      %26 = vector.broadcast %cst_17 : f32 to vector<16x512xf32>
      %27 = arith.addf %26, %25 : vector<16x512xf32>
      %28 = arith.mulf %17, %27 : vector<16x512xf32>
      %29 = arith.truncf %28 : vector<16x512xf32> to vector<16x512xbf16>
      %c0_18 = arith.constant 0 : index
      %c0_19 = arith.constant 0 : index
      %30 = vector.load %arg6[%c0_18, %c0_19] : memref<16x512xbf16, #tpu.memory_space<vmem>>, vector<16x512xbf16>
      tpu.vector_store %arg6[%c0_18, %c0_19], %29 {strides = array<i32>} : memref<16x512xbf16, #tpu.memory_space<vmem>>, vector<16x512xbf16>,
    } else {
    }
    return
  }
  func.func @transform_0(%arg0: i32, %arg1: i32, %arg2: i32) -> (i32, i32) {
    %c0_i32 = arith.constant 0 : i32
    return %arg0, %arg2 : i32, i32
  }
  func.func @transform_1(%arg0: i32, %arg1: i32, %arg2: i32) -> (i32, i32) {
    %c0_i32 = arith.constant 0 : i32
    return %arg2, %arg1 : i32, i32
  }
  func.func @transform_2(%arg0: i32, %arg1: i32, %arg2: i32) -> (i32, i32) {
    %c0_i32 = arith.constant 0 : i32
    %c0_i32_0 = arith.constant 0 : i32
    return %c0_i32, %arg1 : i32, i32
  }
  func.func @transform_3(%arg0: i32, %arg1: i32, %arg2: i32) -> (i32, i32) {
    %c0_i32 = arith.constant 0 : i32
    return %arg0, %arg1 : i32, i32
  }
}

module attributes {stable_mosaic.version = 11 : i64} {
  func.func @_dense_add_ln_kernel(%arg0: i32, %arg1: i32, %arg2: memref<16x512xbf16, #tpu.memory_space<vmem>>, %arg3: memref<512x256xbf16, #tpu.memory_space<vmem>>, %arg4: memref<1x256xf32, #tpu.memory_space<vmem>>, %arg5: memref<16x256xbf16, #tpu.memory_space<vmem>>, %arg6: memref<1x256xf32, #tpu.memory_space<vmem>>, %arg7: memref<1x256xf32, #tpu.memory_space<vmem>>, %arg8: memref<16x256xbf16, #tpu.memory_space<vmem>>, %arg9: memref<16x256xf32, #tpu.memory_space<vmem>>) attributes {dimension_semantics = [#tpu.dimension_semantics<parallel>, #tpu.dimension_semantics<arbitrary>], iteration_bounds = array<i64: 1, 1>, scalar_prefetch = 0 : i64, scratch_operands = 1 : i64, tpu.core_type = #tpu.core_type<tc>, window_params = [{transform_indices = @transform_0, window_bounds = array<i64: 16, 512>}, {transform_indices = @transform_1, window_bounds = array<i64: 512, 256>}, {pipeline_mode = #tpu.pipeline_mode<synchronous>, transform_indices = @transform_2, window_bounds = array<i64: 1, 256>}, {transform_indices = @transform_3, window_bounds = array<i64: 16, 256>}, {pipeline_mode = #tpu.pipeline_mode<synchronous>, transform_indices = @transform_4, window_bounds = array<i64: 1, 256>}, {pipeline_mode = #tpu.pipeline_mode<synchronous>, transform_indices = @transform_5, window_bounds = array<i64: 1, 256>}, {transform_indices = @transform_6, window_bounds = array<i64: 16, 256>}]} {
    %c0_i32 = arith.constant 0 : i32
    %0 = arith.cmpi eq, %arg1, %c0_i32 : i32
    %1 = arith.extui %0 : i1 to i32
    %c0_i32_0 = arith.constant 0 : i32
    %2 = arith.cmpi ne, %1, %c0_i32_0 : i32
    scf.if %2 {
      %cst_10 = arith.constant 0.000000e+00 : f32
      %12 = vector.broadcast %cst_10 : f32 to vector<16x256xf32>
      %c0_11 = arith.constant 0 : index
      %c0_12 = arith.constant 0 : index
      %13 = vector.load %arg9[%c0_11, %c0_12] : memref<16x256xf32, #tpu.memory_space<vmem>>, vector<16x256xf32>
      tpu.vector_store %arg9[%c0_11, %c0_12], %12 {strides = array<i32>} : memref<16x256xf32, #tpu.memory_space<vmem>>, vector<16x256xf32>,
    } else {
    }
    %c0 = arith.constant 0 : index
    %c0_1 = arith.constant 0 : index
    %3 = vector.load %arg9[%c0, %c0_1] : memref<16x256xf32, #tpu.memory_space<vmem>>, vector<16x256xf32>
    %c0_2 = arith.constant 0 : index
    %c0_3 = arith.constant 0 : index
    %4 = vector.load %arg2[%c0_2, %c0_3] : memref<16x512xbf16, #tpu.memory_space<vmem>>, vector<16x512xbf16>
    %c0_4 = arith.constant 0 : index
    %c0_5 = arith.constant 0 : index
    %5 = vector.load %arg3[%c0_4, %c0_5] : memref<512x256xbf16, #tpu.memory_space<vmem>>, vector<512x256xbf16>
    %cst = arith.constant dense<0.000000e+00> : vector<16x256xf32>
    %6 = tpu.matmul %4, %5, %cst {dimension_numbers = #tpu.dot_dimension_numbers<[1], [0], [0], [1], [0, 0, 1, 1], [], []>} : vector<16x512xbf16>, vector<512x256xbf16>, vector<16x256xf32> -> vector<16x256xf32>
    %7 = arith.addf %3, %6 : vector<16x256xf32>
    %c0_6 = arith.constant 0 : index
    %c0_7 = arith.constant 0 : index
    %8 = vector.load %arg9[%c0_6, %c0_7] : memref<16x256xf32, #tpu.memory_space<vmem>>, vector<16x256xf32>
    tpu.vector_store %arg9[%c0_6, %c0_7], %7 {strides = array<i32>} : memref<16x256xf32, #tpu.memory_space<vmem>>, vector<16x256xf32>,
    %c0_i32_8 = arith.constant 0 : i32
    %9 = arith.cmpi eq, %arg1, %c0_i32_8 : i32
    %10 = arith.extui %9 : i1 to i32
    %c0_i32_9 = arith.constant 0 : i32
    %11 = arith.cmpi ne, %10, %c0_i32_9 : i32
    scf.if %11 {
      %c0_10 = arith.constant 0 : index
      %c0_11 = arith.constant 0 : index
      %12 = vector.load %arg9[%c0_10, %c0_11] : memref<16x256xf32, #tpu.memory_space<vmem>>, vector<16x256xf32>
      %c0_12 = arith.constant 0 : index
      %c0_13 = arith.constant 0 : index
      %13 = vector.load %arg4[%c0_12, %c0_13] : memref<1x256xf32, #tpu.memory_space<vmem>>, vector<1x256xf32>
      %14 = vector.broadcast %13 : vector<1x256xf32> to vector<16x256xf32>
      %15 = arith.addf %12, %14 : vector<16x256xf32>
      %c0_14 = arith.constant 0 : index
      %c0_15 = arith.constant 0 : index
      %16 = vector.load %arg5[%c0_14, %c0_15] : memref<16x256xbf16, #tpu.memory_space<vmem>>, vector<16x256xbf16>
      %17 = arith.extf %16 : vector<16x256xbf16> to vector<16x256xf32>
      %18 = arith.addf %15, %17 : vector<16x256xf32>
      %cst_16 = arith.constant dense<0.000000e+00> : vector<16xf32>
      %19 = vector.multi_reduction <add>, %18, %cst_16 [1] : vector<16x256xf32> to vector<16xf32>
      %20 = vector.shape_cast %19 : vector<16xf32> to vector<16x1xf32>
      %cst_17 = arith.constant 2.560000e+02 : f32
      %21 = vector.broadcast %cst_17 : f32 to vector<16x1xf32>
      %22 = arith.divf %20, %21 : vector<16x1xf32>
      %23 = vector.broadcast %22 : vector<16x1xf32> to vector<16x256xf32>
      %24 = arith.subf %18, %23 : vector<16x256xf32>
      %25 = arith.mulf %24, %24 : vector<16x256xf32>
      %cst_18 = arith.constant dense<0.000000e+00> : vector<16xf32>
      %26 = vector.multi_reduction <add>, %25, %cst_18 [1] : vector<16x256xf32> to vector<16xf32>
      %27 = vector.shape_cast %26 : vector<16xf32> to vector<16x1xf32>
      %cst_19 = arith.constant 2.560000e+02 : f32
      %28 = vector.broadcast %cst_19 : f32 to vector<16x1xf32>
      %29 = arith.divf %27, %28 : vector<16x1xf32>
      %30 = vector.broadcast %22 : vector<16x1xf32> to vector<16x256xf32>
      %31 = arith.subf %18, %30 : vector<16x256xf32>
      %cst_20 = arith.constant 9.99999996E-13 : f32
      %32 = vector.broadcast %cst_20 : f32 to vector<16x1xf32>
      %33 = arith.addf %29, %32 : vector<16x1xf32>
      %34 = math.rsqrt %33 : vector<16x1xf32>
      %35 = vector.broadcast %34 : vector<16x1xf32> to vector<16x256xf32>
      %36 = arith.mulf %31, %35 : vector<16x256xf32>
      %c0_21 = arith.constant 0 : index
      %c0_22 = arith.constant 0 : index
      %37 = vector.load %arg6[%c0_21, %c0_22] : memref<1x256xf32, #tpu.memory_space<vmem>>, vector<1x256xf32>
      %38 = vector.broadcast %37 : vector<1x256xf32> to vector<16x256xf32>
      %39 = arith.mulf %36, %38 : vector<16x256xf32>
      %c0_23 = arith.constant 0 : index
      %c0_24 = arith.constant 0 : index
      %40 = vector.load %arg7[%c0_23, %c0_24] : memref<1x256xf32, #tpu.memory_space<vmem>>, vector<1x256xf32>
      %41 = vector.broadcast %40 : vector<1x256xf32> to vector<16x256xf32>
      %42 = arith.addf %39, %41 : vector<16x256xf32>
      %43 = arith.truncf %42 : vector<16x256xf32> to vector<16x256xbf16>
      %c0_25 = arith.constant 0 : index
      %c0_26 = arith.constant 0 : index
      %44 = vector.load %arg8[%c0_25, %c0_26] : memref<16x256xbf16, #tpu.memory_space<vmem>>, vector<16x256xbf16>
      tpu.vector_store %arg8[%c0_25, %c0_26], %43 {strides = array<i32>} : memref<16x256xbf16, #tpu.memory_space<vmem>>, vector<16x256xbf16>,
    } else {
    }
    return
  }
  func.func @transform_0(%arg0: i32, %arg1: i32) -> (i32, i32) {
    %c0_i32 = arith.constant 0 : i32
    return %arg0, %arg1 : i32, i32
  }
  func.func @transform_1(%arg0: i32, %arg1: i32) -> (i32, i32) {
    %c0_i32 = arith.constant 0 : i32
    %c0_i32_0 = arith.constant 0 : i32
    return %arg1, %c0_i32 : i32, i32
  }
  func.func @transform_2(%arg0: i32, %arg1: i32) -> (i32, i32) {
    %c0_i32 = arith.constant 0 : i32
    %c0_i32_0 = arith.constant 0 : i32
    %c0_i32_1 = arith.constant 0 : i32
    return %c0_i32, %c0_i32_0 : i32, i32
  }
  func.func @transform_3(%arg0: i32, %arg1: i32) -> (i32, i32) {
    %c0_i32 = arith.constant 0 : i32
    %c0_i32_0 = arith.constant 0 : i32
    return %arg0, %c0_i32 : i32, i32
  }
  func.func @transform_4(%arg0: i32, %arg1: i32) -> (i32, i32) {
    %c0_i32 = arith.constant 0 : i32
    %c0_i32_0 = arith.constant 0 : i32
    %c0_i32_1 = arith.constant 0 : i32
    return %c0_i32, %c0_i32_0 : i32, i32
  }
  func.func @transform_5(%arg0: i32, %arg1: i32) -> (i32, i32) {
    %c0_i32 = arith.constant 0 : i32
    %c0_i32_0 = arith.constant 0 : i32
    %c0_i32_1 = arith.constant 0 : i32
    return %c0_i32, %c0_i32_0 : i32, i32
  }
  func.func @transform_6(%arg0: i32, %arg1: i32) -> (i32, i32) {
    %c0_i32 = arith.constant 0 : i32
    %c0_i32_0 = arith.constant 0 : i32
    return %arg0, %c0_i32 : i32, i32
  }
}

module attributes {stable_mosaic.version = 11 : i64} {
  func.func @_dense_kernel(%arg0: i32, %arg1: i32, %arg2: i32, %arg3: memref<16x256xbf16, #tpu.memory_space<vmem>>, %arg4: memref<256x384xbf16, #tpu.memory_space<vmem>>, %arg5: memref<1x384xf32, #tpu.memory_space<vmem>>, %arg6: memref<16x384xbf16, #tpu.memory_space<vmem>>, %arg7: memref<16x384xf32, #tpu.memory_space<vmem>>) attributes {dimension_semantics = [#tpu.dimension_semantics<parallel>, #tpu.dimension_semantics<parallel>, #tpu.dimension_semantics<arbitrary>], iteration_bounds = array<i64: 1, 2, 1>, scalar_prefetch = 0 : i64, scratch_operands = 1 : i64, tpu.core_type = #tpu.core_type<tc>, window_params = [{transform_indices = @transform_0, window_bounds = array<i64: 16, 256>}, {transform_indices = @transform_1, window_bounds = array<i64: 256, 384>}, {transform_indices = @transform_2, window_bounds = array<i64: 1, 384>}, {transform_indices = @transform_3, window_bounds = array<i64: 16, 384>}]} {
    %c0_i32 = arith.constant 0 : i32
    %0 = arith.cmpi eq, %arg2, %c0_i32 : i32
    %1 = arith.extui %0 : i1 to i32
    %c0_i32_0 = arith.constant 0 : i32
    %2 = arith.cmpi ne, %1, %c0_i32_0 : i32
    scf.if %2 {
      %cst_10 = arith.constant 0.000000e+00 : f32
      %12 = vector.broadcast %cst_10 : f32 to vector<16x384xf32>
      %c0_11 = arith.constant 0 : index
      %c0_12 = arith.constant 0 : index
      %13 = vector.load %arg7[%c0_11, %c0_12] : memref<16x384xf32, #tpu.memory_space<vmem>>, vector<16x384xf32>
      tpu.vector_store %arg7[%c0_11, %c0_12], %12 {strides = array<i32>} : memref<16x384xf32, #tpu.memory_space<vmem>>, vector<16x384xf32>,
    } else {
    }
    %c0 = arith.constant 0 : index
    %c0_1 = arith.constant 0 : index
    %3 = vector.load %arg7[%c0, %c0_1] : memref<16x384xf32, #tpu.memory_space<vmem>>, vector<16x384xf32>
    %c0_2 = arith.constant 0 : index
    %c0_3 = arith.constant 0 : index
    %4 = vector.load %arg3[%c0_2, %c0_3] : memref<16x256xbf16, #tpu.memory_space<vmem>>, vector<16x256xbf16>
    %c0_4 = arith.constant 0 : index
    %c0_5 = arith.constant 0 : index
    %5 = vector.load %arg4[%c0_4, %c0_5] : memref<256x384xbf16, #tpu.memory_space<vmem>>, vector<256x384xbf16>
    %cst = arith.constant dense<0.000000e+00> : vector<16x384xf32>
    %6 = tpu.matmul %4, %5, %cst {dimension_numbers = #tpu.dot_dimension_numbers<[1], [0], [0], [1], [0, 0, 1, 1], [], []>} : vector<16x256xbf16>, vector<256x384xbf16>, vector<16x384xf32> -> vector<16x384xf32>
    %7 = arith.addf %3, %6 : vector<16x384xf32>
    %c0_6 = arith.constant 0 : index
    %c0_7 = arith.constant 0 : index
    %8 = vector.load %arg7[%c0_6, %c0_7] : memref<16x384xf32, #tpu.memory_space<vmem>>, vector<16x384xf32>
    tpu.vector_store %arg7[%c0_6, %c0_7], %7 {strides = array<i32>} : memref<16x384xf32, #tpu.memory_space<vmem>>, vector<16x384xf32>,
    %c0_i32_8 = arith.constant 0 : i32
    %9 = arith.cmpi eq, %arg2, %c0_i32_8 : i32
    %10 = arith.extui %9 : i1 to i32
    %c0_i32_9 = arith.constant 0 : i32
    %11 = arith.cmpi ne, %10, %c0_i32_9 : i32
    scf.if %11 {
      %c0_10 = arith.constant 0 : index
      %c0_11 = arith.constant 0 : index
      %12 = vector.load %arg7[%c0_10, %c0_11] : memref<16x384xf32, #tpu.memory_space<vmem>>, vector<16x384xf32>
      %c0_12 = arith.constant 0 : index
      %c0_13 = arith.constant 0 : index
      %13 = vector.load %arg5[%c0_12, %c0_13] : memref<1x384xf32, #tpu.memory_space<vmem>>, vector<1x384xf32>
      %14 = vector.broadcast %13 : vector<1x384xf32> to vector<16x384xf32>
      %15 = arith.addf %12, %14 : vector<16x384xf32>
      %16 = arith.truncf %15 : vector<16x384xf32> to vector<16x384xbf16>
      %c0_14 = arith.constant 0 : index
      %c0_15 = arith.constant 0 : index
      %17 = vector.load %arg6[%c0_14, %c0_15] : memref<16x384xbf16, #tpu.memory_space<vmem>>, vector<16x384xbf16>
      tpu.vector_store %arg6[%c0_14, %c0_15], %16 {strides = array<i32>} : memref<16x384xbf16, #tpu.memory_space<vmem>>, vector<16x384xbf16>,
    } else {
    }
    return
  }
  func.func @transform_0(%arg0: i32, %arg1: i32, %arg2: i32) -> (i32, i32) {
    %c0_i32 = arith.constant 0 : i32
    return %arg0, %arg2 : i32, i32
  }
  func.func @transform_1(%arg0: i32, %arg1: i32, %arg2: i32) -> (i32, i32) {
    %c0_i32 = arith.constant 0 : i32
    return %arg2, %arg1 : i32, i32
  }
  func.func @transform_2(%arg0: i32, %arg1: i32, %arg2: i32) -> (i32, i32) {
    %c0_i32 = arith.constant 0 : i32
    %c0_i32_0 = arith.constant 0 : i32
    return %c0_i32, %arg1 : i32, i32
  }
  func.func @transform_3(%arg0: i32, %arg1: i32, %arg2: i32) -> (i32, i32) {
    %c0_i32 = arith.constant 0 : i32
    return %arg0, %arg1 : i32, i32
  }
}

module attributes {stable_mosaic.version = 11 : i64} {
  func.func @_dense_kernel(%arg0: i32, %arg1: i32, %arg2: i32, %arg3: memref<16x256xbf16, #tpu.memory_space<vmem>>, %arg4: memref<256x128xbf16, #tpu.memory_space<vmem>>, %arg5: memref<1x128xf32, #tpu.memory_space<vmem>>, %arg6: memref<16x128xf32, #tpu.memory_space<vmem>>, %arg7: memref<16x128xf32, #tpu.memory_space<vmem>>) attributes {dimension_semantics = [#tpu.dimension_semantics<parallel>, #tpu.dimension_semantics<parallel>, #tpu.dimension_semantics<arbitrary>], iteration_bounds = array<i64: 1, 1, 1>, scalar_prefetch = 0 : i64, scratch_operands = 1 : i64, tpu.core_type = #tpu.core_type<tc>, window_params = [{transform_indices = @transform_0, window_bounds = array<i64: 16, 256>}, {transform_indices = @transform_1, window_bounds = array<i64: 256, 128>}, {transform_indices = @transform_2, window_bounds = array<i64: 1, 128>}, {transform_indices = @transform_3, window_bounds = array<i64: 16, 128>}]} {
    %c0_i32 = arith.constant 0 : i32
    %0 = arith.cmpi eq, %arg2, %c0_i32 : i32
    %1 = arith.extui %0 : i1 to i32
    %c0_i32_0 = arith.constant 0 : i32
    %2 = arith.cmpi ne, %1, %c0_i32_0 : i32
    scf.if %2 {
      %cst_10 = arith.constant 0.000000e+00 : f32
      %12 = vector.broadcast %cst_10 : f32 to vector<16x128xf32>
      %c0_11 = arith.constant 0 : index
      %c0_12 = arith.constant 0 : index
      %13 = vector.load %arg7[%c0_11, %c0_12] : memref<16x128xf32, #tpu.memory_space<vmem>>, vector<16x128xf32>
      tpu.vector_store %arg7[%c0_11, %c0_12], %12 {strides = array<i32>} : memref<16x128xf32, #tpu.memory_space<vmem>>, vector<16x128xf32>,
    } else {
    }
    %c0 = arith.constant 0 : index
    %c0_1 = arith.constant 0 : index
    %3 = vector.load %arg7[%c0, %c0_1] : memref<16x128xf32, #tpu.memory_space<vmem>>, vector<16x128xf32>
    %c0_2 = arith.constant 0 : index
    %c0_3 = arith.constant 0 : index
    %4 = vector.load %arg3[%c0_2, %c0_3] : memref<16x256xbf16, #tpu.memory_space<vmem>>, vector<16x256xbf16>
    %c0_4 = arith.constant 0 : index
    %c0_5 = arith.constant 0 : index
    %5 = vector.load %arg4[%c0_4, %c0_5] : memref<256x128xbf16, #tpu.memory_space<vmem>>, vector<256x128xbf16>
    %cst = arith.constant dense<0.000000e+00> : vector<16x128xf32>
    %6 = tpu.matmul %4, %5, %cst {dimension_numbers = #tpu.dot_dimension_numbers<[1], [0], [0], [1], [0, 0, 1, 1], [], []>} : vector<16x256xbf16>, vector<256x128xbf16>, vector<16x128xf32> -> vector<16x128xf32>
    %7 = arith.addf %3, %6 : vector<16x128xf32>
    %c0_6 = arith.constant 0 : index
    %c0_7 = arith.constant 0 : index
    %8 = vector.load %arg7[%c0_6, %c0_7] : memref<16x128xf32, #tpu.memory_space<vmem>>, vector<16x128xf32>
    tpu.vector_store %arg7[%c0_6, %c0_7], %7 {strides = array<i32>} : memref<16x128xf32, #tpu.memory_space<vmem>>, vector<16x128xf32>,
    %c0_i32_8 = arith.constant 0 : i32
    %9 = arith.cmpi eq, %arg2, %c0_i32_8 : i32
    %10 = arith.extui %9 : i1 to i32
    %c0_i32_9 = arith.constant 0 : i32
    %11 = arith.cmpi ne, %10, %c0_i32_9 : i32
    scf.if %11 {
      %c0_10 = arith.constant 0 : index
      %c0_11 = arith.constant 0 : index
      %12 = vector.load %arg7[%c0_10, %c0_11] : memref<16x128xf32, #tpu.memory_space<vmem>>, vector<16x128xf32>
      %c0_12 = arith.constant 0 : index
      %c0_13 = arith.constant 0 : index
      %13 = vector.load %arg5[%c0_12, %c0_13] : memref<1x128xf32, #tpu.memory_space<vmem>>, vector<1x128xf32>
      %14 = vector.broadcast %13 : vector<1x128xf32> to vector<16x128xf32>
      %15 = arith.addf %12, %14 : vector<16x128xf32>
      %c0_14 = arith.constant 0 : index
      %c0_15 = arith.constant 0 : index
      %16 = vector.load %arg6[%c0_14, %c0_15] : memref<16x128xf32, #tpu.memory_space<vmem>>, vector<16x128xf32>
      tpu.vector_store %arg6[%c0_14, %c0_15], %15 {strides = array<i32>} : memref<16x128xf32, #tpu.memory_space<vmem>>, vector<16x128xf32>,
    } else {
    }
    return
  }
  func.func @transform_0(%arg0: i32, %arg1: i32, %arg2: i32) -> (i32, i32) {
    %c0_i32 = arith.constant 0 : i32
    return %arg0, %arg2 : i32, i32
  }
  func.func @transform_1(%arg0: i32, %arg1: i32, %arg2: i32) -> (i32, i32) {
    %c0_i32 = arith.constant 0 : i32
    return %arg2, %arg1 : i32, i32
  }
  func.func @transform_2(%arg0: i32, %arg1: i32, %arg2: i32) -> (i32, i32) {
    %c0_i32 = arith.constant 0 : i32
    %c0_i32_0 = arith.constant 0 : i32
    return %c0_i32, %arg1 : i32, i32
  }
  func.func @transform_3(%arg0: i32, %arg1: i32, %arg2: i32) -> (i32, i32) {
    %c0_i32 = arith.constant 0 : i32
    return %arg0, %arg1 : i32, i32
  }
}

</mosaic_0001>

<bundles_post_ra>
// kernel: fwd.12
= control target key start
LH: loop header
LB: loop body
LE: loop exit
PB: predicated region body
PF: predicated region fallthrough
CT: control target
= control target key end

     0   :  { %v53_v24 = vlaneseq  ;;  %s153_s0 = inlined_call_operand.vmem [shape: f32[16,256], index: 0, kind: input, shape index: {}]   ;;  %s154_s1 = inlined_call_operand.vmem [shape: f32[1,256], index: 1, kind: input, shape index: {}]   ;;  %s155_s2 = inlined_call_operand.vmem [shape: f32[1,256], index: 2, kind: input, shape index: {}]   ;;  %s156_s3 = inlined_call_operand.vmem [shape: bf16[16,256], index: 3, kind: output, shape index: {}]  }
   0x1   :  { %v14_v0 = vld [vmem:[%s153_s0] sm:$0xff]  ;;  %v15_v1 = vld [vmem:[%s153_s0 + $0x8] sm:$0xff]  ;;  %v16_v2 = vld [vmem:[%s153_s0 + $0x10] sm:$0xff] }
   0x2   :  { %v18_v3 = vadd.f32 %v15_v1, %v14_v0  ;;  %v17_v4 = vld [vmem:[%s153_s0 + $0x18] sm:$0xff]  ;;  %v54_v27 = vshrl.u32 %v53_v24, 7  ;;  %v51_v30 = vld [vmem:[%s154_s1] sm:$0x3] }
   0x3   :  { %v21_v5 = vadd.f32 %v17_v4, %v16_v2  ;;  %v67_v31 = vld [vmem:[%s155_s2] sm:$0x3] }
   0x4   :  { %19 = vadd.xlane.f32.xlu0 %v18_v3  ;;  %v55_v28 = vsub.s32 0, %v54_v27  ;;  %v59_v29 = vsub.s32 1, %v54_v27 }
   0x6   :  { %v56_v32 = vrot.slane %v51_v30, %v55_v28  ;;  %v60_v33 = vrot.slane %v51_v30, %v59_v29  ;;  %v72_v35 = vrot.slane %v67_v31, %v55_v28  ;;  %v76_v36 = vrot.slane %v67_v31, %v59_v29 }
   0x8   :  { %22 = vadd.xlane.f32.xlu0 %v21_v5 }
  0x8d   :  { %v20_v6 = vpop.xlane.xlu0 %19 }
  0x8e   :  { %v25_v7 = vmul.f32 0.00390625, %v20_v6 }
  0x90   :  { %v27_v8 = vsub.f32 %v14_v0, %v25_v7  ;;  %v28_v9 = vsub.f32 %v15_v1, %v25_v7 }
  0x91   :  { %v23_v10 = vpop.xlane.xlu0 %22 }
  0x92   :  { %v26_v11 = vmul.f32 0.00390625, %v23_v10  ;;  %v31_v12 = vmul.f32 %v27_v8, %v27_v8  ;;  %v32_v13 = vmul.f32 %v28_v9, %v28_v9 }
  0x94   :  { %v29_v14 = vsub.f32 %v16_v2, %v26_v11  ;;  %v30_v15 = vsub.f32 %v17_v4, %v26_v11  ;;  %v35_v16 = vadd.f32 %v32_v13, %v31_v12 }
  0x96   :  { %36 = vadd.xlane.f32.xlu1 %v35_v16  ;;  %v33_v17 = vmul.f32 %v29_v14, %v29_v14  ;;  %v34_v18 = vmul.f32 %v30_v15, %v30_v15 }
  0x98   :  { %v38_v19 = vadd.f32 %v34_v18, %v33_v17 }
  0x9a   :  { %39 = vadd.xlane.f32.xlu1 %v38_v19 }
 0x11f   :  { %v37_v20 = vpop.xlane.xlu1 %36 }
 0x120   :  { %v41_v21 = vmul.f32 0.00390625, %v37_v20 }
 0x122   :  { %v43_v22 = vadd.f32 1e-12, %v41_v21 }
 0x123   :  { %v40_v23 = vpop.xlane.xlu1 %39 }
 0x124   :  { %105 = vrsqrt.f32 %v43_v22  ;;  %v42_v25 = vmul.f32 0.00390625, %v40_v23 }
 0x126   :  { %v44_v26 = vadd.f32 1e-12, %v42_v25 }
 0x128   :  { %107 = vrsqrt.f32 %v44_v26 }
 0x131   :  { %v106_v34 = vpop.eup %105 }
 0x132   :  { %v47_v37 = vmul.f32 %v106_v34, %v27_v8  ;;  %v48_v38 = vmul.f32 %v106_v34, %v28_v9 }
 0x134   :  { %v63_v39 = vmul.f32 %v56_v32, %v47_v37  ;;  %v64_v40 = vmul.f32 %v60_v33, %v48_v38 }
 0x135   :  { %v108_v41 = vpop.eup %107 }
 0x136   :  { %v79_v42 = vadd.f32 %v72_v35, %v63_v39  ;;  %v80_v43 = vadd.f32 %v76_v36, %v64_v40  ;;  %v49_v44 = vmul.f32 %v108_v41, %v29_v14  ;;  %v50_v45 = vmul.f32 %v108_v41, %v30_v15 }
 0x138   :  { %v103_v46 = vpack.c.bf16 %v80_v43, %v79_v42  ;;  %v65_v47 = vmul.f32 %v56_v32, %v49_v44  ;;  %v66_v48 = vmul.f32 %v60_v33, %v50_v45 }
 0x13a   :  { %95 = vst [vmem:[%s156_s3] sm:$0xff] %v103_v46  ;;  %v81_v49 = vadd.f32 %v72_v35, %v65_v47  ;;  %v82_v50 = vadd.f32 %v76_v36, %v66_v48 }
 0x13c   :  { %v104_v51 = vpack.c.bf16 %v82_v50, %v81_v49 }
 0x13e   :  { %96 = vst [vmem:[%s156_s3 + $0x8] sm:$0xff] %v104_v51 }

// kernel: fwd.14
= control target key start
LH: loop header
LB: loop body
LE: loop exit
PB: predicated region body
PF: predicated region fallthrough
CT: control target
= control target key end

     0   :  { %s822_s15 = smov 0   ;;  %s824_s16 = smov 0   ;;  %s907_s0 = inlined_call_operand.vmem [shape: bf16[16,768], index: 0, kind: input, shape index: {}, may-alias: {0,1,2}]   ;;  %s908_s1 = inlined_call_operand.vmem [shape: bf16[16,768], index: 1, kind: input, shape index: {}, may-alias: {0,1,2}]   ;;  %s909_s2 = inlined_call_operand.vmem [shape: bf16[16,768], index: 2, kind: input, shape index: {}, may-alias: {0,1,2}]   ;;  %s910_s3 = inlined_call_operand.vmem [shape: f32[2,1,8], index: 3, kind: input, shape index: {}]   ;;  %s911_s4 = inlined_call_operand.vmem [shape: bf16[16,256], index: 4, kind: output, shape index: {}]  }
   0x1   :  { %s826_s17 = smov 0   ;;  %s828_s18 = smov 0  }
   0x2   :  { %s830_s19 = smov 0  }
   0x3 LB: > { %s36_s20 = sadd.s32 1, %s783_s17  ;;  %s40_s21 = sadd.s32 1, %s787_s18  ;;  %s791_s19 = sphi %s830_s19, %s14_s19   ;;  %s787_s18 = sphi %s828_s18, %s915_s18   ;;  %s783_s17 = sphi %s826_s17, %s914_s17   ;;  %s779_s16 = sphi %s824_s16, %s913_s16   ;;  %s775_s15 = sphi %s822_s15, %s912_s15  }
   0x4   : > { %p38_p0 = scmp.ge.s32.totalorder %s36_s20, 2  ;;  %p674_p1 = scmp.ge.s32.totalorder %s791_s19, 1 }
   0x5   : > { %p260_p2 = scmp.lt.s32.totalorder %s791_s19, 5 }
   0x6   : > { %s917_s20 = smov (%p38_p0, %s36_s20), 0  ;;  %s919_s21 = smov (!%p38_p0, %s40_s21), %s787_s18 }
   0x7   : > { %p261_p3 = pnand %p674_p1, %p260_p2  ;;  %p42_p4 = scmp.ge.s32.totalorder %s919_s21, 2 }
   0x8   : > { %p321_p5 = scmp.lt.s32.totalorder (!%p261_p3), %s779_s16, 1  ;;  %s331_s22 = sadd.s32 (!%p261_p3), 2, %s775_s15 }
   0x9   : > { %s921_s21 = smov (%p42_p4, %s919_s21), 0  ;;  %264 = sbr.rel (%p261_p3) target bundleno = 798 (0x31e), region = 36 }
   0xa   : > { %p334_p6 = scmp.lt.s32.totalorder (!%p261_p3), %s331_s22, 5  ;;  %p323_p7 = scmp.lt.s32.totalorder (!%p261_p3), %s775_s15, 5 }
   0xb   : > { %s343_s12 = sadd.s32 (!%p261_p3), 4, %s775_s15  ;;  %p363_p9 = scmp.lt.s32.totalorder (!%p261_p3), %s775_s15, 1 }
   0xc   : > { %p346_p8 = scmp.lt.s32.totalorder (!%p261_p3), %s343_s12, 5 }
   0xe   : > { %v793_v0 = vmov 0.0   ;;  %vm794_vm0 = vmmov 0   ;;  %s923_s16 = smov (!%p321_p5, %s779_s16), 1  ;;  %s925_s22 = smov (!%p334_p6, %s331_s22), 5  ;;  %vm375_vm1 = vcmask 7168   ;;  %v795_v3 = vmov -inf  }
   0xf   : > { %688 = vmatprep.subr.bf16.mxu0 %v793_v0  ;;  %690 = vmatprep.mubr.msk.bf16.mxu0 %vm794_vm0, %v793_v0  ;;  %s859_s23 = smul.u32 6, %s923_s16  ;;  %376 = vst.msk [vmem:[#allocation2] sm:$0xff] %vm375_vm1, %v795_v3  ;;  %377 = vst.msk [vmem:[#allocation3] sm:$0xff] %vm375_vm1, %v793_v0  ;;  %s359_s11 = scalar_lea.vmem %s910_s3, %s923_s16  ;;  %vm430_vm2 = vcmask 64512   ;;  %v796_v11 = vmov 0   ;;  %vm465_vm3 = vcmask 1043456  }
  0x10   : > { %694 = vmatprep.subr.bf16.mxu1 %v793_v0  ;;  %696 = vmatprep.mubr.msk.bf16.mxu1 %vm794_vm0, %v793_v0  ;;  %s324_s24 = scalar_select %p323_p7, %s775_s15, 5  ;;  %v680_v4 = vld [vmem:[%s359_s11] ss:$0 sm:$0xff] }
  0x11   : > { %s337_s25 = sadd.s32 %s859_s23, %s925_s22  ;;  %745 = vset.pattern.permute.xlu0 %v796_v11  ;;  %746 = vset.pattern.permute.xlu1 %v796_v11  ;;  %s927_s12 = smov (!%p346_p8, %s343_s12), 5 }
  0x12   : > { %s676_s26 = sshll.u32 %s337_s25, 2  ;;  %s326_s27 = sadd.s32 %s859_s23, %s324_s24 }
  0x13   : > { %s339_s30 = scalar_lea.vmem %s908_s1, %s676_s26  ;;  %s675_s5 = sshll.u32 %s326_s27, 2 }
  0x14   : > { %v380_v1 = vld [vmem:[%s339_s30] sm:$0xf]  ;;  %s328_s8 = scalar_lea.vmem %s907_s0, %s675_s5  ;;  %s349_s13 = sadd.s32 %s859_s23, %s927_s12 }
  0x15   : > { %689 = vmatpush3.bf16.xpose.msra.mxu0 %v380_v1  ;;  %v379_v2 = vld [vmem:[%s328_s8] sm:$0xf]  ;;  %s677_s14 = sshll.u32 %s349_s13, 2  ;;  %s929_s15 = smov (!%p363_p9, %s775_s15), 1 }
  0x16   : > { %v429_v12 = vld [vmem:[#allocation2] sm:$0xff]  ;;  %s351_s25 = scalar_lea.vmem %s909_s2, %s677_s14  ;;  %v446_v26 = vld [vmem:[#allocation3] sm:$0xff]  ;;  %s678_s23 = sshll.u32 %s923_s16, 1 }
  0x17   : > { %v381_v16 = vld [vmem:[%s351_s25] sm:$0xf]  ;;  %s366_s26 = sadd.s32 %s678_s23, %s929_s15 }
  0x18   : > { %v467_v17 = vsel %vm465_vm3, %v381_v16, 0  ;;  %s679_s27 = sshll.u32 %s366_s26, 2 }
  0x19   : > { %695 = vmatpush3.bf16.msra.mxu1 %v467_v17  ;;  %s368_s30 = scalar_lea.vmem %s911_s4, %s679_s27 }
  0x1c   : > { %691 = vmatmul.mubr.bf16.vlgmr.msra.gmra.mxu0 %v379_v2 }
  0xdc   : > { %v423_v5 = vpop.f32.mrf.mxu0 }
  0xdd   : > { %v424_v6 = vadd.f32 %v680_v4, %v423_v5 }
  0xde   : > { %v692_v7 = vpop.f32.mrf.mxu0 }
  0xdf   : > { %v431_v8 = vsel %vm430_vm2, %v424_v6, -inf }
  0xe0   : > { %432 = vmax.xlane.f32.xlu0 %v431_v8  ;;  %v426_v9 = vpop.f32.mrf.mxu0 }
  0xe2   : > { %v693_v10 = vpop.f32.mrf.mxu0 }
 0x169   : > { %v433_v13 = vpop.xlane.xlu0 %432 }
 0x16a   : > { %v434_v14 = vmax.f32 %v429_v12, %v433_v13 }
 0x16c   : > { %v435_v15 = vsub.f32 %v429_v12, %v434_v14  ;;  %511 = vst.msk [vmem:[#allocation2] sm:$0xff] %vm375_vm1, %v434_v14  ;;  %440 = vperm.xlu0 %745, %v434_v14  }
 0x16e   : > { %v436_v22 = vmul.f32 1.442695, %v435_v15 }
 0x1e7   : > { %v441_v18 = vpop.permute.xlu0 %440 }
 0x1e8   : > { %v443_v19 = vsub.f32 %v424_v6, %v441_v18 }
 0x1ea   : > { %v444_v20 = vmul.f32 1.442695, %v443_v19 }
 0x1ec   : > { %747 = vpow2.f32 %v444_v20 }
 0x1ed   : > { %749 = vpow2.f32 %v436_v22 }
 0x1f9   : > { %v748_v21 = vpop.eup %747 }
 0x1fa   : > { %v448_v23 = vsel %vm430_vm2, %v748_v21, 0.0  ;;  %v461_v24 = vpack.c.bf16 %v748_v21, %v748_v21  ;;  %v750_v25 = vpop.eup %749 }
 0x1fb   : > { %449 = vadd.xlane.f32.xlu1 %v448_v23  ;;  %v447_v27 = vmul.f32 %v750_v25, %v446_v26 }
 0x1fc   : > { %697 = vmatmul.mubr.msk.bf16.vlgmr.msra.gmra.mxu1 %vm430_vm2, %v461_v24 }
 0x20c   : > { %457 = vperm.xlu1 %746, %v750_v25  }
 0x284   : > { %v450_v28 = vpop.xlane.xlu1 %449 }
 0x285   : > { %v451_v29 = vadd.f32 %v450_v28, %v447_v27 }
 0x287   : > { %453 = vst.msk [vmem:[#allocation3] sm:$0xff] %vm375_vm1, %v451_v29 }
 0x288   : > { %v458_v36 = vpop.permute.xlu1 %457 }
 0x289   : > { %v460_v37 = vmul.f32 0.0, %v458_v36 }
 0x28e   : > { %v515_v30 = vld [vmem:[#allocation3] sm:$0xff] }
 0x28f   : > { %751 = vrcp.f32 %v515_v30 }
 0x29c   : > { %v752_v31 = vpop.eup %751 }
 0x29d   : > { %520 = vperm.xlu1 %746, %v752_v31  }
 0x2bc   : > { %v503_v32 = vpop.f32.mrf.mxu1 }
 0x2bd   : > { %v509_v38 = vadd.f32 %v503_v32, %v460_v37 }
 0x2be   : > { %v698_v33 = vpop.f32.mrf.mxu1 }
 0x2c0   : > { %v506_v34 = vpop.f32.mrf.mxu1 }
 0x2c2   : > { %v699_v35 = vpop.f32.mrf.mxu1 }
 0x318   : > { %v521_v39 = vpop.permute.xlu1 %520 }
 0x319   : > { %v523_v40 = vmul.f32 %v521_v39, %v509_v38 }
 0x31b   : > { %v524_v41 = vpack.c.bf16 %v523_v40, %v523_v40 }
 0x31d   : > { %525 = vst [vmem:[%s368_s30] sm:$0xf] %v524_v41 }
 0x31e PF: > { %s14_s19 = sadd.s32 1, %s791_s19   ;;  %s912_s15 = smov %s783_s17 }
 0x31f   : > { %p11_p10 = scmp.ge.s32.totalorder %s14_s19, 6   ;;  %s913_s16 = smov %s787_s18 }
 0x320   : > { %s914_s17 = smov %s917_s20  ;;  %s915_s18 = smov %s921_s21 }
 0x321   :  { %13 = sbr.rel (!%p11_p10) target bundleno = 3 (0x3), region = 83 }

// kernel: fwd.15
= control target key start
LH: loop header
LB: loop body
LE: loop exit
PB: predicated region body
PF: predicated region fallthrough
CT: control target
= control target key end

     0   :  { %v299_v34 = vlaneseq  ;;  %s657_s1 = inlined_call_operand.vmem [shape: bf16[256,256], index: 1, kind: input, shape index: {}]   ;;  %s658_s0 = inlined_call_operand.vmem [shape: bf16[16,256], index: 0, kind: input, shape index: {}]   ;;  %s659_s2 = inlined_call_operand.vmem [shape: f32[1,256], index: 2, kind: input, shape index: {}]   ;;  %s660_s3 = inlined_call_operand.vmem [shape: bf16[16,256], index: 3, kind: input, shape index: {}]   ;;  %s661_s4 = inlined_call_operand.vmem [shape: f32[1,256], index: 4, kind: input, shape index: {}]   ;;  %s662_s5 = inlined_call_operand.vmem [shape: f32[1,256], index: 5, kind: input, shape index: {}]   ;;  %s663_s6 = inlined_call_operand.vmem [shape: bf16[16,256], index: 6, kind: output, shape index: {}]  }
   0x1   :  { %v444_v0 = vld [vmem:[%s657_s1 + $0x74] ss:$8 sps:$4 sm:$0xff]   ;;  %v446_v1 = vld [vmem:[%s657_s1 + $0x70] ss:$8 sps:$4 sm:$0xff]   ;;  %v447_v2 = vld [vmem:[%s657_s1 + $0x64] ss:$8 sps:$4 sm:$0xff]  }
   0x2   :  { %239 = vmatprep.subr.bf16.mxu0 %v444_v0  ;;  %v449_v3 = vld [vmem:[%s657_s1 + $0x60] ss:$8 sps:$4 sm:$0xff]   ;;  %v450_v4 = vld [vmem:[%s657_s1 + $0x54] ss:$8 sps:$4 sm:$0xff]   ;;  %v452_v5 = vld [vmem:[%s657_s1 + $0x50] ss:$8 sps:$4 sm:$0xff]  }
   0x3   :  { %240 = vmatpush1.bf16.msra.mxu0 %v446_v1  ;;  %v453_v6 = vld [vmem:[%s657_s1 + $0x44] ss:$8 sps:$4 sm:$0xff]   ;;  %v455_v7 = vld [vmem:[%s657_s1 + $0x40] ss:$8 sps:$4 sm:$0xff]   ;;  %v456_v8 = vld [vmem:[%s657_s1 + $0x34] ss:$8 sps:$4 sm:$0xff]  }
   0x4   :  { %241 = vmatprep.subr.bf16.mxu0 %v447_v2  ;;  %v458_v9 = vld [vmem:[%s657_s1 + $0x30] ss:$8 sps:$4 sm:$0xff]   ;;  %v459_v10 = vld [vmem:[%s657_s1 + $0x24] ss:$8 sps:$4 sm:$0xff]   ;;  %v461_v11 = vld [vmem:[%s657_s1 + $0x20] ss:$8 sps:$4 sm:$0xff]  }
   0x5   :  { %v462_v12 = vld [vmem:[%s657_s1 + $0x14] ss:$8 sps:$4 sm:$0xff]   ;;  %v494_v13 = vld [vmem:[%s658_s0 + $0x4] ss:$8 sps:$4 sm:$0xff]   ;;  %v464_v14 = vld [vmem:[%s657_s1 + $0x10] ss:$8 sps:$4 sm:$0xff]  }
   0x6   :  { %v465_v15 = vld [vmem:[%s657_s1 + $0x4] ss:$8 sps:$4 sm:$0xff]   ;;  %271 = vmatprep.mubr.bf16.mxu0 %v494_v13  ;;  %v467_v16 = vld [vmem:[%s657_s1] ss:$8 sps:$4 sm:$0xff]   ;;  %v468_v17 = vld [vmem:[%s657_s1 + $0xf4] ss:$8 sps:$4 sm:$0xff]  }
   0x7   :  { %242 = vmatpush1.bf16.msra.mxu0 %v449_v3  ;;  %v470_v18 = vld [vmem:[%s657_s1 + $0xf0] ss:$8 sps:$4 sm:$0xff]   ;;  %v471_v19 = vld [vmem:[%s657_s1 + $0xe4] ss:$8 sps:$4 sm:$0xff]   ;;  %v473_v20 = vld [vmem:[%s657_s1 + $0xe0] ss:$8 sps:$4 sm:$0xff]  }
   0x8   :  { %243 = vmatprep.subr.bf16.mxu0 %v450_v4  ;;  %v474_v21 = vld [vmem:[%s657_s1 + $0xd4] ss:$8 sps:$4 sm:$0xff]   ;;  %v476_v22 = vld [vmem:[%s657_s1 + $0xd0] ss:$8 sps:$4 sm:$0xff]   ;;  %v477_v23 = vld [vmem:[%s657_s1 + $0xc4] ss:$8 sps:$4 sm:$0xff]  }
   0x9   :  { %v479_v24 = vld [vmem:[%s657_s1 + $0xc0] ss:$8 sps:$4 sm:$0xff]   ;;  %v480_v25 = vld [vmem:[%s657_s1 + $0xb4] ss:$8 sps:$4 sm:$0xff]   ;;  %v482_v26 = vld [vmem:[%s657_s1 + $0xb0] ss:$8 sps:$4 sm:$0xff]  }
   0xa   :  { %v483_v27 = vld [vmem:[%s657_s1 + $0xa4] ss:$8 sps:$4 sm:$0xff]   ;;  %v485_v28 = vld [vmem:[%s657_s1 + $0xa0] ss:$8 sps:$4 sm:$0xff]   ;;  %v486_v29 = vld [vmem:[%s657_s1 + $0x94] ss:$8 sps:$4 sm:$0xff]  }
   0xb   :  { %244 = vmatpush1.bf16.msra.mxu0 %v452_v5  ;;  %v488_v30 = vld [vmem:[%s657_s1 + $0x90] ss:$8 sps:$4 sm:$0xff]   ;;  %v489_v31 = vld [vmem:[%s657_s1 + $0x84] ss:$8 sps:$4 sm:$0xff]   ;;  %v491_v32 = vld [vmem:[%s657_s1 + $0x80] ss:$8 sps:$4 sm:$0xff]  }
   0xc   :  { %245 = vmatprep.subr.bf16.mxu0 %v453_v6  ;;  %v492_v33 = vld [vmem:[%s658_s0] ss:$8 sps:$4 sm:$0xff]   ;;  %v300_v35 = vshrl.u32 %v299_v34, 7 }
   0xd   :  { %v297_v37 = vld [vmem:[%s659_s2] sm:$0x3]  ;;  %v314_v44 = vld [vmem:[%s660_s3 + $0x8] sm:$0xff] }
   0xe   :  { %v301_v36 = vsub.s32 0, %v300_v35  ;;  %v305_v38 = vsub.s32 1, %v300_v35  ;;  %v313_v40 = vld [vmem:[%s660_s3] sm:$0xff]  ;;  %v317_v50 = vunpack.c.l.bf16 %v314_v44  ;;  %v318_v52 = vunpack.c.h.bf16 %v314_v44 }
   0xf   :  { %246 = vmatpush1.bf16.msra.mxu0 %v455_v7  ;;  %v315_v45 = vunpack.c.l.bf16 %v313_v40  ;;  %v316_v46 = vunpack.c.h.bf16 %v313_v40 }
  0x10   :  { %247 = vmatprep.subr.bf16.mxu0 %v456_v8  ;;  %v302_v39 = vrot.slane %v297_v37, %v301_v36  ;;  %v306_v41 = vrot.slane %v297_v37, %v305_v38 }
  0x13   :  { %248 = vmatpush1.bf16.msra.mxu0 %v458_v9 }
  0x14   :  { %249 = vmatprep.subr.bf16.mxu0 %v459_v10 }
  0x17   :  { %250 = vmatpush1.bf16.msra.mxu0 %v461_v11 }
  0x18   :  { %251 = vmatprep.subr.bf16.mxu0 %v462_v12 }
  0x1b   :  { %252 = vmatpush1.bf16.msra.mxu0 %v464_v14 }
  0x1c   :  { %253 = vmatprep.subr.bf16.mxu0 %v465_v15 }
  0x1f   :  { %254 = vmatpush1.bf16.msra.mxu0 %v467_v16 }
  0x20   :  { %255 = vmatprep.subr.bf16.mxu0 %v468_v17  ;;  %v356_v17 = vld [vmem:[%s661_s4] sm:$0x3] }
  0x23   :  { %256 = vmatpush2.bf16.msra.mxu0 %v470_v18  ;;  %v372_v18 = vld [vmem:[%s662_s5] sm:$0x3] }
  0x24   :  { %257 = vmatprep.subr.bf16.mxu0 %v471_v19  ;;  %v361_v19 = vrot.slane %v356_v17, %v301_v36 }
  0x27   :  { %258 = vmatpush2.bf16.msra.mxu0 %v473_v20  ;;  %v365_v20 = vrot.slane %v356_v17, %v305_v38 }
  0x28   :  { %259 = vmatprep.subr.bf16.mxu0 %v474_v21 }
  0x2b   :  { %260 = vmatpush2.bf16.msra.mxu0 %v476_v22  ;;  %v377_v22 = vrot.slane %v372_v18, %v301_v36 }
  0x2c   :  { %261 = vmatprep.subr.bf16.mxu0 %v477_v23  ;;  %v381_v23 = vrot.slane %v372_v18, %v305_v38 }
  0x2f   :  { %262 = vmatpush2.bf16.msra.mxu0 %v479_v24 }
  0x30   :  { %263 = vmatprep.subr.bf16.mxu0 %v480_v25 }
  0x33   :  { %264 = vmatpush2.bf16.msra.mxu0 %v482_v26 }
  0x34   :  { %265 = vmatprep.subr.bf16.mxu0 %v483_v27 }
  0x37   :  { %266 = vmatpush2.bf16.msra.mxu0 %v485_v28 }
  0x38   :  { %267 = vmatprep.subr.bf16.mxu0 %v486_v29 }
  0x3b   :  { %268 = vmatpush2.bf16.msra.mxu0 %v488_v30 }
  0x3c   :  { %269 = vmatprep.subr.bf16.mxu0 %v489_v31 }
  0x3f   :  { %270 = vmatpush2.bf16.msra.mxu0 %v491_v32 }
  0x42   :  { %272 = vmatmul.mubr.bf16.vlgmr.msra.gmra.mxu0 %v492_v33 }
 0x102   :  { %v273_v42 = vpop.f32.mrf.mxu0 }
 0x103   :  { %v309_v43 = vadd.f32 %v302_v39, %v273_v42 }
 0x104   :  { %v275_v47 = vpop.f32.mrf.mxu0 }
 0x105   :  { %v310_v48 = vadd.f32 %v306_v41, %v275_v47  ;;  %v319_v53 = vadd.f32 %v315_v45, %v309_v43 }
 0x106   :  { %v277_v49 = vpop.f32.mrf.mxu0 }
 0x107   :  { %v311_v51 = vadd.f32 %v302_v39, %v277_v49  ;;  %v320_v54 = vadd.f32 %v316_v46, %v310_v48 }
 0x108   :  { %v279_v55 = vpop.f32.mrf.mxu0 }
 0x109   :  { %v312_v56 = vadd.f32 %v306_v41, %v279_v55  ;;  %v323_v57 = vadd.f32 %v320_v54, %v319_v53  ;;  %v321_v58 = vadd.f32 %v317_v50, %v311_v51 }
 0x10b   :  { %v322_v59 = vadd.f32 %v318_v52, %v312_v56  ;;  %324 = vadd.xlane.f32.xlu0 %v323_v57 }
 0x10d   :  { %v326_v60 = vadd.f32 %v322_v59, %v321_v58 }
 0x10f   :  { %327 = vadd.xlane.f32.xlu0 %v326_v60 }
 0x194   :  { %v325_v61 = vpop.xlane.xlu0 %324 }
 0x195   :  { %v330_v62 = vmul.f32 0.00390625, %v325_v61 }
 0x197   :  { %v332_v63 = vsub.f32 %v319_v53, %v330_v62  ;;  %v333_v0 = vsub.f32 %v320_v54, %v330_v62 }
 0x198   :  { %v328_v1 = vpop.xlane.xlu0 %327 }
 0x199   :  { %v331_v2 = vmul.f32 0.00390625, %v328_v1  ;;  %v336_v3 = vmul.f32 %v332_v63, %v332_v63  ;;  %v337_v4 = vmul.f32 %v333_v0, %v333_v0 }
 0x19b   :  { %v334_v5 = vsub.f32 %v321_v58, %v331_v2  ;;  %v335_v6 = vsub.f32 %v322_v59, %v331_v2  ;;  %v340_v7 = vadd.f32 %v337_v4, %v336_v3 }
 0x19d   :  { %341 = vadd.xlane.f32.xlu1 %v340_v7  ;;  %v338_v8 = vmul.f32 %v334_v5, %v334_v5  ;;  %v339_v9 = vmul.f32 %v335_v6, %v335_v6 }
 0x19f   :  { %v343_v10 = vadd.f32 %v339_v9, %v338_v8 }
 0x1a1   :  { %344 = vadd.xlane.f32.xlu1 %v343_v10 }
 0x226   :  { %v342_v11 = vpop.xlane.xlu1 %341 }
 0x227   :  { %v346_v12 = vmul.f32 0.00390625, %v342_v11 }
 0x229   :  { %v348_v13 = vadd.f32 1e-12, %v346_v12 }
 0x22a   :  { %v345_v14 = vpop.xlane.xlu1 %344 }
 0x22b   :  { %495 = vrsqrt.f32 %v348_v13  ;;  %v347_v15 = vmul.f32 0.00390625, %v345_v14 }
 0x22d   :  { %v349_v16 = vadd.f32 1e-12, %v347_v15 }
 0x22f   :  { %497 = vrsqrt.f32 %v349_v16 }
 0x238   :  { %v496_v21 = vpop.eup %495 }
 0x239   :  { %v352_v24 = vmul.f32 %v496_v21, %v332_v63  ;;  %v353_v25 = vmul.f32 %v496_v21, %v333_v0 }
 0x23b   :  { %v368_v26 = vmul.f32 %v361_v19, %v352_v24  ;;  %v369_v27 = vmul.f32 %v365_v20, %v353_v25 }
 0x23c   :  { %v498_v28 = vpop.eup %497 }
 0x23d   :  { %v384_v29 = vadd.f32 %v377_v22, %v368_v26  ;;  %v385_v30 = vadd.f32 %v381_v23, %v369_v27  ;;  %v354_v31 = vmul.f32 %v498_v28, %v334_v5  ;;  %v355_v32 = vmul.f32 %v498_v28, %v335_v6 }
 0x23f   :  { %v442_v33 = vpack.c.bf16 %v385_v30, %v384_v29  ;;  %v370_v34 = vmul.f32 %v361_v19, %v354_v31  ;;  %v371_v35 = vmul.f32 %v365_v20, %v355_v32 }
 0x241   :  { %400 = vst [vmem:[%s663_s6] sm:$0xff] %v442_v33  ;;  %v386_v37 = vadd.f32 %v377_v22, %v370_v34  ;;  %v387_v39 = vadd.f32 %v381_v23, %v371_v35 }
 0x243   :  { %v443_v36 = vpack.c.bf16 %v387_v39, %v386_v37 }
 0x245   :  { %401 = vst [vmem:[%s663_s6 + $0x8] sm:$0xff] %v443_v36 }

// kernel: fwd.13
= control target key start
LH: loop header
LB: loop body
LE: loop exit
PB: predicated region body
PF: predicated region fallthrough
CT: control target
= control target key end

     0   :  { %8 = vsyncpa [#allocation4], 0  ;;  %s1431_s0 = inlined_call_operand.vmem [shape: bf16[16,256], index: 0, kind: input, shape index: {}]   ;;  %s1432_s1 = inlined_call_operand.hbm [shape: bf16[256,768], index: 1, kind: input, shape index: {}]   ;;  %s1433_s2 = inlined_call_operand.vmem [shape: f32[1,768], index: 2, kind: input, shape index: {}]   ;;  %s1434_s3 = inlined_call_operand.vmem [shape: bf16[16,768], index: 3, kind: output, shape index: {}]  }
   0x1   :  { %10 = vsyncpa [#allocation4 + $0x1], 0  ;;  %s1263_s12 = smov 0   ;;  %s1265_s13 = smov 0  }
   0x2   :  { %s1267_s14 = smov 0   ;;  %s1269_s15 = smov 0  }
   0x3   :  { %s1271_s16 = smov 0   ;;  %s1273_s17 = smov 0  }
   0x4 LB: > { %s935_s18 = sadd.s32 4294967295, %s1237_s17   ;;  %s31_s19 = sadd.s32 1, %s1233_s16  ;;  %s1237_s17 = sphi %s1273_s17, %s16_s17   ;;  %s1233_s16 = sphi %s1271_s16, %s1443_s16   ;;  %s1229_s15 = sphi %s1269_s15, %s1442_s15   ;;  %s1225_s14 = sphi %s1267_s14, %s1441_s14   ;;  %s1221_s13 = sphi %s1265_s13, %s1440_s13   ;;  %s1217_s12 = sphi %s1263_s12, %s1439_s12  }
   0x5   : > { %p33_p0 = scmp.ge.s32.totalorder %s31_s19, 2  ;;  %s72_s20 = sadd.s32 1, %s1225_s14 }
   0x6   : > { %p79_p1 = scmp.ne.s32.totalorder %s1225_s14, %s1221_s13  ;;  %p80_p2 = scmp.eq.s32.totalorder %s1237_s17, 0 }
   0x7   : > { %s1445_s19 = smov (%p33_p0, %s31_s19), 0  ;;  %p85_p4 = scmp.ne.s32.totalorder %s1221_s13, %s1217_s12 }
   0x8   : > { %p1299_p3 = por %p80_p2, %p79_p1  ;;  %s68_s22 = ssub.s32 %s1233_s16, %s1445_s19 }
   0x9   : > { %p86_p5 = scmp.eq.s32.totalorder %s935_s18, 0  ;;  %p70_p6 = scmp.eq.s32.totalorder %s68_s22, 0 }
   0xa   : > { %p137_p7 = scmp.eq.s32.totalorder %s935_s18, 1  ;;  %p1040_p10 = scmp.lt.s32.totalorder %s1237_s17, 2 }
   0xb   : > { %p1306_p8 = por %p86_p5, %p85_p4  ;;  %s178_s26 = sand.u32 1, %s1225_s14  }
   0xc   : > { %s1311_s24 = scalar_select %p70_p6, %s1225_s14, %s72_s20  }
   0xd   : > { %p1313_p9 = por %p137_p7, %p79_p1  ;;  %s1003_s27 = smul.u32 192, %s1233_s16 }
   0xe   : > { %s1031_s28 = smul.u32 384, %s178_s26  ;;  %p1325_p11 = pnand %p1040_p10, %p1299_p3 }
   0xf   : > { %s191_s4 = scalar_lea.hbm %s1432_s1, %s1003_s27  ;;  %p941_p12 = scmp.ge.s32.totalorder %s1237_s17, 1 }
  0x10   : > { %s182_s6 = scalar_lea.vmem [#allocation3], %s1031_s28  ;;  %s179_s8 = scalar_lea.sflag [#allocation4], %s178_s26 }
  0x11   : > { %s192_s7 = sshll.u32 %s182_s6, 4  ;;  %p1161_p13 = pneg %p1325_p11  ;;  %s193_s7 = int_to_ptr.vmem [resolvable:$true] %s192_s7 }
  0x12   : > { %s1172_s9 = scalar_lea.vmem %s193_s7, 6144  ;;  %s1239_s10 = smov [#allocation3]  }
  0x13   : > { %p1173_p0 = scmp.ne.s32.totalorder %s193_s7, %s1172_s9  ;;  %s1177_s11 = sshll.u32 %s1239_s10, 4  ;;  %s1178_s11 = int_to_ptr.vmem [resolvable:$false] %s1177_s11 }
  0x14   : > { %s1179_s12 = scalar_lea.vmem %s1178_s11, 12288  ;;  %p1180_p3 = scmp.lt.s32.totalorder %s193_s7, %s1178_s11 }
  0x15   : > { %p1175_p1 = pnand %p1173_p0, %p1161_p13  ;;  %p1181_p4 = scmp.lt.s32.totalorder %s1179_s12, %s1172_s9 }
  0x17   : > { %p1176_p2 = pneg %p1175_p1  ;;  %p1182_p5 = por %p1181_p4, %p1180_p3 }
  0x19   : > { %p1183_p6 = pnand %p1182_p5, %p1176_p2 }
  0x1b   : > { %1186 = shalt.err (!%p1183_p6)
}
  0x1c   : > { %s1240_s18 = smov 384   ;;  %s1241_s20 = smov 192  }
  0x1d   : > { %s1242_s21 = smov 12   ;;  %p208_p7 = scmp.lt.s32.totalorder %s1237_s17, 3 }
  0x1e   : > { %1039 = dma.hbm_to_vmem [thread:$0]  (!%p1325_p11), %s191_s4, 6144, %s193_s7, %s179_s8, %s1240_s18, %s1241_s20, %s1242_s21  }
  0x1f   : > { %p209_p10 = pnand %p941_p12, %p208_p7 }
  0x20   : > { %s1338_s22 = sand.u32 (!%p209_p10), 1, %s1221_s13  }
  0x21   : > { %212 = sbr.rel (%p209_p10) target bundleno = 316 (0x13c), region = 32  ;;  %s215_s27 = scalar_lea.sflag (!%p209_p10), [#allocation4], %s1338_s22 }
  0x22   : > { %s1032_s26 = smul.u32 (!%p209_p10), 384, %s1338_s22 }
  0x24   : > { %s1342_s28 = scalar_lea.vmem (!%p209_p10), [#allocation3], %s1032_s26 }
  0x26   : > { %1212 = dma.done.wait (%p1306_p8), %s215_s27, 6144  }
  0x27   : > { %1214 = vsyncadd (%p1306_p8), %s215_s27, 4294961152  ;;  %v1092_v0 = vld [vmem:[%s1342_s28 + $0xac] ss:$12 sps:$4 sm:$0xff]   ;;  %v1094_v1 = vld [vmem:[%s1342_s28 + $0xa8] ss:$12 sps:$4 sm:$0xff]   ;;  %s268_s5 = smul.u32 3, %s1229_s15  ;;  %v731_v50 = vlaneseq }
  0x28   : > { %624 = vmatprep.subr.bf16.mxu0 %v1092_v0  ;;  %v1095_v2 = vld [vmem:[%s1342_s28 + $0x94] ss:$12 sps:$4 sm:$0xff]   ;;  %v1097_v3 = vld [vmem:[%s1342_s28 + $0x90] ss:$12 sps:$4 sm:$0xff]   ;;  %v1100_v5 = vld [vmem:[%s1342_s28 + $0x78] ss:$12 sps:$4 sm:$0xff]  }
  0x29   : > { %625 = vmatpush1.bf16.msra.mxu0 %v1094_v1  ;;  %v1098_v4 = vld [vmem:[%s1342_s28 + $0x7c] ss:$12 sps:$4 sm:$0xff]   ;;  %v1101_v6 = vld [vmem:[%s1342_s28 + $0x64] ss:$12 sps:$4 sm:$0xff]   ;;  %v1103_v8 = vld [vmem:[%s1342_s28 + $0x60] ss:$12 sps:$4 sm:$0xff]  }
  0x2a   : > { %626 = vmatprep.subr.bf16.mxu0 %v1095_v2  ;;  %v1112_v7 = vld [vmem:[%s1342_s28 + $0x170] ss:$12 sps:$4 sm:$0xff]   ;;  %v1104_v10 = vld [vmem:[%s1342_s28 + $0x4c] ss:$12 sps:$4 sm:$0xff]   ;;  %v1106_v13 = vld [vmem:[%s1342_s28 + $0x48] ss:$12 sps:$4 sm:$0xff]  }
  0x2b   : > { %1009 = vmatprep.subr.bf16.mxu1 %v1112_v7  ;;  %v1114_v9 = vld [vmem:[%s1342_s28 + $0xb0] ss:$12 sps:$4 sm:$0xff]   ;;  %v1117_v11 = vld [vmem:[%s1342_s28 + $0x158] ss:$12 sps:$4 sm:$0xff]   ;;  %v1107_v14 = vld [vmem:[%s1342_s28 + $0x34] ss:$12 sps:$4 sm:$0xff]  }
  0x2c   : > { %1010 = vmatpush3.bf16.msra.mxu1 %v1114_v9  ;;  %v1119_v12 = vld [vmem:[%s1342_s28 + $0x98] ss:$12 sps:$4 sm:$0xff]   ;;  %v1122_v15 = vld [vmem:[%s1342_s28 + $0x140] ss:$12 sps:$4 sm:$0xff]   ;;  %v1109_v17 = vld [vmem:[%s1342_s28 + $0x30] ss:$12 sps:$4 sm:$0xff]  }
  0x2d   : > { %627 = vmatpush1.bf16.msra.mxu0 %v1097_v3  ;;  %1011 = vmatprep.subr.bf16.mxu1 %v1117_v11  ;;  %v1124_v16 = vld [vmem:[%s1342_s28 + $0x80] ss:$12 sps:$4 sm:$0xff]   ;;  %v1127_v18 = vld [vmem:[%s1342_s28 + $0x128] ss:$12 sps:$4 sm:$0xff]   ;;  %v1113_v21 = vld [vmem:[%s1342_s28 + $0x18] ss:$12 sps:$4 sm:$0xff]  }
  0x2e   : > { %628 = vmatprep.subr.bf16.mxu0 %v1098_v4  ;;  %v1110_v19 = vld [vmem:[%s1342_s28 + $0x1c] ss:$12 sps:$4 sm:$0xff]   ;;  %v1115_v23 = vld [vmem:[%s1342_s28 + $0x4] ss:$12 sps:$4 sm:$0xff]   ;;  %v1118_v26 = vld [vmem:[%s1342_s28] ss:$12 sps:$4 sm:$0xff]  }
  0x2f   : > { %v1129_v20 = vld [vmem:[%s1342_s28 + $0x68] ss:$12 sps:$4 sm:$0xff]   ;;  %v1132_v22 = vld [vmem:[%s1342_s28 + $0x110] ss:$12 sps:$4 sm:$0xff]   ;;  %v1137_v25 = vld [vmem:[%s1342_s28 + $0xf8] ss:$12 sps:$4 sm:$0xff]  }
  0x30   : > { %1012 = vmatpush3.bf16.msra.mxu1 %v1119_v12  ;;  %v1134_v24 = vld [vmem:[%s1342_s28 + $0x50] ss:$12 sps:$4 sm:$0xff]   ;;  %v1120_v27 = vld [vmem:[%s1342_s28 + $0x16c] ss:$12 sps:$4 sm:$0xff]   ;;  %v1123_v30 = vld [vmem:[%s1342_s28 + $0x168] ss:$12 sps:$4 sm:$0xff]  }
  0x31   : > { %629 = vmatpush1.bf16.msra.mxu0 %v1100_v5  ;;  %1013 = vmatprep.subr.bf16.mxu1 %v1122_v15  ;;  %v1139_v28 = vld [vmem:[%s1342_s28 + $0x38] ss:$12 sps:$4 sm:$0xff]   ;;  %v1142_v29 = vld [vmem:[%s1342_s28 + $0xe0] ss:$12 sps:$4 sm:$0xff]   ;;  %v1147_v33 = vld [vmem:[%s1342_s28 + $0xc8] ss:$12 sps:$4 sm:$0xff]  }
  0x32   : > { %630 = vmatprep.subr.bf16.mxu0 %v1101_v6  ;;  %v1125_v31 = vld [vmem:[%s1342_s28 + $0x154] ss:$12 sps:$4 sm:$0xff]   ;;  %v1128_v34 = vld [vmem:[%s1342_s28 + $0x150] ss:$12 sps:$4 sm:$0xff]   ;;  %v1152_v35 = vld [vmem:[%s1431_s0 + $0x4] ss:$8 sps:$4 sm:$0xff]  }
  0x33   : > { %v1144_v32 = vld [vmem:[%s1342_s28 + $0x20] ss:$12 sps:$4 sm:$0xff]   ;;  %v1130_v36 = vld [vmem:[%s1342_s28 + $0x13c] ss:$12 sps:$4 sm:$0xff]   ;;  %699 = vmatprep.mubr.bf16.mxu1 %v1152_v35  ;;  %656 = vmatprep.mubr.bf16.mxu0 %v1152_v35  ;;  %v1133_v38 = vld [vmem:[%s1342_s28 + $0x138] ss:$12 sps:$4 sm:$0xff]  }
  0x34   : > { %1014 = vmatpush3.bf16.msra.mxu1 %v1124_v16  ;;  %v1149_v37 = vld [vmem:[%s1342_s28 + $0x8] ss:$12 sps:$4 sm:$0xff]   ;;  %v1135_v39 = vld [vmem:[%s1342_s28 + $0x124] ss:$12 sps:$4 sm:$0xff]   ;;  %v1138_v41 = vld [vmem:[%s1342_s28 + $0x120] ss:$12 sps:$4 sm:$0xff]  }
  0x35   : > { %631 = vmatpush1.bf16.msra.mxu0 %v1103_v8  ;;  %1015 = vmatprep.subr.bf16.mxu1 %v1127_v18  ;;  %v1150_v40 = vld [vmem:[%s1431_s0] ss:$8 sps:$4 sm:$0xff]   ;;  %v1140_v42 = vld [vmem:[%s1342_s28 + $0x10c] ss:$12 sps:$4 sm:$0xff]   ;;  %v1148_v45 = vld [vmem:[%s1342_s28 + $0xf0] ss:$12 sps:$4 sm:$0xff]  }
  0x36   : > { %632 = vmatprep.subr.bf16.mxu0 %v1104_v10  ;;  %v1143_v43 = vld [vmem:[%s1342_s28 + $0x108] ss:$12 sps:$4 sm:$0xff]   ;;  %v1155_v47 = vld [vmem:[%s1342_s28 + $0xd8] ss:$12 sps:$4 sm:$0xff]   ;;  %v1158_v49 = vld [vmem:[%s1342_s28 + $0xc0] ss:$12 sps:$4 sm:$0xff]  }
  0x37   : > { %v1145_v44 = vld [vmem:[%s1342_s28 + $0xf4] ss:$12 sps:$4 sm:$0xff]   ;;  %v1153_v46 = vld [vmem:[%s1342_s28 + $0xdc] ss:$12 sps:$4 sm:$0xff]   ;;  %v1156_v48 = vld [vmem:[%s1342_s28 + $0xc4] ss:$12 sps:$4 sm:$0xff]  }
  0x38   : > { %1016 = vmatpush3.bf16.msra.mxu1 %v1129_v20  ;;  %p269_p8 = scmp.lt.s32.totalorder %s268_s5, 5  ;;  %v732_v51 = vshrl.u32 %v731_v50, 7  ;;  %s1033_s9 = smul.u32 24, %s1338_s22 }
  0x39   : > { %633 = vmatpush1.bf16.msra.mxu0 %v1106_v13  ;;  %1017 = vmatprep.subr.bf16.mxu1 %v1132_v22  ;;  %s1008_s11 = smul.u32 (%p1313_p9), 12, %s1229_s15 }
  0x3a   : > { %634 = vmatprep.subr.bf16.mxu0 %v1107_v14  ;;  %s1447_s5 = smov (!%p269_p8, %s268_s5), 5  ;;  %v741_v52 = vsub.s32 2, %v732_v51  ;;  %s253_s10 = scalar_lea.vmem [#allocation5], %s1033_s9  ;;  %v733_v1 = vsub.s32 0, %v732_v51  ;;  %v737_v2 = vsub.s32 1, %v732_v51 }
  0x3b   : > { %s271_s8 = scalar_lea.vmem %s1433_s2, %s1447_s5  ;;  %s788_s20 = scalar_lea.vmem (%p1313_p9), %s1434_s3, %s1008_s11 }
  0x3c   : > { %1018 = vmatpush3.bf16.msra.mxu1 %v1134_v24  ;;  %v729_v53 = vld [vmem:[%s271_s8] sm:$0x7] }
  0x3d   : > { %635 = vmatpush1.bf16.msra.mxu0 %v1109_v17  ;;  %1019 = vmatprep.subr.bf16.mxu1 %v1137_v25  ;;  %v742_v55 = vrot.slane %v729_v53, %v741_v52  ;;  %v734_v3 = vrot.slane %v729_v53, %v733_v1  ;;  %v738_v4 = vrot.slane %v729_v53, %v737_v2 }
  0x3e   : > { %636 = vmatprep.subr.bf16.mxu0 %v1110_v19 }
  0x40   : > { %1020 = vmatpush3.bf16.msra.mxu1 %v1139_v28 }
  0x41   : > { %637 = vmatpush1.bf16.msra.mxu0 %v1113_v21  ;;  %1021 = vmatprep.subr.bf16.mxu1 %v1142_v29 }
  0x42   : > { %638 = vmatprep.subr.bf16.mxu0 %v1115_v23 }
  0x44   : > { %1022 = vmatpush3.bf16.msra.mxu1 %v1144_v32 }
  0x45   : > { %639 = vmatpush1.bf16.msra.mxu0 %v1118_v26  ;;  %1023 = vmatprep.subr.bf16.mxu1 %v1147_v33 }
  0x46   : > { %640 = vmatprep.subr.bf16.mxu0 %v1120_v27 }
  0x48   : > { %1024 = vmatpush3.bf16.msra.mxu1 %v1149_v37 }
  0x49   : > { %641 = vmatpush2.bf16.msra.mxu0 %v1123_v30 }
  0x4a   : > { %642 = vmatprep.subr.bf16.mxu0 %v1125_v31 }
  0x4b   : > { %700 = vmatmul.mubr.bf16.vlgmr.msra.gmra.mxu1 %v1150_v40 }
  0x4d   : > { %643 = vmatpush2.bf16.msra.mxu0 %v1128_v34 }
  0x4e   : > { %644 = vmatprep.subr.bf16.mxu0 %v1130_v36 }
  0x51   : > { %645 = vmatpush2.bf16.msra.mxu0 %v1133_v38 }
  0x52   : > { %646 = vmatprep.subr.bf16.mxu0 %v1135_v39 }
  0x55   : > { %647 = vmatpush2.bf16.msra.mxu0 %v1138_v41 }
  0x56   : > { %648 = vmatprep.subr.bf16.mxu0 %v1140_v42 }
  0x59   : > { %649 = vmatpush2.bf16.msra.mxu0 %v1143_v43 }
  0x5a   : > { %650 = vmatprep.subr.bf16.mxu0 %v1145_v44 }
  0x5d   : > { %651 = vmatpush2.bf16.msra.mxu0 %v1148_v45 }
  0x5e   : > { %652 = vmatprep.subr.bf16.mxu0 %v1153_v46 }
  0x61   : > { %653 = vmatpush2.bf16.msra.mxu0 %v1155_v47 }
  0x62   : > { %654 = vmatprep.subr.bf16.mxu0 %v1156_v48 }
  0x65   : > { %655 = vmatpush2.bf16.msra.mxu0 %v1158_v49 }
  0x68   : > { %657 = vmatmul.mubr.bf16.vlgmr.msra.gmra.mxu0 %v1150_v40 }
 0x10b   : > { %v1025_v54 = vpop.f32.mrf.mxu1 }
 0x10d   : > { %v1026_v56 = vpop.f32.mrf.mxu1 }
 0x10e   : > { %v1027_v57 = vadd.f32 %v1026_v56, %v1025_v54 }
 0x10f   : > { %v1028_v58 = vpop.f32.mrf.mxu1 }
 0x110   : > { %v748_v59 = vadd.f32 %v1027_v57, %v742_v55 }
 0x111   : > { %v1029_v60 = vpop.f32.mrf.mxu1 }
 0x112   : > { %v1005_v61 = vpack.c.bf16 %v748_v59, %v748_v59  ;;  %v1030_v62 = vadd.f32 %v1029_v60, %v1028_v58 }
 0x114   : > { %773 = vst [vmem:[%s253_s10 + $0x8] sm:$0xf] %v1005_v61  ;;  %v751_v63 = vadd.f32 %v1030_v62, %v742_v55 }
 0x116   : > { %v1007_v0 = vpack.c.bf16 %v751_v63, %v751_v63 }
 0x118   : > { %775 = vst [vmem:[%s253_s10 + $0x14] sm:$0xf] %v1007_v0 }
 0x11b   : > { %v997_v17 = vld [vmem:[%s253_s10 + $0x8] sm:$0xf] (%p1313_p9) }
 0x11c   : > { %998 = vst [vmem:[%s788_s20 + $0x8] sm:$0xf] (%p1313_p9), %v997_v17 }
 0x11f   : > { %v999_v18 = vld [vmem:[%s253_s10 + $0x14] sm:$0xf] (%p1313_p9) }
 0x120   : > { %1000 = vst [vmem:[%s788_s20 + $0x20] sm:$0xf] (%p1313_p9), %v999_v18 }
 0x128   : > { %v658_v5 = vpop.f32.mrf.mxu0 }
 0x129   : > { %v746_v7 = vadd.f32 %v734_v3, %v658_v5 }
 0x12a   : > { %v660_v6 = vpop.f32.mrf.mxu0 }
 0x12b   : > { %v747_v8 = vadd.f32 %v738_v4, %v660_v6 }
 0x12c   : > { %v662_v9 = vpop.f32.mrf.mxu0 }
 0x12d   : > { %v1004_v10 = vpack.c.bf16 %v747_v8, %v746_v7  ;;  %v749_v12 = vadd.f32 %v734_v3, %v662_v9 }
 0x12e   : > { %v664_v11 = vpop.f32.mrf.mxu0 }
 0x12f   : > { %772 = vst [vmem:[%s253_s10] sm:$0xff] %v1004_v10  ;;  %v750_v13 = vadd.f32 %v738_v4, %v664_v11  ;;  %782 = sbr.rel (!%p1313_p9) target bundleno = 316 (0x13c), region = 48 }
 0x131   : > { %v1006_v14 = vpack.c.bf16 %v750_v13, %v749_v12 }
 0x133   : > { %774 = vst [vmem:[%s253_s10 + $0xc] sm:$0xff] %v1006_v14 }
 0x136   : > { %v803_v15 = vld [vmem:[%s253_s10] sm:$0xff] }
 0x137   : > { %804 = vst [vmem:[%s788_s20] sm:$0xff] %v803_v15 }
 0x13a   : > { %v805_v16 = vld [vmem:[%s253_s10 + $0xc] sm:$0xff] }
 0x13b   : > { %806 = vst [vmem:[%s788_s20 + $0x18] sm:$0xff] %v805_v16 }
 0x13c PF: > { %s16_s17 = sadd.s32 1, %s1237_s17   ;;  %s1439_s12 = smov %s1221_s13 }
 0x13d   : > { %p13_p11 = scmp.ge.s32.totalorder %s16_s17, 4   ;;  %s1440_s13 = smov %s1225_s14 }
 0x13e   : > { %s1441_s14 = smov %s1311_s24  ;;  %s1442_s15 = smov %s1233_s16 }
 0x13f   : > { %s1443_s16 = smov %s1445_s19  ;;  %15 = sbr.rel (!%p13_p11) target bundleno = 4 (0x4), region = 118 }
 0x144   :  { %834 = vsyncpa [#allocation4], 1 }
 0x145   :  { %836 = vsyncpa [#allocation4 + $0x1], 1 }

// kernel: fwd.16
= control target key start
LH: loop header
LB: loop body
LE: loop exit
PB: predicated region body
PF: predicated region fallthrough
CT: control target
= control target key end

     0   :  { %s1134_s1 = inlined_call_operand.vmem [shape: bf16[256,512], index: 1, kind: input, shape index: {}]   ;;  %s1135_s0 = inlined_call_operand.vmem [shape: bf16[16,256], index: 0, kind: input, shape index: {}]   ;;  %s1136_s2 = inlined_call_operand.vmem [shape: f32[1,512], index: 2, kind: input, shape index: {}]   ;;  %s1137_s3 = inlined_call_operand.vmem [shape: bf16[16,512], index: 3, kind: output, shape index: {}]  }
   0x1   :  { %v751_v0 = vld [vmem:[%s1134_s1 + $0xe4] ss:$16 sps:$4 sm:$0xff]   ;;  %v753_v1 = vld [vmem:[%s1134_s1 + $0xec] ss:$16 sps:$4 sm:$0xff]   ;;  %v755_v2 = vld [vmem:[%s1134_s1 + $0xe0] ss:$16 sps:$4 sm:$0xff]  }
   0x2   :  { %430 = vmatprep.subr.bf16.mxu0 %v751_v0  ;;  %v756_v3 = vld [vmem:[%s1134_s1 + $0xe8] ss:$16 sps:$4 sm:$0xff]   ;;  %473 = vmatprep.subr.bf16.mxu1 %v753_v1  ;;  %v757_v4 = vld [vmem:[%s1134_s1 + $0xc4] ss:$16 sps:$4 sm:$0xff]   ;;  %v759_v5 = vld [vmem:[%s1134_s1 + $0xcc] ss:$16 sps:$4 sm:$0xff]  }
   0x3   :  { %431 = vmatpush1.bf16.msra.mxu0 %v755_v2  ;;  %474 = vmatpush1.bf16.msra.mxu1 %v756_v3  ;;  %v761_v6 = vld [vmem:[%s1134_s1 + $0xc0] ss:$16 sps:$4 sm:$0xff]   ;;  %v762_v7 = vld [vmem:[%s1134_s1 + $0xc8] ss:$16 sps:$4 sm:$0xff]   ;;  %v763_v8 = vld [vmem:[%s1134_s1 + $0xa4] ss:$16 sps:$4 sm:$0xff]   ;;  %v545_v2 = vlaneseq }
   0x4   :  { %432 = vmatprep.subr.bf16.mxu0 %v757_v4  ;;  %475 = vmatprep.subr.bf16.mxu1 %v759_v5  ;;  %v765_v9 = vld [vmem:[%s1134_s1 + $0xac] ss:$16 sps:$4 sm:$0xff]   ;;  %v767_v10 = vld [vmem:[%s1134_s1 + $0xa0] ss:$16 sps:$4 sm:$0xff]   ;;  %v768_v11 = vld [vmem:[%s1134_s1 + $0xa8] ss:$16 sps:$4 sm:$0xff]  }
   0x5   :  { %v769_v12 = vld [vmem:[%s1134_s1 + $0x84] ss:$16 sps:$4 sm:$0xff]   ;;  %v771_v13 = vld [vmem:[%s1134_s1 + $0x8c] ss:$16 sps:$4 sm:$0xff]   ;;  %v773_v14 = vld [vmem:[%s1134_s1 + $0x80] ss:$16 sps:$4 sm:$0xff]  }
   0x6   :  { %v774_v15 = vld [vmem:[%s1134_s1 + $0x88] ss:$16 sps:$4 sm:$0xff]   ;;  %v775_v16 = vld [vmem:[%s1134_s1 + $0x64] ss:$16 sps:$4 sm:$0xff]   ;;  %v777_v17 = vld [vmem:[%s1134_s1 + $0x6c] ss:$16 sps:$4 sm:$0xff]  }
   0x7   :  { %433 = vmatpush1.bf16.msra.mxu0 %v761_v6  ;;  %476 = vmatpush1.bf16.msra.mxu1 %v762_v7  ;;  %v779_v18 = vld [vmem:[%s1134_s1 + $0x60] ss:$16 sps:$4 sm:$0xff]   ;;  %v780_v19 = vld [vmem:[%s1134_s1 + $0x68] ss:$16 sps:$4 sm:$0xff]   ;;  %v781_v20 = vld [vmem:[%s1134_s1 + $0x44] ss:$16 sps:$4 sm:$0xff]  }
   0x8   :  { %434 = vmatprep.subr.bf16.mxu0 %v763_v8  ;;  %477 = vmatprep.subr.bf16.mxu1 %v765_v9  ;;  %v783_v21 = vld [vmem:[%s1134_s1 + $0x4c] ss:$16 sps:$4 sm:$0xff]   ;;  %v785_v22 = vld [vmem:[%s1134_s1 + $0x40] ss:$16 sps:$4 sm:$0xff]   ;;  %v786_v23 = vld [vmem:[%s1134_s1 + $0x48] ss:$16 sps:$4 sm:$0xff]  }
   0x9   :  { %v787_v24 = vld [vmem:[%s1134_s1 + $0x24] ss:$16 sps:$4 sm:$0xff]   ;;  %v789_v25 = vld [vmem:[%s1134_s1 + $0x2c] ss:$16 sps:$4 sm:$0xff]   ;;  %v791_v26 = vld [vmem:[%s1134_s1 + $0x20] ss:$16 sps:$4 sm:$0xff]  }
   0xa   :  { %v792_v27 = vld [vmem:[%s1134_s1 + $0x28] ss:$16 sps:$4 sm:$0xff]   ;;  %v793_v28 = vld [vmem:[%s1134_s1 + $0x4] ss:$16 sps:$4 sm:$0xff]   ;;  %v795_v29 = vld [vmem:[%s1134_s1 + $0xc] ss:$16 sps:$4 sm:$0xff]  }
   0xb   :  { %435 = vmatpush1.bf16.msra.mxu0 %v767_v10  ;;  %478 = vmatpush1.bf16.msra.mxu1 %v768_v11  ;;  %v797_v30 = vld [vmem:[%s1134_s1] ss:$16 sps:$4 sm:$0xff]   ;;  %v798_v31 = vld [vmem:[%s1134_s1 + $0x8] ss:$16 sps:$4 sm:$0xff]   ;;  %v799_v32 = vld [vmem:[%s1134_s1 + $0x1e4] ss:$16 sps:$4 sm:$0xff]  }
   0xc   :  { %436 = vmatprep.subr.bf16.mxu0 %v769_v12  ;;  %479 = vmatprep.subr.bf16.mxu1 %v771_v13  ;;  %v801_v33 = vld [vmem:[%s1134_s1 + $0x1ec] ss:$16 sps:$4 sm:$0xff]   ;;  %v803_v34 = vld [vmem:[%s1134_s1 + $0x1e0] ss:$16 sps:$4 sm:$0xff]   ;;  %v804_v35 = vld [vmem:[%s1134_s1 + $0x1e8] ss:$16 sps:$4 sm:$0xff]  }
   0xd   :  { %v805_v36 = vld [vmem:[%s1134_s1 + $0x1c4] ss:$16 sps:$4 sm:$0xff]   ;;  %v807_v37 = vld [vmem:[%s1134_s1 + $0x1cc] ss:$16 sps:$4 sm:$0xff]   ;;  %v809_v38 = vld [vmem:[%s1134_s1 + $0x1c0] ss:$16 sps:$4 sm:$0xff]  }
   0xe   :  { %v810_v39 = vld [vmem:[%s1134_s1 + $0x1c8] ss:$16 sps:$4 sm:$0xff]   ;;  %v811_v40 = vld [vmem:[%s1134_s1 + $0x1a4] ss:$16 sps:$4 sm:$0xff]   ;;  %v813_v41 = vld [vmem:[%s1134_s1 + $0x1ac] ss:$16 sps:$4 sm:$0xff]  }
   0xf   :  { %437 = vmatpush1.bf16.msra.mxu0 %v773_v14  ;;  %480 = vmatpush1.bf16.msra.mxu1 %v774_v15  ;;  %v815_v42 = vld [vmem:[%s1134_s1 + $0x1a0] ss:$16 sps:$4 sm:$0xff]   ;;  %v816_v43 = vld [vmem:[%s1134_s1 + $0x1a8] ss:$16 sps:$4 sm:$0xff]   ;;  %v817_v44 = vld [vmem:[%s1134_s1 + $0x184] ss:$16 sps:$4 sm:$0xff]  }
  0x10   :  { %438 = vmatprep.subr.bf16.mxu0 %v775_v16  ;;  %481 = vmatprep.subr.bf16.mxu1 %v777_v17  ;;  %v819_v45 = vld [vmem:[%s1134_s1 + $0x18c] ss:$16 sps:$4 sm:$0xff]   ;;  %v821_v47 = vld [vmem:[%s1134_s1 + $0x180] ss:$16 sps:$4 sm:$0xff]   ;;  %v822_v48 = vld [vmem:[%s1134_s1 + $0x188] ss:$16 sps:$4 sm:$0xff]  }
  0x11   :  { %v849_v46 = vld [vmem:[%s1135_s0 + $0x4] ss:$8 sps:$4 sm:$0xff]   ;;  %v827_v51 = vld [vmem:[%s1134_s1 + $0x160] ss:$16 sps:$4 sm:$0xff]   ;;  %v828_v52 = vld [vmem:[%s1134_s1 + $0x168] ss:$16 sps:$4 sm:$0xff]  }
  0x12   :  { %v823_v49 = vld [vmem:[%s1134_s1 + $0x164] ss:$16 sps:$4 sm:$0xff]   ;;  %v825_v50 = vld [vmem:[%s1134_s1 + $0x16c] ss:$16 sps:$4 sm:$0xff]   ;;  %462 = vmatprep.mubr.bf16.mxu0 %v849_v46  ;;  %505 = vmatprep.mubr.bf16.mxu1 %v849_v46  ;;  %v833_v55 = vld [vmem:[%s1134_s1 + $0x140] ss:$16 sps:$4 sm:$0xff]  }
  0x13   :  { %439 = vmatpush1.bf16.msra.mxu0 %v779_v18  ;;  %482 = vmatpush1.bf16.msra.mxu1 %v780_v19  ;;  %v829_v53 = vld [vmem:[%s1134_s1 + $0x144] ss:$16 sps:$4 sm:$0xff]   ;;  %v831_v54 = vld [vmem:[%s1134_s1 + $0x14c] ss:$16 sps:$4 sm:$0xff]   ;;  %v834_v56 = vld [vmem:[%s1134_s1 + $0x148] ss:$16 sps:$4 sm:$0xff]  }
  0x14   :  { %440 = vmatprep.subr.bf16.mxu0 %v781_v20  ;;  %483 = vmatprep.subr.bf16.mxu1 %v783_v21  ;;  %v835_v57 = vld [vmem:[%s1134_s1 + $0x124] ss:$16 sps:$4 sm:$0xff]   ;;  %v837_v58 = vld [vmem:[%s1134_s1 + $0x12c] ss:$16 sps:$4 sm:$0xff]   ;;  %v839_v59 = vld [vmem:[%s1134_s1 + $0x120] ss:$16 sps:$4 sm:$0xff]  }
  0x15   :  { %v840_v60 = vld [vmem:[%s1134_s1 + $0x128] ss:$16 sps:$4 sm:$0xff]   ;;  %v841_v61 = vld [vmem:[%s1134_s1 + $0x104] ss:$16 sps:$4 sm:$0xff]   ;;  %v843_v62 = vld [vmem:[%s1134_s1 + $0x10c] ss:$16 sps:$4 sm:$0xff]  }
  0x16   :  { %v845_v63 = vld [vmem:[%s1134_s1 + $0x100] ss:$16 sps:$4 sm:$0xff]   ;;  %v846_v0 = vld [vmem:[%s1134_s1 + $0x108] ss:$16 sps:$4 sm:$0xff]   ;;  %v546_v3 = vshrl.u32 %v545_v2, 7 }
  0x17   :  { %441 = vmatpush1.bf16.msra.mxu0 %v785_v22  ;;  %484 = vmatpush1.bf16.msra.mxu1 %v786_v23  ;;  %v847_v1 = vld [vmem:[%s1135_s0] ss:$8 sps:$4 sm:$0xff]  }
  0x18   :  { %442 = vmatprep.subr.bf16.mxu0 %v787_v24  ;;  %485 = vmatprep.subr.bf16.mxu1 %v789_v25  ;;  %v547_v4 = vsub.s32 0, %v546_v3  ;;  %v555_v5 = vsub.s32 2, %v546_v3  ;;  %v543_v6 = vld [vmem:[%s1136_s2] sm:$0xf]  ;;  %v551_v7 = vsub.s32 1, %v546_v3  ;;  %v559_v8 = vsub.s32 3, %v546_v3 }
  0x1a   :  { %v548_v9 = vrot.slane %v543_v6, %v547_v4  ;;  %v556_v10 = vrot.slane %v543_v6, %v555_v5  ;;  %v552_v13 = vrot.slane %v543_v6, %v551_v7  ;;  %v560_v14 = vrot.slane %v543_v6, %v559_v8 }
  0x1b   :  { %443 = vmatpush1.bf16.msra.mxu0 %v791_v26  ;;  %486 = vmatpush1.bf16.msra.mxu1 %v792_v27 }
  0x1c   :  { %444 = vmatprep.subr.bf16.mxu0 %v793_v28  ;;  %487 = vmatprep.subr.bf16.mxu1 %v795_v29 }
  0x1f   :  { %445 = vmatpush1.bf16.msra.mxu0 %v797_v30  ;;  %488 = vmatpush1.bf16.msra.mxu1 %v798_v31 }
  0x20   :  { %446 = vmatprep.subr.bf16.mxu0 %v799_v32  ;;  %489 = vmatprep.subr.bf16.mxu1 %v801_v33 }
  0x23   :  { %447 = vmatpush2.bf16.msra.mxu0 %v803_v34  ;;  %490 = vmatpush2.bf16.msra.mxu1 %v804_v35 }
  0x24   :  { %448 = vmatprep.subr.bf16.mxu0 %v805_v36  ;;  %491 = vmatprep.subr.bf16.mxu1 %v807_v37 }
  0x27   :  { %449 = vmatpush2.bf16.msra.mxu0 %v809_v38  ;;  %492 = vmatpush2.bf16.msra.mxu1 %v810_v39 }
  0x28   :  { %450 = vmatprep.subr.bf16.mxu0 %v811_v40  ;;  %493 = vmatprep.subr.bf16.mxu1 %v813_v41 }
  0x2b   :  { %451 = vmatpush2.bf16.msra.mxu0 %v815_v42  ;;  %494 = vmatpush2.bf16.msra.mxu1 %v816_v43 }
  0x2c   :  { %452 = vmatprep.subr.bf16.mxu0 %v817_v44  ;;  %495 = vmatprep.subr.bf16.mxu1 %v819_v45 }
  0x2f   :  { %453 = vmatpush2.bf16.msra.mxu0 %v821_v47  ;;  %496 = vmatpush2.bf16.msra.mxu1 %v822_v48 }
  0x30   :  { %454 = vmatprep.subr.bf16.mxu0 %v823_v49  ;;  %497 = vmatprep.subr.bf16.mxu1 %v825_v50 }
  0x33   :  { %455 = vmatpush2.bf16.msra.mxu0 %v827_v51  ;;  %498 = vmatpush2.bf16.msra.mxu1 %v828_v52 }
  0x34   :  { %456 = vmatprep.subr.bf16.mxu0 %v829_v53  ;;  %499 = vmatprep.subr.bf16.mxu1 %v831_v54 }
  0x37   :  { %457 = vmatpush2.bf16.msra.mxu0 %v833_v55  ;;  %500 = vmatpush2.bf16.msra.mxu1 %v834_v56 }
  0x38   :  { %458 = vmatprep.subr.bf16.mxu0 %v835_v57  ;;  %501 = vmatprep.subr.bf16.mxu1 %v837_v58 }
  0x3b   :  { %459 = vmatpush2.bf16.msra.mxu0 %v839_v59  ;;  %502 = vmatpush2.bf16.msra.mxu1 %v840_v60 }
  0x3c   :  { %460 = vmatprep.subr.bf16.mxu0 %v841_v61  ;;  %503 = vmatprep.subr.bf16.mxu1 %v843_v62 }
  0x3f   :  { %461 = vmatpush2.bf16.msra.mxu0 %v845_v63  ;;  %504 = vmatpush2.bf16.msra.mxu1 %v846_v0 }
  0x42   :  { %463 = vmatmul.mubr.bf16.vlgmr.msra.gmra.mxu0 %v847_v1  ;;  %506 = vmatmul.mubr.bf16.vlgmr.msra.gmra.mxu1 %v847_v1 }
 0x102   :  { %v464_v11 = vpop.f32.mrf.mxu0  ;;  %v507_v12 = vpop.f32.mrf.mxu1 }
 0x103   :  { %v1087_v15 = vadd.f32 %v548_v9, %v464_v11  ;;  %v1089_v16 = vadd.f32 %v556_v10, %v507_v12 }
 0x104   :  { %v466_v17 = vpop.f32.mrf.mxu0  ;;  %v509_v18 = vpop.f32.mrf.mxu1 }
 0x105   :  { %v581_v19 = vmul.f32 0.044715, %v1087_v15  ;;  %v583_v20 = vmul.f32 0.044715, %v1089_v16  ;;  %v566_v21 = vadd.f32 %v552_v13, %v466_v17  ;;  %v1093_v22 = vadd.f32 %v560_v14, %v509_v18 }
 0x106   :  { %v468_v23 = vpop.f32.mrf.mxu0  ;;  %v511_v24 = vpop.f32.mrf.mxu1  ;;  %v573_v11 = vmul.f32 0.5, %v1087_v15 }
 0x107   :  { %v589_v25 = vmul.f32 %v581_v19, %v1087_v15  ;;  %v591_v26 = vmul.f32 %v583_v20, %v1089_v16  ;;  %v1097_v27 = vadd.f32 %v548_v9, %v468_v23  ;;  %v1099_v28 = vadd.f32 %v556_v10, %v511_v24 }
 0x108   :  { %v582_v29 = vmul.f32 0.044715, %v566_v21  ;;  %v584_v30 = vmul.f32 0.044715, %v1093_v22  ;;  %v470_v31 = vpop.f32.mrf.mxu0  ;;  %v513_v35 = vpop.f32.mrf.mxu1  ;;  %v574_v12 = vmul.f32 0.5, %v566_v21  ;;  %v576_v17 = vmul.f32 0.5, %v1093_v22 }
 0x109   :  { %v597_v32 = vmul.f32 %v589_v25, %v1087_v15  ;;  %v599_v33 = vmul.f32 %v591_v26, %v1089_v16  ;;  %v585_v34 = vmul.f32 0.044715, %v1097_v27  ;;  %v587_v38 = vmul.f32 0.044715, %v1099_v28 }
 0x10a   :  { %v590_v36 = vmul.f32 %v582_v29, %v566_v21  ;;  %v592_v37 = vmul.f32 %v584_v30, %v1093_v22  ;;  %v570_v42 = vadd.f32 %v552_v13, %v470_v31  ;;  %v572_v46 = vadd.f32 %v560_v14, %v513_v35 }
 0x10b   :  { %v605_v39 = vadd.f32 %v597_v32, %v1087_v15  ;;  %v607_v40 = vadd.f32 %v599_v33, %v1089_v16  ;;  %v593_v41 = vmul.f32 %v585_v34, %v1097_v27  ;;  %v595_v45 = vmul.f32 %v587_v38, %v1099_v28 }
 0x10c   :  { %v598_v43 = vmul.f32 %v590_v36, %v566_v21  ;;  %v600_v44 = vmul.f32 %v592_v37, %v1093_v22  ;;  %v586_v53 = vmul.f32 0.044715, %v570_v42  ;;  %v588_v55 = vmul.f32 0.044715, %v572_v46 }
 0x10d   :  { %v613_v47 = vmul.f32 0.7978846, %v605_v39  ;;  %v615_v48 = vmul.f32 0.7978846, %v607_v40  ;;  %v601_v49 = vmul.f32 %v593_v41, %v1097_v27  ;;  %v603_v52 = vmul.f32 %v595_v45, %v1099_v28 }
 0x10e   :  { %v606_v50 = vadd.f32 %v598_v43, %v566_v21  ;;  %v608_v51 = vadd.f32 %v600_v44, %v1093_v22  ;;  %v594_v60 = vmul.f32 %v586_v53, %v570_v42  ;;  %v596_v61 = vmul.f32 %v588_v55, %v572_v46 }
 0x10f   :  { %850 = vtanh.f32 %v613_v47  ;;  %v609_v54 = vadd.f32 %v601_v49, %v1097_v27  ;;  %v611_v58 = vadd.f32 %v603_v52, %v1099_v28  ;;  %v575_v14 = vmul.f32 0.5, %v1089_v16 }
 0x110   :  { %852 = vtanh.f32 %v615_v48  ;;  %v614_v56 = vmul.f32 0.7978846, %v606_v50  ;;  %v616_v57 = vmul.f32 0.7978846, %v608_v51  ;;  %v602_v63 = vmul.f32 %v594_v60, %v570_v42 }
 0x111   :  { %v617_v59 = vmul.f32 0.7978846, %v609_v54  ;;  %v619_v62 = vmul.f32 0.7978846, %v611_v58  ;;  %v604_v0 = vmul.f32 %v596_v61, %v572_v46  ;;  %v577_v16 = vmul.f32 0.5, %v1097_v27 }
 0x112   :  { %854 = vtanh.f32 %v614_v56  ;;  %v610_v1 = vadd.f32 %v602_v63, %v570_v42  ;;  %v578_v22 = vmul.f32 0.5, %v570_v42  ;;  %v579_v34 = vmul.f32 0.5, %v1099_v28 }
 0x113   :  { %856 = vtanh.f32 %v616_v57  ;;  %v612_v2 = vadd.f32 %v604_v0, %v572_v46  ;;  %v580_v35 = vmul.f32 0.5, %v572_v46 }
 0x114   :  { %858 = vtanh.f32 %v617_v59  ;;  %v618_v3 = vmul.f32 0.7978846, %v610_v1 }
 0x115   :  { %860 = vtanh.f32 %v619_v62  ;;  %v620_v4 = vmul.f32 0.7978846, %v612_v2 }
 0x116   :  { %862 = vtanh.f32 %v618_v3 }
 0x117   :  { %864 = vtanh.f32 %v620_v4 }
 0x11c   :  { %v851_v5 = vpop.eup %850 }
 0x11d   :  { %v853_v6 = vpop.eup %852  ;;  %v629_v7 = vadd.f32 1.0, %v851_v5 }
 0x11e   :  { %v631_v9 = vadd.f32 1.0, %v853_v6 }
 0x11f   :  { %v855_v8 = vpop.eup %854  ;;  %v637_v20 = vmul.f32 %v629_v7, %v573_v11 }
 0x120   :  { %v857_v10 = vpop.eup %856  ;;  %v630_v13 = vadd.f32 1.0, %v855_v8  ;;  %v639_v25 = vmul.f32 %v631_v9, %v575_v14 }
 0x121   :  { %v632_v18 = vadd.f32 1.0, %v857_v10  ;;  %v859_v19 = vpop.eup %858 }
 0x122   :  { %v638_v23 = vmul.f32 %v630_v13, %v574_v12  ;;  %v861_v24 = vpop.eup %860  ;;  %v633_v31 = vadd.f32 1.0, %v859_v19 }
 0x123   :  { %v640_v26 = vmul.f32 %v632_v18, %v576_v17  ;;  %v863_v32 = vpop.eup %862  ;;  %v635_v15 = vadd.f32 1.0, %v861_v24 }
 0x124   :  { %v747_v29 = vpack.c.bf16 %v638_v23, %v637_v20  ;;  %v865_v21 = vpop.eup %864  ;;  %v634_v33 = vadd.f32 1.0, %v863_v32  ;;  %v641_v37 = vmul.f32 %v633_v31, %v577_v16 }
 0x125   :  { %v748_v30 = vpack.c.bf16 %v640_v26, %v639_v25  ;;  %v636_v36 = vadd.f32 1.0, %v865_v21  ;;  %v643_v39 = vmul.f32 %v635_v15, %v579_v34 }
 0x126   :  { %669 = vst [vmem:[%s1137_s3] sm:$0xff] %v747_v29  ;;  %v642_v38 = vmul.f32 %v634_v33, %v578_v22 }
 0x127   :  { %670 = vst [vmem:[%s1137_s3 + $0x8] sm:$0xff] %v748_v30  ;;  %v644_v40 = vmul.f32 %v636_v36, %v580_v35 }
 0x128   :  { %v749_v41 = vpack.c.bf16 %v642_v38, %v641_v37 }
 0x129   :  { %v750_v43 = vpack.c.bf16 %v644_v40, %v643_v39 }
 0x12a   :  { %671 = vst [vmem:[%s1137_s3 + $0x10] sm:$0xff] %v749_v41 }
 0x12b   :  { %672 = vst [vmem:[%s1137_s3 + $0x18] sm:$0xff] %v750_v43 }

// kernel: fwd.23
= control target key start
LH: loop header
LB: loop body
LE: loop exit
PB: predicated region body
PF: predicated region fallthrough
CT: control target
= control target key end

     0   :  { %s371_s1 = inlined_call_operand.vmem [shape: bf16[256,128], index: 1, kind: input, shape index: {}]   ;;  %s372_s0 = inlined_call_operand.vmem [shape: bf16[16,256], index: 0, kind: input, shape index: {}]   ;;  %s373_s2 = inlined_call_operand.vmem [shape: f32[1,128], index: 2, kind: input, shape index: {}]   ;;  %s374_s3 = inlined_call_operand.vmem [shape: f32[16,128], index: 3, kind: output, shape index: {}]  }
   0x1   :  { %v269_v0 = vld [vmem:[%s371_s1 + $0x78] sm:$0xff]   ;;  %v271_v2 = vld [vmem:[%s371_s1 + $0x70] sm:$0xff]   ;;  %v273_v4 = vld [vmem:[%s371_s1 + $0x68] sm:$0xff]  }
   0x2   :  { %v270_v1 = vld [vmem:[%s371_s1 + $0x38] sm:$0xff]   ;;  %247 = vmatprep.subr.bf16.mxu0 %v269_v0  ;;  %v272_v3 = vld [vmem:[%s371_s1 + $0x30] sm:$0xff]   ;;  %v274_v5 = vld [vmem:[%s371_s1 + $0x28] sm:$0xff]  }
   0x3   :  { %248 = vmatpush3.bf16.msra.mxu0 %v270_v1  ;;  %v275_v6 = vld [vmem:[%s371_s1 + $0x60] sm:$0xff]   ;;  %v277_v8 = vld [vmem:[%s371_s1 + $0x58] sm:$0xff]   ;;  %v279_v10 = vld [vmem:[%s371_s1 + $0x50] sm:$0xff]  }
   0x4   :  { %249 = vmatprep.subr.bf16.mxu0 %v271_v2  ;;  %v276_v7 = vld [vmem:[%s371_s1 + $0x20] sm:$0xff]   ;;  %v278_v9 = vld [vmem:[%s371_s1 + $0x18] sm:$0xff]   ;;  %v280_v12 = vld [vmem:[%s371_s1 + $0x10] sm:$0xff]  }
   0x5   :  { %v287_v11 = vld [vmem:[%s372_s0 + $0x4] ss:$8 sps:$4 sm:$0xff]   ;;  %v285_v17 = vld [vmem:[%s372_s0] ss:$8 sps:$4 sm:$0xff]  }
   0x6   :  { %195 = vmatprep.mubr.bf16.mxu0 %v287_v11  ;;  %v281_v13 = vld [vmem:[%s371_s1 + $0x48] sm:$0xff]   ;;  %v283_v15 = vld [vmem:[%s371_s1 + $0x40] sm:$0xff]  }
   0x7   :  { %250 = vmatpush3.bf16.msra.mxu0 %v272_v3  ;;  %v282_v14 = vld [vmem:[%s371_s1 + $0x8] sm:$0xff]   ;;  %v284_v16 = vld [vmem:[%s371_s1] sm:$0xff]  }
   0x8   :  { %251 = vmatprep.subr.bf16.mxu0 %v273_v4  ;;  %v246_v20 = vld [vmem:[%s373_s2] ss:$0 sm:$0xff] }
   0xb   :  { %252 = vmatpush3.bf16.msra.mxu0 %v274_v5 }
   0xc   :  { %253 = vmatprep.subr.bf16.mxu0 %v275_v6 }
   0xf   :  { %254 = vmatpush3.bf16.msra.mxu0 %v276_v7 }
  0x10   :  { %255 = vmatprep.subr.bf16.mxu0 %v277_v8 }
  0x13   :  { %256 = vmatpush3.bf16.msra.mxu0 %v278_v9 }
  0x14   :  { %257 = vmatprep.subr.bf16.mxu0 %v279_v10 }
  0x17   :  { %258 = vmatpush3.bf16.msra.mxu0 %v280_v12 }
  0x18   :  { %259 = vmatprep.subr.bf16.mxu0 %v281_v13 }
  0x1b   :  { %260 = vmatpush3.bf16.msra.mxu0 %v282_v14 }
  0x1c   :  { %261 = vmatprep.subr.bf16.mxu0 %v283_v15 }
  0x1f   :  { %262 = vmatpush3.bf16.msra.mxu0 %v284_v16 }
  0x22   :  { %196 = vmatmul.mubr.bf16.vlgmr.msra.gmra.mxu0 %v285_v17 }
  0xe2   :  { %v263_v18 = vpop.f32.mrf.mxu0 }
  0xe4   :  { %v264_v19 = vpop.f32.mrf.mxu0 }
  0xe5   :  { %v265_v21 = vadd.f32 %v264_v19, %v263_v18 }
  0xe6   :  { %v266_v22 = vpop.f32.mrf.mxu0 }
  0xe7   :  { %v220_v23 = vadd.f32 %v265_v21, %v246_v20 }
  0xe8   :  { %v267_v24 = vpop.f32.mrf.mxu0 }
  0xe9   :  { %222 = vst [vmem:[%s374_s3] sm:$0xff] %v220_v23  ;;  %v268_v25 = vadd.f32 %v267_v24, %v266_v22 }
  0xeb   :  { %v221_v26 = vadd.f32 %v268_v25, %v246_v20 }
  0xed   :  { %223 = vst [vmem:[%s374_s3 + $0x8] sm:$0xff] %v221_v26 }

// kernel: fwd.18
= control target key start
LH: loop header
LB: loop body
LE: loop exit
PB: predicated region body
PF: predicated region fallthrough
CT: control target
= control target key end

     0   :  { %s1400_s12 = smov 0   ;;  %s1402_s13 = smov 0   ;;  %s1668_s0 = inlined_call_operand.vmem [shape: bf16[16,256], index: 0, kind: input, shape index: {}]   ;;  %s1669_s1 = inlined_call_operand.vmem [shape: bf16[256,768], index: 1, kind: input, shape index: {}]   ;;  %s1670_s2 = inlined_call_operand.vmem [shape: f32[1,768], index: 2, kind: input, shape index: {}]   ;;  %s1671_s3 = inlined_call_operand.vmem [shape: bf16[16,768], index: 3, kind: output, shape index: {}]  }
   0x1   :  { %s1404_s14 = smov 0   ;;  %s1406_s15 = smov 0  }
   0x2   :  { %s1408_s16 = smov 0  }
   0x3 LB: > { %s28_s17 = sadd.s32 1, %s1374_s15  ;;  %s1070_s18 = sadd.s32 4294967295, %s1378_s16   ;;  %s1378_s16 = sphi %s1408_s16, %s13_s16   ;;  %s1374_s15 = sphi %s1406_s15, %s1676_s15   ;;  %s1370_s14 = sphi %s1404_s14, %s1675_s14   ;;  %s1366_s13 = sphi %s1402_s13, %s1674_s13   ;;  %s1362_s12 = sphi %s1400_s12, %s1673_s12  }
   0x4   : > { %p30_p0 = scmp.ge.s32.totalorder %s28_s17, 2  ;;  %p76_p1 = scmp.ne.s32.totalorder %s1366_s13, %s1362_s12 }
   0x5   : > { %p77_p2 = scmp.eq.s32.totalorder %s1378_s16, 0  ;;  %p134_p4 = scmp.eq.s32.totalorder %s1070_s18, 1 }
   0x6   : > { %s1678_s17 = smov (%p30_p0, %s28_s17), 0  ;;  %s69_s20 = sadd.s32 1, %s1366_s13 }
   0x7   : > { %p78_p3 = por %p77_p2, %p76_p1  ;;  %s65_s19 = ssub.s32 %s1374_s15, %s1678_s17 }
   0x8   : > { %p67_p5 = scmp.eq.s32.totalorder %s65_s19, 0  ;;  %p1435_p6 = por %p134_p4, %p76_p1 }
   0x9   : > { %p1074_p7 = scmp.ge.s32.totalorder %s1378_s16, 2 }
   0xa   : > { %s1440_s22 = scalar_select %p67_p5, %s1366_s13, %s69_s20  }
   0xb   : > { %171 = sbr.rel (%p1074_p7) target bundleno = 58 (0x3a), region = 20 }
  0x10   : > { %174 = sbr.rel (!%p78_p3) target bundleno = 58 (0x3a), region = 24  ;;  %s176_s23 = sand.u32 (%p78_p3), 1, %s1366_s13  }
  0x11   : > { %s1202_s24 = smul.u32 (%p78_p3), 12, %s1374_s15 }
  0x12   : > { %s1230_s25 = smul.u32 (%p78_p3), 384, %s176_s23 }
  0x13   : > { %s1448_s28 = scalar_lea.vmem (%p78_p3), %s1669_s1, %s1202_s24 }
  0x14   : > { %v199_v0 = vld [vmem:[%s1448_s28] sm:$0xff] (%p78_p3)  ;;  %v201_v1 = vld [vmem:[%s1448_s28 + $0x18] sm:$0xff] (%p78_p3)  ;;  %v203_v2 = vld [vmem:[%s1448_s28 + $0x30] sm:$0xff] (%p78_p3)  ;;  %s1453_s29 = scalar_lea.vmem (%p78_p3), [#allocation3], %s1230_s25 }
  0x15   : > { %200 = vst [vmem:[%s1453_s29] sm:$0xff] %v199_v0  ;;  %202 = vst [vmem:[%s1453_s29 + $0xc] sm:$0xff] %v201_v1  ;;  %v205_v3 = vld [vmem:[%s1448_s28 + $0x48] sm:$0xff]  ;;  %v207_v4 = vld [vmem:[%s1448_s28 + $0x60] sm:$0xff] }
  0x16   : > { %204 = vst [vmem:[%s1453_s29 + $0x18] sm:$0xff] %v203_v2  ;;  %v209_v5 = vld [vmem:[%s1448_s28 + $0x78] sm:$0xff]  ;;  %206 = vst [vmem:[%s1453_s29 + $0x24] sm:$0xff] %v205_v3  ;;  %v211_v6 = vld [vmem:[%s1448_s28 + $0x90] sm:$0xff] }
  0x17   : > { %208 = vst [vmem:[%s1453_s29 + $0x30] sm:$0xff] %v207_v4  ;;  %210 = vst [vmem:[%s1453_s29 + $0x3c] sm:$0xff] %v209_v5  ;;  %v213_v7 = vld [vmem:[%s1448_s28 + $0xa8] sm:$0xff]  ;;  %v215_v8 = vld [vmem:[%s1448_s28 + $0xc0] sm:$0xff] }
  0x18   : > { %212 = vst [vmem:[%s1453_s29 + $0x48] sm:$0xff] %v211_v6  ;;  %214 = vst [vmem:[%s1453_s29 + $0x54] sm:$0xff] %v213_v7  ;;  %v217_v9 = vld [vmem:[%s1448_s28 + $0xd8] sm:$0xff]  ;;  %v219_v10 = vld [vmem:[%s1448_s28 + $0xf0] sm:$0xff] }
  0x19   : > { %216 = vst [vmem:[%s1453_s29 + $0x60] sm:$0xff] %v215_v8  ;;  %v221_v11 = vld [vmem:[%s1448_s28 + $0x108] sm:$0xff]  ;;  %218 = vst [vmem:[%s1453_s29 + $0x6c] sm:$0xff] %v217_v9  ;;  %v223_v12 = vld [vmem:[%s1448_s28 + $0x120] sm:$0xff] }
  0x1a   : > { %220 = vst [vmem:[%s1453_s29 + $0x78] sm:$0xff] %v219_v10  ;;  %222 = vst [vmem:[%s1453_s29 + $0x84] sm:$0xff] %v221_v11  ;;  %v225_v13 = vld [vmem:[%s1448_s28 + $0x138] sm:$0xff]  ;;  %v227_v14 = vld [vmem:[%s1448_s28 + $0x150] sm:$0xff] }
  0x1b   : > { %224 = vst [vmem:[%s1453_s29 + $0x90] sm:$0xff] %v223_v12  ;;  %226 = vst [vmem:[%s1453_s29 + $0x9c] sm:$0xff] %v225_v13  ;;  %v229_v15 = vld [vmem:[%s1448_s28 + $0x168] sm:$0xff]  ;;  %v231_v16 = vld [vmem:[%s1448_s28 + $0x180] sm:$0xff] }
  0x1c   : > { %228 = vst [vmem:[%s1453_s29 + $0xa8] sm:$0xff] %v227_v14  ;;  %v233_v17 = vld [vmem:[%s1448_s28 + $0x198] sm:$0xff]  ;;  %230 = vst [vmem:[%s1453_s29 + $0xb4] sm:$0xff] %v229_v15  ;;  %v235_v18 = vld [vmem:[%s1448_s28 + $0x1b0] sm:$0xff] }
  0x1d   : > { %232 = vst [vmem:[%s1453_s29 + $0xc0] sm:$0xff] %v231_v16  ;;  %234 = vst [vmem:[%s1453_s29 + $0xcc] sm:$0xff] %v233_v17  ;;  %v237_v19 = vld [vmem:[%s1448_s28 + $0x1c8] sm:$0xff]  ;;  %v239_v20 = vld [vmem:[%s1448_s28 + $0x1e0] sm:$0xff] }
  0x1e   : > { %236 = vst [vmem:[%s1453_s29 + $0xd8] sm:$0xff] %v235_v18  ;;  %238 = vst [vmem:[%s1453_s29 + $0xe4] sm:$0xff] %v237_v19  ;;  %v241_v21 = vld [vmem:[%s1448_s28 + $0x1f8] sm:$0xff]  ;;  %v243_v22 = vld [vmem:[%s1448_s28 + $0x210] sm:$0xff] }
  0x1f   : > { %240 = vst [vmem:[%s1453_s29 + $0xf0] sm:$0xff] %v239_v20  ;;  %v245_v23 = vld [vmem:[%s1448_s28 + $0x228] sm:$0xff]  ;;  %242 = vst [vmem:[%s1453_s29 + $0xfc] sm:$0xff] %v241_v21  ;;  %v247_v24 = vld [vmem:[%s1448_s28 + $0x240] sm:$0xff] }
  0x20   : > { %244 = vst [vmem:[%s1453_s29 + $0x108] sm:$0xff] %v243_v22  ;;  %246 = vst [vmem:[%s1453_s29 + $0x114] sm:$0xff] %v245_v23  ;;  %v249_v25 = vld [vmem:[%s1448_s28 + $0x258] sm:$0xff]  ;;  %v251_v26 = vld [vmem:[%s1448_s28 + $0x270] sm:$0xff] }
  0x21   : > { %248 = vst [vmem:[%s1453_s29 + $0x120] sm:$0xff] %v247_v24  ;;  %250 = vst [vmem:[%s1453_s29 + $0x12c] sm:$0xff] %v249_v25  ;;  %v253_v27 = vld [vmem:[%s1448_s28 + $0x288] sm:$0xff]  ;;  %v255_v28 = vld [vmem:[%s1448_s28 + $0x2a0] sm:$0xff] }
  0x22   : > { %252 = vst [vmem:[%s1453_s29 + $0x138] sm:$0xff] %v251_v26  ;;  %v257_v29 = vld [vmem:[%s1448_s28 + $0x2b8] sm:$0xff]  ;;  %254 = vst [vmem:[%s1453_s29 + $0x144] sm:$0xff] %v253_v27  ;;  %v259_v30 = vld [vmem:[%s1448_s28 + $0x2d0] sm:$0xff] }
  0x23   : > { %256 = vst [vmem:[%s1453_s29 + $0x150] sm:$0xff] %v255_v28  ;;  %258 = vst [vmem:[%s1453_s29 + $0x15c] sm:$0xff] %v257_v29  ;;  %v261_v31 = vld [vmem:[%s1448_s28 + $0x2e8] sm:$0xff]  ;;  %v1078_v33 = vld [vmem:[%s1448_s28 + $0x20] sm:$0xf] }
  0x24   : > { %v1076_v32 = vld [vmem:[%s1448_s28 + $0x8] sm:$0xf]  ;;  %260 = vst [vmem:[%s1453_s29 + $0x168] sm:$0xff] %v259_v30  ;;  %262 = vst [vmem:[%s1453_s29 + $0x174] sm:$0xff] %v261_v31  ;;  %v1080_v34 = vld [vmem:[%s1448_s28 + $0x38] sm:$0xf] }
  0x25   : > { %1077 = vst [vmem:[%s1453_s29 + $0x8] sm:$0xf] %v1076_v32  ;;  %v1082_v35 = vld [vmem:[%s1448_s28 + $0x50] sm:$0xf]  ;;  %1079 = vst [vmem:[%s1453_s29 + $0x14] sm:$0xf] %v1078_v33 }
  0x26   : > { %1081 = vst [vmem:[%s1453_s29 + $0x20] sm:$0xf] %v1080_v34  ;;  %1083 = vst [vmem:[%s1453_s29 + $0x2c] sm:$0xf] %v1082_v35  ;;  %v1084_v36 = vld [vmem:[%s1448_s28 + $0x68] sm:$0xf] }
  0x27   : > { %v1086_v37 = vld [vmem:[%s1448_s28 + $0x80] sm:$0xf]  ;;  %v1088_v38 = vld [vmem:[%s1448_s28 + $0x98] sm:$0xf]  ;;  %1085 = vst [vmem:[%s1453_s29 + $0x38] sm:$0xf] %v1084_v36 }
  0x28   : > { %1087 = vst [vmem:[%s1453_s29 + $0x44] sm:$0xf] %v1086_v37  ;;  %1089 = vst [vmem:[%s1453_s29 + $0x50] sm:$0xf] %v1088_v38  ;;  %v1090_v39 = vld [vmem:[%s1448_s28 + $0xb0] sm:$0xf] }
  0x29   : > { %v1092_v40 = vld [vmem:[%s1448_s28 + $0xc8] sm:$0xf]  ;;  %v1094_v41 = vld [vmem:[%s1448_s28 + $0xe0] sm:$0xf]  ;;  %1091 = vst [vmem:[%s1453_s29 + $0x5c] sm:$0xf] %v1090_v39 }
  0x2a   : > { %1093 = vst [vmem:[%s1453_s29 + $0x68] sm:$0xf] %v1092_v40  ;;  %1095 = vst [vmem:[%s1453_s29 + $0x74] sm:$0xf] %v1094_v41  ;;  %v1096_v42 = vld [vmem:[%s1448_s28 + $0xf8] sm:$0xf] }
  0x2b   : > { %v1098_v43 = vld [vmem:[%s1448_s28 + $0x110] sm:$0xf]  ;;  %v1100_v44 = vld [vmem:[%s1448_s28 + $0x128] sm:$0xf]  ;;  %1097 = vst [vmem:[%s1453_s29 + $0x80] sm:$0xf] %v1096_v42 }
  0x2c   : > { %1099 = vst [vmem:[%s1453_s29 + $0x8c] sm:$0xf] %v1098_v43  ;;  %1101 = vst [vmem:[%s1453_s29 + $0x98] sm:$0xf] %v1100_v44  ;;  %v1102_v45 = vld [vmem:[%s1448_s28 + $0x140] sm:$0xf] }
  0x2d   : > { %v1104_v46 = vld [vmem:[%s1448_s28 + $0x158] sm:$0xf]  ;;  %v1106_v47 = vld [vmem:[%s1448_s28 + $0x170] sm:$0xf]  ;;  %1103 = vst [vmem:[%s1453_s29 + $0xa4] sm:$0xf] %v1102_v45 }
  0x2e   : > { %1105 = vst [vmem:[%s1453_s29 + $0xb0] sm:$0xf] %v1104_v46  ;;  %1107 = vst [vmem:[%s1453_s29 + $0xbc] sm:$0xf] %v1106_v47  ;;  %v1108_v48 = vld [vmem:[%s1448_s28 + $0x188] sm:$0xf] }
  0x2f   : > { %v1110_v49 = vld [vmem:[%s1448_s28 + $0x1a0] sm:$0xf]  ;;  %v1112_v50 = vld [vmem:[%s1448_s28 + $0x1b8] sm:$0xf]  ;;  %1109 = vst [vmem:[%s1453_s29 + $0xc8] sm:$0xf] %v1108_v48 }
  0x30   : > { %1111 = vst [vmem:[%s1453_s29 + $0xd4] sm:$0xf] %v1110_v49  ;;  %1113 = vst [vmem:[%s1453_s29 + $0xe0] sm:$0xf] %v1112_v50  ;;  %v1114_v51 = vld [vmem:[%s1448_s28 + $0x1d0] sm:$0xf] }
  0x31   : > { %v1116_v52 = vld [vmem:[%s1448_s28 + $0x1e8] sm:$0xf]  ;;  %v1118_v53 = vld [vmem:[%s1448_s28 + $0x200] sm:$0xf]  ;;  %1115 = vst [vmem:[%s1453_s29 + $0xec] sm:$0xf] %v1114_v51 }
  0x32   : > { %1117 = vst [vmem:[%s1453_s29 + $0xf8] sm:$0xf] %v1116_v52  ;;  %1119 = vst [vmem:[%s1453_s29 + $0x104] sm:$0xf] %v1118_v53  ;;  %v1120_v54 = vld [vmem:[%s1448_s28 + $0x218] sm:$0xf] }
  0x33   : > { %v1122_v55 = vld [vmem:[%s1448_s28 + $0x230] sm:$0xf]  ;;  %v1124_v56 = vld [vmem:[%s1448_s28 + $0x248] sm:$0xf]  ;;  %1121 = vst [vmem:[%s1453_s29 + $0x110] sm:$0xf] %v1120_v54 }
  0x34   : > { %1123 = vst [vmem:[%s1453_s29 + $0x11c] sm:$0xf] %v1122_v55  ;;  %1125 = vst [vmem:[%s1453_s29 + $0x128] sm:$0xf] %v1124_v56  ;;  %v1126_v57 = vld [vmem:[%s1448_s28 + $0x260] sm:$0xf] }
  0x35   : > { %v1128_v58 = vld [vmem:[%s1448_s28 + $0x278] sm:$0xf]  ;;  %v1130_v59 = vld [vmem:[%s1448_s28 + $0x290] sm:$0xf]  ;;  %1127 = vst [vmem:[%s1453_s29 + $0x134] sm:$0xf] %v1126_v57 }
  0x36   : > { %1129 = vst [vmem:[%s1453_s29 + $0x140] sm:$0xf] %v1128_v58  ;;  %1131 = vst [vmem:[%s1453_s29 + $0x14c] sm:$0xf] %v1130_v59  ;;  %v1132_v60 = vld [vmem:[%s1448_s28 + $0x2a8] sm:$0xf] }
  0x37   : > { %v1134_v61 = vld [vmem:[%s1448_s28 + $0x2c0] sm:$0xf]  ;;  %v1136_v62 = vld [vmem:[%s1448_s28 + $0x2d8] sm:$0xf]  ;;  %1133 = vst [vmem:[%s1453_s29 + $0x158] sm:$0xf] %v1132_v60 }
  0x38   : > { %1135 = vst [vmem:[%s1453_s29 + $0x164] sm:$0xf] %v1134_v61  ;;  %1137 = vst [vmem:[%s1453_s29 + $0x170] sm:$0xf] %v1136_v62  ;;  %v1138_v63 = vld [vmem:[%s1448_s28 + $0x2f0] sm:$0xf] }
  0x39   : > { %1139 = vst [vmem:[%s1453_s29 + $0x17c] sm:$0xf] %v1138_v63 }
  0x3a PF: > { %p1140_p8 = scmp.ge.s32.totalorder %s1378_s16, 1  ;;  %p347_p9 = scmp.lt.s32.totalorder %s1378_s16, 3 }
  0x3c   : > { %p348_p10 = pnand %p1140_p8, %p347_p9 }
  0x3d   : > { %s354_s30 = sand.u32 (!%p348_p10), 1, %s1362_s12   ;;  %s404_s10 = smul.u32 (!%p348_p10), 3, %s1370_s14 }
  0x3e   : > { %351 = sbr.rel (%p348_p10) target bundleno = 345 (0x159), region = 54 }
  0x3f   : > { %s1231_s4 = smul.u32 (!%p348_p10), 384, %s354_s30  ;;  %p405_p11 = scmp.lt.s32.totalorder (!%p348_p10), %s404_s10, 5 }
  0x40   : > { %s1232_s20 = smul.u32 (!%p348_p10), 24, %s354_s30 }
  0x41   : > { %s1588_s7 = scalar_lea.vmem (!%p348_p10), [#allocation3], %s1231_s4 }
  0x42   : > { %s389_s23 = scalar_lea.vmem (!%p348_p10), [#allocation4], %s1232_s20 }
  0x43   : > { %v1333_v0 = vld [vmem:[%s1668_s0 + $0x4] ss:$8 sps:$4 sm:$0xff]   ;;  %v1275_v2 = vld [vmem:[%s1588_s7 + $0xa8] ss:$12 sps:$4 sm:$0xff]   ;;  %v1278_v4 = vld [vmem:[%s1588_s7 + $0x90] ss:$12 sps:$4 sm:$0xff]   ;;  %v867_v50 = vlaneseq }
  0x44   : > { %835 = vmatprep.mubr.bf16.mxu1 %v1333_v0  ;;  %792 = vmatprep.mubr.bf16.mxu0 %v1333_v0  ;;  %v1273_v1 = vld [vmem:[%s1588_s7 + $0xac] ss:$12 sps:$4 sm:$0xff]   ;;  %v1276_v3 = vld [vmem:[%s1588_s7 + $0x94] ss:$12 sps:$4 sm:$0xff]   ;;  %v1279_v5 = vld [vmem:[%s1588_s7 + $0x7c] ss:$12 sps:$4 sm:$0xff]  }
  0x45   : > { %760 = vmatprep.subr.bf16.mxu0 %v1273_v1  ;;  %v1281_v6 = vld [vmem:[%s1588_s7 + $0x78] ss:$12 sps:$4 sm:$0xff]   ;;  %v1293_v8 = vld [vmem:[%s1588_s7 + $0x170] ss:$12 sps:$4 sm:$0xff]   ;;  %v1284_v9 = vld [vmem:[%s1588_s7 + $0x60] ss:$12 sps:$4 sm:$0xff]  }
  0x46   : > { %761 = vmatpush1.bf16.msra.mxu0 %v1275_v2  ;;  %v1282_v7 = vld [vmem:[%s1588_s7 + $0x64] ss:$12 sps:$4 sm:$0xff]   ;;  %1208 = vmatprep.subr.bf16.mxu1 %v1293_v8  ;;  %v1285_v11 = vld [vmem:[%s1588_s7 + $0x4c] ss:$12 sps:$4 sm:$0xff]   ;;  %v1287_v14 = vld [vmem:[%s1588_s7 + $0x48] ss:$12 sps:$4 sm:$0xff]  }
  0x47   : > { %762 = vmatprep.subr.bf16.mxu0 %v1276_v3  ;;  %v1295_v10 = vld [vmem:[%s1588_s7 + $0xb0] ss:$12 sps:$4 sm:$0xff]   ;;  %v1298_v12 = vld [vmem:[%s1588_s7 + $0x158] ss:$12 sps:$4 sm:$0xff]   ;;  %v1288_v15 = vld [vmem:[%s1588_s7 + $0x34] ss:$12 sps:$4 sm:$0xff]  }
  0x48   : > { %1209 = vmatpush3.bf16.msra.mxu1 %v1295_v10  ;;  %v1300_v13 = vld [vmem:[%s1588_s7 + $0x98] ss:$12 sps:$4 sm:$0xff]   ;;  %v1303_v16 = vld [vmem:[%s1588_s7 + $0x140] ss:$12 sps:$4 sm:$0xff]   ;;  %v1290_v18 = vld [vmem:[%s1588_s7 + $0x30] ss:$12 sps:$4 sm:$0xff]  }
  0x49   : > { %1210 = vmatprep.subr.bf16.mxu1 %v1298_v12  ;;  %v1305_v17 = vld [vmem:[%s1588_s7 + $0x80] ss:$12 sps:$4 sm:$0xff]   ;;  %v1308_v19 = vld [vmem:[%s1588_s7 + $0x128] ss:$12 sps:$4 sm:$0xff]   ;;  %v1294_v22 = vld [vmem:[%s1588_s7 + $0x18] ss:$12 sps:$4 sm:$0xff]  }
  0x4a   : > { %763 = vmatpush1.bf16.msra.mxu0 %v1278_v4  ;;  %v1291_v20 = vld [vmem:[%s1588_s7 + $0x1c] ss:$12 sps:$4 sm:$0xff]   ;;  %v1296_v24 = vld [vmem:[%s1588_s7 + $0x4] ss:$12 sps:$4 sm:$0xff]   ;;  %v1299_v27 = vld [vmem:[%s1588_s7] ss:$12 sps:$4 sm:$0xff]  }
  0x4b   : > { %764 = vmatprep.subr.bf16.mxu0 %v1279_v5  ;;  %v1310_v21 = vld [vmem:[%s1588_s7 + $0x68] ss:$12 sps:$4 sm:$0xff]   ;;  %v1313_v23 = vld [vmem:[%s1588_s7 + $0x110] ss:$12 sps:$4 sm:$0xff]   ;;  %v1318_v26 = vld [vmem:[%s1588_s7 + $0xf8] ss:$12 sps:$4 sm:$0xff]  }
  0x4c   : > { %1211 = vmatpush3.bf16.msra.mxu1 %v1300_v13  ;;  %v1315_v25 = vld [vmem:[%s1588_s7 + $0x50] ss:$12 sps:$4 sm:$0xff]   ;;  %v1301_v28 = vld [vmem:[%s1588_s7 + $0x16c] ss:$12 sps:$4 sm:$0xff]   ;;  %v1304_v31 = vld [vmem:[%s1588_s7 + $0x168] ss:$12 sps:$4 sm:$0xff]  }
  0x4d   : > { %1212 = vmatprep.subr.bf16.mxu1 %v1303_v16  ;;  %v1320_v29 = vld [vmem:[%s1588_s7 + $0x38] ss:$12 sps:$4 sm:$0xff]   ;;  %v1323_v30 = vld [vmem:[%s1588_s7 + $0xe0] ss:$12 sps:$4 sm:$0xff]   ;;  %v1328_v34 = vld [vmem:[%s1588_s7 + $0xc8] ss:$12 sps:$4 sm:$0xff]  }
  0x4e   : > { %765 = vmatpush1.bf16.msra.mxu0 %v1281_v6  ;;  %v1306_v32 = vld [vmem:[%s1588_s7 + $0x154] ss:$12 sps:$4 sm:$0xff]   ;;  %v1309_v35 = vld [vmem:[%s1588_s7 + $0x150] ss:$12 sps:$4 sm:$0xff]   ;;  %v1314_v38 = vld [vmem:[%s1588_s7 + $0x138] ss:$12 sps:$4 sm:$0xff]  }
  0x4f   : > { %766 = vmatprep.subr.bf16.mxu0 %v1282_v7  ;;  %v1325_v33 = vld [vmem:[%s1588_s7 + $0x20] ss:$12 sps:$4 sm:$0xff]   ;;  %v1311_v36 = vld [vmem:[%s1588_s7 + $0x13c] ss:$12 sps:$4 sm:$0xff]   ;;  %v1316_v39 = vld [vmem:[%s1588_s7 + $0x124] ss:$12 sps:$4 sm:$0xff]  }
  0x50   : > { %1213 = vmatpush3.bf16.msra.mxu1 %v1305_v17  ;;  %v1330_v37 = vld [vmem:[%s1588_s7 + $0x8] ss:$12 sps:$4 sm:$0xff]   ;;  %v1319_v41 = vld [vmem:[%s1588_s7 + $0x120] ss:$12 sps:$4 sm:$0xff]   ;;  %v1329_v45 = vld [vmem:[%s1588_s7 + $0xf0] ss:$12 sps:$4 sm:$0xff]  }
  0x51   : > { %1214 = vmatprep.subr.bf16.mxu1 %v1308_v19  ;;  %v1331_v40 = vld [vmem:[%s1668_s0] ss:$8 sps:$4 sm:$0xff]   ;;  %v1321_v42 = vld [vmem:[%s1588_s7 + $0x10c] ss:$12 sps:$4 sm:$0xff]   ;;  %v1337_v48 = vld [vmem:[%s1588_s7 + $0xc4] ss:$12 sps:$4 sm:$0xff]  }
  0x52   : > { %767 = vmatpush1.bf16.msra.mxu0 %v1284_v9  ;;  %v1324_v43 = vld [vmem:[%s1588_s7 + $0x108] ss:$12 sps:$4 sm:$0xff]   ;;  %v1336_v47 = vld [vmem:[%s1588_s7 + $0xd8] ss:$12 sps:$4 sm:$0xff]   ;;  %v1339_v49 = vld [vmem:[%s1588_s7 + $0xc0] ss:$12 sps:$4 sm:$0xff]  }
  0x53   : > { %768 = vmatprep.subr.bf16.mxu0 %v1285_v11  ;;  %v1326_v44 = vld [vmem:[%s1588_s7 + $0xf4] ss:$12 sps:$4 sm:$0xff]   ;;  %v1334_v46 = vld [vmem:[%s1588_s7 + $0xdc] ss:$12 sps:$4 sm:$0xff]   ;;  %s1680_s10 = smov (!%p405_p11, %s404_s10), 5  ;;  %v868_v51 = vshrl.u32 %v867_v50, 7 }
  0x54   : > { %1215 = vmatpush3.bf16.msra.mxu1 %v1310_v21  ;;  %s407_s19 = scalar_lea.vmem %s1670_s2, %s1680_s10  ;;  %s1207_s12 = smul.u32 (%p1435_p6), 12, %s1370_s14 }
  0x55   : > { %1216 = vmatprep.subr.bf16.mxu1 %v1313_v23  ;;  %v877_v52 = vsub.s32 2, %v868_v51  ;;  %v865_v53 = vld [vmem:[%s407_s19] sm:$0x7]  ;;  %v869_v1 = vsub.s32 0, %v868_v51  ;;  %v873_v2 = vsub.s32 1, %v868_v51 }
  0x56   : > { %769 = vmatpush1.bf16.msra.mxu0 %v1287_v14  ;;  %s924_s26 = scalar_lea.vmem (%p1435_p6), %s1671_s3, %s1207_s12 }
  0x57   : > { %770 = vmatprep.subr.bf16.mxu0 %v1288_v15  ;;  %v878_v55 = vrot.slane %v865_v53, %v877_v52  ;;  %v870_v3 = vrot.slane %v865_v53, %v869_v1  ;;  %v874_v4 = vrot.slane %v865_v53, %v873_v2 }
  0x58   : > { %1217 = vmatpush3.bf16.msra.mxu1 %v1315_v25 }
  0x59   : > { %1218 = vmatprep.subr.bf16.mxu1 %v1318_v26 }
  0x5a   : > { %771 = vmatpush1.bf16.msra.mxu0 %v1290_v18 }
  0x5b   : > { %772 = vmatprep.subr.bf16.mxu0 %v1291_v20 }
  0x5c   : > { %1219 = vmatpush3.bf16.msra.mxu1 %v1320_v29 }
  0x5d   : > { %1220 = vmatprep.subr.bf16.mxu1 %v1323_v30 }
  0x5e   : > { %773 = vmatpush1.bf16.msra.mxu0 %v1294_v22 }
  0x5f   : > { %774 = vmatprep.subr.bf16.mxu0 %v1296_v24 }
  0x60   : > { %1221 = vmatpush3.bf16.msra.mxu1 %v1325_v33 }
  0x61   : > { %1222 = vmatprep.subr.bf16.mxu1 %v1328_v34 }
  0x62   : > { %775 = vmatpush1.bf16.msra.mxu0 %v1299_v27 }
  0x63   : > { %776 = vmatprep.subr.bf16.mxu0 %v1301_v28 }
  0x64   : > { %1223 = vmatpush3.bf16.msra.mxu1 %v1330_v37 }
  0x66   : > { %777 = vmatpush2.bf16.msra.mxu0 %v1304_v31 }
  0x67   : > { %778 = vmatprep.subr.bf16.mxu0 %v1306_v32  ;;  %836 = vmatmul.mubr.bf16.vlgmr.msra.gmra.mxu1 %v1331_v40 }
  0x6a   : > { %779 = vmatpush2.bf16.msra.mxu0 %v1309_v35 }
  0x6b   : > { %780 = vmatprep.subr.bf16.mxu0 %v1311_v36 }
  0x6e   : > { %781 = vmatpush2.bf16.msra.mxu0 %v1314_v38 }
  0x6f   : > { %782 = vmatprep.subr.bf16.mxu0 %v1316_v39 }
  0x72   : > { %783 = vmatpush2.bf16.msra.mxu0 %v1319_v41 }
  0x73   : > { %784 = vmatprep.subr.bf16.mxu0 %v1321_v42 }
  0x76   : > { %785 = vmatpush2.bf16.msra.mxu0 %v1324_v43 }
  0x77   : > { %786 = vmatprep.subr.bf16.mxu0 %v1326_v44 }
  0x7a   : > { %787 = vmatpush2.bf16.msra.mxu0 %v1329_v45 }
  0x7b   : > { %788 = vmatprep.subr.bf16.mxu0 %v1334_v46 }
  0x7e   : > { %789 = vmatpush2.bf16.msra.mxu0 %v1336_v47 }
  0x7f   : > { %790 = vmatprep.subr.bf16.mxu0 %v1337_v48 }
  0x82   : > { %791 = vmatpush2.bf16.msra.mxu0 %v1339_v49 }
  0x85   : > { %793 = vmatmul.mubr.bf16.vlgmr.msra.gmra.mxu0 %v1331_v40 }
 0x127   : > { %v1224_v54 = vpop.f32.mrf.mxu1 }
 0x129   : > { %v1225_v56 = vpop.f32.mrf.mxu1 }
 0x12a   : > { %v1226_v57 = vadd.f32 %v1225_v56, %v1224_v54 }
 0x12b   : > { %v1227_v58 = vpop.f32.mrf.mxu1 }
 0x12c   : > { %v884_v59 = vadd.f32 %v1226_v57, %v878_v55 }
 0x12d   : > { %v1228_v60 = vpop.f32.mrf.mxu1 }
 0x12e   : > { %v1204_v61 = vpack.c.bf16 %v884_v59, %v884_v59  ;;  %v1229_v62 = vadd.f32 %v1228_v60, %v1227_v58 }
 0x130   : > { %909 = vst [vmem:[%s389_s23 + $0x8] sm:$0xf] %v1204_v61  ;;  %v887_v63 = vadd.f32 %v1229_v62, %v878_v55 }
 0x132   : > { %v1206_v0 = vpack.c.bf16 %v887_v63, %v887_v63 }
 0x134   : > { %911 = vst [vmem:[%s389_s23 + $0x14] sm:$0xf] %v1206_v0 }
 0x137   : > { %v1196_v17 = vld [vmem:[%s389_s23 + $0x8] sm:$0xf] (%p1435_p6) }
 0x138   : > { %1197 = vst [vmem:[%s924_s26 + $0x8] sm:$0xf] (%p1435_p6), %v1196_v17 }
 0x13b   : > { %v1198_v18 = vld [vmem:[%s389_s23 + $0x14] sm:$0xf] (%p1435_p6) }
 0x13c   : > { %1199 = vst [vmem:[%s924_s26 + $0x20] sm:$0xf] (%p1435_p6), %v1198_v18 }
 0x145   : > { %v794_v5 = vpop.f32.mrf.mxu0 }
 0x146   : > { %v882_v7 = vadd.f32 %v870_v3, %v794_v5 }
 0x147   : > { %v796_v6 = vpop.f32.mrf.mxu0 }
 0x148   : > { %v883_v8 = vadd.f32 %v874_v4, %v796_v6 }
 0x149   : > { %v798_v9 = vpop.f32.mrf.mxu0 }
 0x14a   : > { %v1203_v10 = vpack.c.bf16 %v883_v8, %v882_v7  ;;  %v885_v12 = vadd.f32 %v870_v3, %v798_v9 }
 0x14b   : > { %v800_v11 = vpop.f32.mrf.mxu0 }
 0x14c   : > { %908 = vst [vmem:[%s389_s23] sm:$0xff] %v1203_v10  ;;  %v886_v13 = vadd.f32 %v874_v4, %v800_v11  ;;  %918 = sbr.rel (!%p1435_p6) target bundleno = 345 (0x159), region = 70 }
 0x14e   : > { %v1205_v14 = vpack.c.bf16 %v886_v13, %v885_v12 }
 0x150   : > { %910 = vst [vmem:[%s389_s23 + $0xc] sm:$0xff] %v1205_v14 }
 0x153   : > { %v939_v15 = vld [vmem:[%s389_s23] sm:$0xff] }
 0x154   : > { %940 = vst [vmem:[%s924_s26] sm:$0xff] %v939_v15 }
 0x157   : > { %v941_v16 = vld [vmem:[%s389_s23 + $0xc] sm:$0xff] }
 0x158   : > { %942 = vst [vmem:[%s924_s26 + $0x18] sm:$0xff] %v941_v16 }
 0x159 PF: > { %s13_s16 = sadd.s32 1, %s1378_s16   ;;  %s1673_s12 = smov %s1366_s13 }
 0x15a   : > { %p10_p12 = scmp.ge.s32.totalorder %s13_s16, 4   ;;  %s1674_s13 = smov %s1440_s22 }
 0x15b   : > { %s1675_s14 = smov %s1374_s15  ;;  %s1676_s15 = smov %s1678_s17 }
 0x15c   :  { %12 = sbr.rel (!%p10_p12) target bundleno = 3 (0x3), region = 145 }

// kernel: fwd.17
= control target key start
LH: loop header
LB: loop body
LE: loop exit
PB: predicated region body
PF: predicated region fallthrough
CT: control target
= control target key end

     0   :  { %s1101_s1 = inlined_call_operand.vmem [shape: bf16[512,256], index: 1, kind: input, shape index: {}]   ;;  %s1102_s0 = inlined_call_operand.vmem [shape: bf16[16,512], index: 0, kind: input, shape index: {}]   ;;  %s1103_s2 = inlined_call_operand.vmem [shape: f32[1,256], index: 2, kind: input, shape index: {}]   ;;  %s1104_s3 = inlined_call_operand.vmem [shape: bf16[16,256], index: 3, kind: input, shape index: {}]   ;;  %s1105_s4 = inlined_call_operand.vmem [shape: f32[1,256], index: 4, kind: input, shape index: {}]   ;;  %s1106_s5 = inlined_call_operand.vmem [shape: f32[1,256], index: 5, kind: input, shape index: {}]   ;;  %s1107_s6 = inlined_call_operand.vmem [shape: bf16[16,256], index: 6, kind: output, shape index: {}]  }
   0x1   :  { %v725_v0 = vld [vmem:[%s1101_s1 + $0x74] ss:$8 sps:$4 sm:$0xff]   ;;  %v729_v2 = vld [vmem:[%s1101_s1 + $0x70] ss:$8 sps:$4 sm:$0xff]   ;;  %v731_v4 = vld [vmem:[%s1101_s1 + $0x64] ss:$8 sps:$4 sm:$0xff]  }
   0x2   :  { %v727_v1 = vld [vmem:[%s1101_s1 + $0x174] ss:$8 sps:$4 sm:$0xff]   ;;  %443 = vmatprep.subr.bf16.mxu0 %v725_v0  ;;  %v730_v3 = vld [vmem:[%s1101_s1 + $0x170] ss:$8 sps:$4 sm:$0xff]   ;;  %v733_v5 = vld [vmem:[%s1101_s1 + $0x164] ss:$8 sps:$4 sm:$0xff]  }
   0x3   :  { %486 = vmatprep.subr.bf16.mxu1 %v727_v1  ;;  %444 = vmatpush1.bf16.msra.mxu0 %v729_v2  ;;  %v735_v6 = vld [vmem:[%s1101_s1 + $0x60] ss:$8 sps:$4 sm:$0xff]   ;;  %v737_v8 = vld [vmem:[%s1101_s1 + $0x54] ss:$8 sps:$4 sm:$0xff]   ;;  %v741_v10 = vld [vmem:[%s1101_s1 + $0x50] ss:$8 sps:$4 sm:$0xff]  }
   0x4   :  { %487 = vmatpush1.bf16.msra.mxu1 %v730_v3  ;;  %445 = vmatprep.subr.bf16.mxu0 %v731_v4  ;;  %v736_v7 = vld [vmem:[%s1101_s1 + $0x160] ss:$8 sps:$4 sm:$0xff]   ;;  %v739_v9 = vld [vmem:[%s1101_s1 + $0x154] ss:$8 sps:$4 sm:$0xff]   ;;  %v742_v11 = vld [vmem:[%s1101_s1 + $0x150] ss:$8 sps:$4 sm:$0xff]   ;;  %v546_v4 = vlaneseq }
   0x5   :  { %488 = vmatprep.subr.bf16.mxu1 %v733_v5  ;;  %v743_v12 = vld [vmem:[%s1101_s1 + $0x44] ss:$8 sps:$4 sm:$0xff]   ;;  %v747_v14 = vld [vmem:[%s1101_s1 + $0x40] ss:$8 sps:$4 sm:$0xff]   ;;  %v749_v16 = vld [vmem:[%s1101_s1 + $0x34] ss:$8 sps:$4 sm:$0xff]  }
   0x6   :  { %v745_v13 = vld [vmem:[%s1101_s1 + $0x144] ss:$8 sps:$4 sm:$0xff]   ;;  %v748_v15 = vld [vmem:[%s1101_s1 + $0x140] ss:$8 sps:$4 sm:$0xff]   ;;  %v751_v17 = vld [vmem:[%s1101_s1 + $0x134] ss:$8 sps:$4 sm:$0xff]  }
   0x7   :  { %446 = vmatpush1.bf16.msra.mxu0 %v735_v6  ;;  %v753_v18 = vld [vmem:[%s1101_s1 + $0x30] ss:$8 sps:$4 sm:$0xff]   ;;  %v755_v20 = vld [vmem:[%s1101_s1 + $0x24] ss:$8 sps:$4 sm:$0xff]   ;;  %v759_v22 = vld [vmem:[%s1101_s1 + $0x20] ss:$8 sps:$4 sm:$0xff]  }
   0x8   :  { %489 = vmatpush1.bf16.msra.mxu1 %v736_v7  ;;  %447 = vmatprep.subr.bf16.mxu0 %v737_v8  ;;  %v754_v19 = vld [vmem:[%s1101_s1 + $0x130] ss:$8 sps:$4 sm:$0xff]   ;;  %v757_v21 = vld [vmem:[%s1101_s1 + $0x124] ss:$8 sps:$4 sm:$0xff]   ;;  %v760_v23 = vld [vmem:[%s1101_s1 + $0x120] ss:$8 sps:$4 sm:$0xff]  }
   0x9   :  { %490 = vmatprep.subr.bf16.mxu1 %v739_v9  ;;  %v761_v24 = vld [vmem:[%s1101_s1 + $0x14] ss:$8 sps:$4 sm:$0xff]   ;;  %v765_v26 = vld [vmem:[%s1101_s1 + $0x10] ss:$8 sps:$4 sm:$0xff]   ;;  %v767_v28 = vld [vmem:[%s1101_s1 + $0x4] ss:$8 sps:$4 sm:$0xff]  }
   0xa   :  { %v763_v25 = vld [vmem:[%s1101_s1 + $0x114] ss:$8 sps:$4 sm:$0xff]   ;;  %v766_v27 = vld [vmem:[%s1101_s1 + $0x110] ss:$8 sps:$4 sm:$0xff]   ;;  %v769_v29 = vld [vmem:[%s1101_s1 + $0x104] ss:$8 sps:$4 sm:$0xff]  }
   0xb   :  { %448 = vmatpush1.bf16.msra.mxu0 %v741_v10  ;;  %v771_v30 = vld [vmem:[%s1101_s1] ss:$8 sps:$4 sm:$0xff]   ;;  %v773_v32 = vld [vmem:[%s1101_s1 + $0xf4] ss:$8 sps:$4 sm:$0xff]   ;;  %v777_v34 = vld [vmem:[%s1101_s1 + $0xf0] ss:$8 sps:$4 sm:$0xff]  }
   0xc   :  { %491 = vmatpush1.bf16.msra.mxu1 %v742_v11  ;;  %449 = vmatprep.subr.bf16.mxu0 %v743_v12  ;;  %v772_v31 = vld [vmem:[%s1101_s1 + $0x100] ss:$8 sps:$4 sm:$0xff]   ;;  %v775_v33 = vld [vmem:[%s1101_s1 + $0x1f4] ss:$8 sps:$4 sm:$0xff]   ;;  %v778_v35 = vld [vmem:[%s1101_s1 + $0x1f0] ss:$8 sps:$4 sm:$0xff]  }
   0xd   :  { %492 = vmatprep.subr.bf16.mxu1 %v745_v13  ;;  %v779_v36 = vld [vmem:[%s1101_s1 + $0xe4] ss:$8 sps:$4 sm:$0xff]   ;;  %v783_v38 = vld [vmem:[%s1101_s1 + $0xe0] ss:$8 sps:$4 sm:$0xff]   ;;  %v785_v40 = vld [vmem:[%s1101_s1 + $0xd4] ss:$8 sps:$4 sm:$0xff]  }
   0xe   :  { %v781_v37 = vld [vmem:[%s1101_s1 + $0x1e4] ss:$8 sps:$4 sm:$0xff]   ;;  %v784_v39 = vld [vmem:[%s1101_s1 + $0x1e0] ss:$8 sps:$4 sm:$0xff]   ;;  %v787_v41 = vld [vmem:[%s1101_s1 + $0x1d4] ss:$8 sps:$4 sm:$0xff]  }
   0xf   :  { %450 = vmatpush1.bf16.msra.mxu0 %v747_v14  ;;  %v789_v42 = vld [vmem:[%s1101_s1 + $0xd0] ss:$8 sps:$4 sm:$0xff]   ;;  %v791_v44 = vld [vmem:[%s1101_s1 + $0xc4] ss:$8 sps:$4 sm:$0xff]   ;;  %v795_v46 = vld [vmem:[%s1101_s1 + $0xc0] ss:$8 sps:$4 sm:$0xff]  }
  0x10   :  { %493 = vmatpush1.bf16.msra.mxu1 %v748_v15  ;;  %451 = vmatprep.subr.bf16.mxu0 %v749_v16  ;;  %v790_v43 = vld [vmem:[%s1101_s1 + $0x1d0] ss:$8 sps:$4 sm:$0xff]   ;;  %v793_v45 = vld [vmem:[%s1101_s1 + $0x1c4] ss:$8 sps:$4 sm:$0xff]   ;;  %v796_v48 = vld [vmem:[%s1101_s1 + $0x1c0] ss:$8 sps:$4 sm:$0xff]  }
  0x11   :  { %494 = vmatprep.subr.bf16.mxu1 %v751_v17  ;;  %v823_v47 = vld [vmem:[%s1102_s0 + $0x4] ss:$16 sps:$4 sm:$0xff]   ;;  %v826_v51 = vld [vmem:[%s1102_s0 + $0xc] ss:$16 sps:$4 sm:$0xff]   ;;  %v801_v52 = vld [vmem:[%s1101_s1 + $0xb0] ss:$8 sps:$4 sm:$0xff]  }
  0x12   :  { %v797_v49 = vld [vmem:[%s1101_s1 + $0xb4] ss:$8 sps:$4 sm:$0xff]   ;;  %475 = vmatprep.mubr.bf16.mxu0 %v823_v47  ;;  %518 = vmatprep.mubr.bf16.mxu1 %v826_v51  ;;  %v802_v53 = vld [vmem:[%s1101_s1 + $0x1b0] ss:$8 sps:$4 sm:$0xff]   ;;  %v803_v54 = vld [vmem:[%s1101_s1 + $0xa4] ss:$8 sps:$4 sm:$0xff]  }
  0x13   :  { %452 = vmatpush1.bf16.msra.mxu0 %v753_v18  ;;  %v799_v50 = vld [vmem:[%s1101_s1 + $0x1b4] ss:$8 sps:$4 sm:$0xff]   ;;  %v805_v55 = vld [vmem:[%s1101_s1 + $0x1a4] ss:$8 sps:$4 sm:$0xff]   ;;  %v807_v56 = vld [vmem:[%s1101_s1 + $0xa0] ss:$8 sps:$4 sm:$0xff]  }
  0x14   :  { %495 = vmatpush1.bf16.msra.mxu1 %v754_v19  ;;  %453 = vmatprep.subr.bf16.mxu0 %v755_v20  ;;  %v808_v57 = vld [vmem:[%s1101_s1 + $0x1a0] ss:$8 sps:$4 sm:$0xff]   ;;  %v809_v58 = vld [vmem:[%s1101_s1 + $0x94] ss:$8 sps:$4 sm:$0xff]   ;;  %v813_v60 = vld [vmem:[%s1101_s1 + $0x90] ss:$8 sps:$4 sm:$0xff]  }
  0x15   :  { %496 = vmatprep.subr.bf16.mxu1 %v757_v21  ;;  %v811_v59 = vld [vmem:[%s1101_s1 + $0x194] ss:$8 sps:$4 sm:$0xff]   ;;  %v814_v61 = vld [vmem:[%s1101_s1 + $0x190] ss:$8 sps:$4 sm:$0xff]   ;;  %v815_v62 = vld [vmem:[%s1101_s1 + $0x84] ss:$8 sps:$4 sm:$0xff]  }
  0x16   :  { %v817_v63 = vld [vmem:[%s1101_s1 + $0x184] ss:$8 sps:$4 sm:$0xff]   ;;  %v819_v0 = vld [vmem:[%s1101_s1 + $0x80] ss:$8 sps:$4 sm:$0xff]   ;;  %v547_v5 = vshrl.u32 %v546_v4, 7 }
  0x17   :  { %454 = vmatpush1.bf16.msra.mxu0 %v759_v22  ;;  %v820_v1 = vld [vmem:[%s1101_s1 + $0x180] ss:$8 sps:$4 sm:$0xff]  }
  0x18   :  { %497 = vmatpush1.bf16.msra.mxu1 %v760_v23  ;;  %455 = vmatprep.subr.bf16.mxu0 %v761_v24  ;;  %v821_v2 = vld [vmem:[%s1102_s0] ss:$16 sps:$4 sm:$0xff]   ;;  %v824_v3 = vld [vmem:[%s1102_s0 + $0x8] ss:$16 sps:$4 sm:$0xff]   ;;  %v1070_v6 = vsub.s32 0, %v547_v5  ;;  %v1075_v8 = vsub.s32 1, %v547_v5 }
  0x19   :  { %498 = vmatprep.subr.bf16.mxu1 %v763_v25  ;;  %v544_v7 = vld [vmem:[%s1103_s2] sm:$0x3]  ;;  %v561_v21 = vld [vmem:[%s1104_s3 + $0x8] sm:$0xff] }
  0x1a   :  { %v549_v9 = vrot.slane %v544_v7, %v1070_v6  ;;  %v560_v12 = vld [vmem:[%s1104_s3] sm:$0xff]  ;;  %v553_v14 = vrot.slane %v544_v7, %v1075_v8 }
  0x1b   :  { %456 = vmatpush1.bf16.msra.mxu0 %v765_v26  ;;  %v562_v19 = vunpack.c.l.bf16 %v560_v12  ;;  %v563_v20 = vunpack.c.h.bf16 %v560_v12 }
  0x1c   :  { %499 = vmatpush1.bf16.msra.mxu1 %v766_v27  ;;  %457 = vmatprep.subr.bf16.mxu0 %v767_v28  ;;  %v564_v28 = vunpack.c.l.bf16 %v561_v21 }
  0x1d   :  { %500 = vmatprep.subr.bf16.mxu1 %v769_v29  ;;  %v565_v29 = vunpack.c.h.bf16 %v561_v21 }
  0x1f   :  { %458 = vmatpush1.bf16.msra.mxu0 %v771_v30 }
  0x20   :  { %501 = vmatpush1.bf16.msra.mxu1 %v772_v31  ;;  %459 = vmatprep.subr.bf16.mxu0 %v773_v32 }
  0x21   :  { %502 = vmatprep.subr.bf16.mxu1 %v775_v33 }
  0x23   :  { %460 = vmatpush2.bf16.msra.mxu0 %v777_v34 }
  0x24   :  { %503 = vmatpush2.bf16.msra.mxu1 %v778_v35  ;;  %461 = vmatprep.subr.bf16.mxu0 %v779_v36 }
  0x25   :  { %504 = vmatprep.subr.bf16.mxu1 %v781_v37 }
  0x27   :  { %462 = vmatpush2.bf16.msra.mxu0 %v783_v38 }
  0x28   :  { %505 = vmatpush2.bf16.msra.mxu1 %v784_v39  ;;  %463 = vmatprep.subr.bf16.mxu0 %v785_v40 }
  0x29   :  { %506 = vmatprep.subr.bf16.mxu1 %v787_v41 }
  0x2b   :  { %464 = vmatpush2.bf16.msra.mxu0 %v789_v42 }
  0x2c   :  { %507 = vmatpush2.bf16.msra.mxu1 %v790_v43  ;;  %465 = vmatprep.subr.bf16.mxu0 %v791_v44 }
  0x2d   :  { %508 = vmatprep.subr.bf16.mxu1 %v793_v45 }
  0x2f   :  { %466 = vmatpush2.bf16.msra.mxu0 %v795_v46 }
  0x30   :  { %509 = vmatpush2.bf16.msra.mxu1 %v796_v48  ;;  %467 = vmatprep.subr.bf16.mxu0 %v797_v49 }
  0x31   :  { %510 = vmatprep.subr.bf16.mxu1 %v799_v50 }
  0x33   :  { %468 = vmatpush2.bf16.msra.mxu0 %v801_v52 }
  0x34   :  { %511 = vmatpush2.bf16.msra.mxu1 %v802_v53  ;;  %469 = vmatprep.subr.bf16.mxu0 %v803_v54 }
  0x35   :  { %512 = vmatprep.subr.bf16.mxu1 %v805_v55 }
  0x37   :  { %470 = vmatpush2.bf16.msra.mxu0 %v807_v56 }
  0x38   :  { %513 = vmatpush2.bf16.msra.mxu1 %v808_v57  ;;  %471 = vmatprep.subr.bf16.mxu0 %v809_v58 }
  0x39   :  { %514 = vmatprep.subr.bf16.mxu1 %v811_v59  ;;  %v603_v59 = vld [vmem:[%s1105_s4] sm:$0x3] }
  0x3b   :  { %472 = vmatpush2.bf16.msra.mxu0 %v813_v60  ;;  %v619_v60 = vld [vmem:[%s1106_s5] sm:$0x3] }
  0x3c   :  { %515 = vmatpush2.bf16.msra.mxu1 %v814_v61  ;;  %473 = vmatprep.subr.bf16.mxu0 %v815_v62  ;;  %v608_v61 = vrot.slane %v603_v59, %v1070_v6  ;;  %v612_v62 = vrot.slane %v603_v59, %v1075_v8 }
  0x3d   :  { %516 = vmatprep.subr.bf16.mxu1 %v817_v63 }
  0x3f   :  { %474 = vmatpush2.bf16.msra.mxu0 %v819_v0  ;;  %v624_v0 = vrot.slane %v619_v60, %v1070_v6 }
  0x40   :  { %517 = vmatpush2.bf16.msra.mxu1 %v820_v1  ;;  %v628_v1 = vrot.slane %v619_v60, %v1075_v8 }
  0x42   :  { %476 = vmatmul.mubr.bf16.vlgmr.msra.gmra.mxu0 %v821_v2 }
  0x43   :  { %519 = vmatmul.mubr.bf16.vlgmr.msra.gmra.mxu1 %v824_v3 }
 0x102   :  { %v477_v10 = vpop.f32.mrf.mxu0 }
 0x103   :  { %v520_v11 = vpop.f32.mrf.mxu1 }
 0x104   :  { %v521_v13 = vadd.f32 %v520_v11, %v477_v10  ;;  %v479_v15 = vpop.f32.mrf.mxu0 }
 0x105   :  { %v522_v16 = vpop.f32.mrf.mxu1 }
 0x106   :  { %v556_v17 = vadd.f32 %v549_v9, %v521_v13  ;;  %v523_v18 = vadd.f32 %v522_v16, %v479_v15  ;;  %v481_v22 = vpop.f32.mrf.mxu0 }
 0x107   :  { %v524_v23 = vpop.f32.mrf.mxu1 }
 0x108   :  { %v557_v24 = vadd.f32 %v553_v14, %v523_v18  ;;  %v525_v25 = vadd.f32 %v524_v23, %v481_v22  ;;  %v483_v26 = vpop.f32.mrf.mxu0  ;;  %v566_v32 = vadd.f32 %v562_v19, %v556_v17 }
 0x109   :  { %v526_v27 = vpop.f32.mrf.mxu1 }
 0x10a   :  { %v558_v30 = vadd.f32 %v549_v9, %v525_v25  ;;  %v527_v31 = vadd.f32 %v526_v27, %v483_v26  ;;  %v567_v33 = vadd.f32 %v563_v20, %v557_v24 }
 0x10c   :  { %v559_v34 = vadd.f32 %v553_v14, %v527_v31  ;;  %v570_v35 = vadd.f32 %v567_v33, %v566_v32  ;;  %v568_v36 = vadd.f32 %v564_v28, %v558_v30 }
 0x10e   :  { %571 = vadd.xlane.f32.xlu0 %v570_v35  ;;  %v569_v37 = vadd.f32 %v565_v29, %v559_v34 }
 0x110   :  { %v573_v38 = vadd.f32 %v569_v37, %v568_v36 }
 0x112   :  { %574 = vadd.xlane.f32.xlu0 %v573_v38 }
 0x197   :  { %v572_v39 = vpop.xlane.xlu0 %571 }
 0x198   :  { %v577_v40 = vmul.f32 0.00390625, %v572_v39 }
 0x19a   :  { %v579_v41 = vsub.f32 %v566_v32, %v577_v40  ;;  %v580_v42 = vsub.f32 %v567_v33, %v577_v40 }
 0x19b   :  { %v575_v43 = vpop.xlane.xlu0 %574 }
 0x19c   :  { %v578_v44 = vmul.f32 0.00390625, %v575_v43  ;;  %v583_v45 = vmul.f32 %v579_v41, %v579_v41  ;;  %v584_v46 = vmul.f32 %v580_v42, %v580_v42 }
 0x19e   :  { %v581_v47 = vsub.f32 %v568_v36, %v578_v44  ;;  %v582_v48 = vsub.f32 %v569_v37, %v578_v44  ;;  %v587_v49 = vadd.f32 %v584_v46, %v583_v45 }
 0x1a0   :  { %588 = vadd.xlane.f32.xlu1 %v587_v49  ;;  %v585_v50 = vmul.f32 %v581_v47, %v581_v47  ;;  %v586_v51 = vmul.f32 %v582_v48, %v582_v48 }
 0x1a2   :  { %v590_v52 = vadd.f32 %v586_v51, %v585_v50 }
 0x1a4   :  { %591 = vadd.xlane.f32.xlu1 %v590_v52 }
 0x229   :  { %v589_v53 = vpop.xlane.xlu1 %588 }
 0x22a   :  { %v593_v54 = vmul.f32 0.00390625, %v589_v53 }
 0x22c   :  { %v595_v55 = vadd.f32 1e-12, %v593_v54 }
 0x22d   :  { %v592_v56 = vpop.xlane.xlu1 %591 }
 0x22e   :  { %827 = vrsqrt.f32 %v595_v55  ;;  %v594_v57 = vmul.f32 0.00390625, %v592_v56 }
 0x230   :  { %v596_v58 = vadd.f32 1e-12, %v594_v57 }
 0x232   :  { %829 = vrsqrt.f32 %v596_v58 }
 0x23b   :  { %v828_v63 = vpop.eup %827 }
 0x23c   :  { %v599_v2 = vmul.f32 %v828_v63, %v579_v41  ;;  %v600_v3 = vmul.f32 %v828_v63, %v580_v42 }
 0x23e   :  { %v615_v4 = vmul.f32 %v608_v61, %v599_v2  ;;  %v616_v5 = vmul.f32 %v612_v62, %v600_v3 }
 0x23f   :  { %v830_v7 = vpop.eup %829 }
 0x240   :  { %v631_v9 = vadd.f32 %v624_v0, %v615_v4  ;;  %v632_v10 = vadd.f32 %v628_v1, %v616_v5  ;;  %v601_v11 = vmul.f32 %v830_v7, %v581_v47  ;;  %v602_v12 = vmul.f32 %v830_v7, %v582_v48 }
 0x242   :  { %v723_v13 = vpack.c.bf16 %v632_v10, %v631_v9  ;;  %v617_v14 = vmul.f32 %v608_v61, %v601_v11  ;;  %v618_v15 = vmul.f32 %v612_v62, %v602_v12 }
 0x244   :  { %647 = vst [vmem:[%s1107_s6] sm:$0xff] %v723_v13  ;;  %v633_v16 = vadd.f32 %v624_v0, %v617_v14  ;;  %v634_v6 = vadd.f32 %v628_v1, %v618_v15 }
 0x246   :  { %v724_v17 = vpack.c.bf16 %v634_v6, %v633_v16 }
 0x248   :  { %648 = vst [vmem:[%s1107_s6 + $0x8] sm:$0xff] %v724_v17 }

</bundles_post_ra>
